<compile_context>
chip_gen: v7x
topology: tpu7x:2x2x1
jax: 0.10.0
libtpu: 0.0.40
codegen_flags: <defaults>
</compile_context>

<pallas_src>
import functools
import math

import jax
import jax.numpy as jnp
from jax.experimental import pallas as pl
from jax.experimental.pallas import tpu as pltpu


def _round_up(n, m):
    return (n + m - 1) // m * m


def _vmem_capacity_bytes():
    """Physical VMEM per TensorCore (falls back to 128 MiB if unavailable)."""
    try:
        cap = int(pltpu.get_tpu_info().vmem_capacity_bytes)
        if cap > 0:
            return cap
    except Exception:
        pass
    return 128 * 1024 * 1024


def _pick_row_tile(v, max_rows):
    """Largest divisor of V <= max_rows, preferring MXU-aligned (256/128) tiles."""
    if v <= max_rows:
        return v
    for align in (256, 128, 8):
        best, t = 0, align
        while t <= max_rows:
            if v % t == 0:
                best = t
            t += align
        if best:
            return best
    # TODO(synk): ragged V (no 8-aligned divisor <= max_rows) falls back to a
    # single full-height tile; pad V for such spherical samplings instead.
    return v


# ----------------------------- Pallas kernel --------------------------------
def _cheb_conv_kernel(lap_ref, x_ref, w_ref, bias_ref, o_ref, t_ref,
                      *, tv, batch, fin, lap_resident, mxu_dtype):
    # lap_ref : (V, V) resident | (TV, V) streamed row tile of the Laplacian
    # x_ref   : (V, BFpad)      T_0, batch folded into lanes (col = b*Fin + fin)
    # w_ref   : (K, Fin, Fout)  shared (non-block-diagonal) per-order weights
    # bias_ref: (1, N_out)      batch-tiled, lane-padded bias
    # o_ref   : (V, N_out)      resident output block == per-order accumulator
    # t_ref   : (2, V, BFpad)   two-slot Chebyshev ring (f32)
    kk = pl.program_id(0)            # this grid step produces order kk + 1
    r = pl.program_id(1)             # row tile of V
    num_orders = w_ref.shape[0]
    fout = w_ref.shape[2]
    n_out = o_ref.shape[1]

    row0 = pl.multiple_of(r * tv, tv)
    rows = pl.ds(row0, tv)
    lap = lap_ref[rows, :] if lap_resident else lap_ref[...]      # (TV, V)

    def order_contrib(t_tile, w_k):
        # Shared weight across batch: per-batch static lane slices instead of a
        # B^2 block-diagonal weight (no MXU flops / VMEM spent on zeros).
        parts = []
        for bi in range(batch):
            t_b = t_tile[:, bi * fin:(bi + 1) * fin]
            parts.append(jnp.dot(t_b, w_k, preferred_element_type=jnp.float32))
        pad = n_out - batch * fout
        if pad:
            parts.append(jnp.zeros((tv, pad), jnp.float32))
        return jnp.concatenate(parts, axis=-1)                     # (TV, N_out)

    def recursion_step(prev_slot, new_slot, t_prev2, w_k):
        # T_new = 2 * L @ T_prev - T_prev2 ; accumulate its output contribution.
        t_prev = t_ref[prev_slot]                                  # (V, BFpad)
        t_new = 2.0 * jnp.dot(lap, t_prev.astype(mxu_dtype),
                              preferred_element_type=jnp.float32) - t_prev2
        t_ref[new_slot, rows, :] = t_new
        o_ref[rows, :] += order_contrib(t_new, w_k)

    @pl.when(kk == 0)
    def _():
        # T_1 = L @ T_0 with T_0 = x read directly (never copied into the ring);
        # initialize the resident output block with bias + W_0/W_1 terms.
        t1 = jnp.dot(lap, x_ref[...].astype(mxu_dtype),
                     preferred_element_type=jnp.float32)
        t_ref[1, rows, :] = t1
        o_ref[rows, :] = (bias_ref[...]
                          + order_contrib(x_ref[rows, :], w_ref[0])
                          + order_contrib(t1, w_ref[1]))

    if num_orders >= 3:                                            # static
        @pl.when(kk == 1)
        def _():
            recursion_step(1, 0, x_ref[rows, :], w_ref[2])         # T_0 = x

    if num_orders >= 4:                                            # static
        @pl.when(jnp.logical_and(kk >= 2, kk % 2 == 0))
        def _():
            recursion_step(0, 1, t_ref[1, rows, :], w_ref[kk + 1])

        @pl.when(jnp.logical_and(kk >= 2, kk % 2 == 1))
        def _():
            recursion_step(1, 0, t_ref[0, rows, :], w_ref[kk + 1])


# --------------------------- parameter preparation --------------------------
def prepare_cheb_params(weight, bias):
    """One-time ("module init") weight/bias repacking, hoisted out of forward.

    Reproduces torch's flattening quirk: the basis is flattened as (Fin, K)
    while the weight is flattened as (K, Fin), so the effective per-order
    weight is W_eff[k, fin, :] = weight.reshape(K*Fin, Fout)[fin*K + k, :].
    The weight stays shared across batch (no block-diagonal inflation).
    """
    k, fin, fout = weight.shape
    w = jnp.asarray(weight, jnp.float32)
    w_eff = w.reshape(k * fin, fout).reshape(fin, k, fout).transpose(1, 0, 2)
    if k == 1:
        # pad a zero order so the (K-1)-step recursion grid is non-empty
        # (T_1 is computed and multiplied by zeros -- wasted but correct).
        w_eff = jnp.concatenate(
            [w_eff, jnp.zeros((1, fin, fout), jnp.float32)], axis=0)
    if bias is None:
        b = jnp.zeros((fout,), jnp.float32)
    else:
        b = jnp.asarray(bias, jnp.float32)
    return w_eff, b


# ------------------------------ JAX wrapper ----------------------------------
@functools.partial(jax.jit, static_argnames=("row_tile", "lap_mode", "lap_dtype"))
def spherical_cheb_conv(laplacian, x, w_eff, bias, *, row_tile=None,
                        lap_mode="auto", lap_dtype=jnp.float32):
    """Forward pass.  laplacian (V,V), x (B,V,Fin) -> (B,V,Fout)."""
    b, v, fin = x.shape
    k_eff, fin_w, fout = w_eff.shape
    assert fin_w == fin and k_eff >= 2
    assert laplacian.shape == (v, v)
    assert bias.shape == (fout,)

    bf = b * fin
    bf_pad = _round_up(bf, 128)        # lane-dense T buffers (widen MXU N dim)
    n_out = _round_up(b * fout, 128)   # lane-dense output

    lap_bytes = jnp.finfo(lap_dtype).bits // 8
    cap = _vmem_capacity_bytes()
    size_budget = int(cap * 0.70)

    # Fixed VMEM residents (bytes): x (1 buf), weight, bias, out (2), T ring.
    fixed = 4 * (v * bf_pad
                 + k_eff * _round_up(fin, 8) * _round_up(fout, 128)
                 + 8 * 128
                 + 2 * v * n_out
                 + 2 * v * bf_pad)

    lap_resident = (lap_mode == "resident"
                    or (lap_mode == "auto"
                        and v * v * lap_bytes <= size_budget - fixed))

    if row_tile is not None:
        tv = row_tile
    elif lap_resident:
        tv = v
    else:
        max_rows = max(8, min(512 if cap > 64 * 2 ** 20 else 256,
                              (size_budget - fixed) // max(1, 2 * v * lap_bytes)))
        tv = _pick_row_tile(v, max_rows)
    assert v % tv == 0 and (tv % 8 == 0 or tv == v)
    n_row_tiles = v // tv

    if lap_resident:
        lap_spec = pl.BlockSpec((v, v), lambda kk, r: (0, 0),
                                pipeline_mode=pl.Buffered(1))
        lap_vmem = v * v * lap_bytes
    else:
        # Deepen the L stream on 128 MiB parts when headroom allows (hides the
        # order-boundary refetch of row tile 0); keep 2 buffers on 64 MiB parts.
        n_buf = 3 if (cap > 96 * 2 ** 20
                      and fixed + 3 * tv * v * lap_bytes <= size_budget) else 2
        lap_spec = pl.BlockSpec((tv, v), lambda kk, r: (r, 0),
                                pipeline_mode=pl.Buffered(n_buf))
        lap_vmem = n_buf * tv * v * lap_bytes

    need = fixed + lap_vmem
    vmem_limit = int(min(cap * 0.85, max(32 * 2 ** 20, need * 5 // 4)))

    # Layout plumbing: fold batch into lanes (col = b*Fin + fin), pad lanes.
    x_r = jnp.transpose(x, (1, 0, 2)).reshape(v, bf).astype(jnp.float32)
    x_r = jnp.pad(x_r, ((0, 0), (0, bf_pad - bf)))
    lap_c = jnp.asarray(laplacian).astype(lap_dtype)
    bias_row = jnp.pad(jnp.tile(jnp.asarray(bias, jnp.float32), b),
                       (0, n_out - b * fout)).reshape(1, n_out)
    w_c = jnp.asarray(w_eff, jnp.float32)

    kernel = functools.partial(
        _cheb_conv_kernel, tv=tv, batch=b, fin=fin,
        lap_resident=lap_resident, mxu_dtype=lap_dtype)

    out_vn = pl.pallas_call(
        kernel,
        out_shape=jax.ShapeDtypeStruct((v, n_out), jnp.float32),
        grid_spec=pltpu.PrefetchScalarGridSpec(
            num_scalar_prefetch=0,
            grid=(k_eff - 1, n_row_tiles),
            in_specs=[
                lap_spec,
                pl.BlockSpec((v, bf_pad), lambda kk, r: (0, 0),
                             pipeline_mode=pl.Buffered(1)),
                pl.BlockSpec((k_eff, fin, fout), lambda kk, r: (0, 0, 0),
                             pipeline_mode=pl.Buffered(1)),
                pl.BlockSpec((1, n_out), lambda kk, r: (0, 0),
                             pipeline_mode=pl.Buffered(1)),
            ],
            out_specs=pl.BlockSpec((v, n_out), lambda kk, r: (0, 0)),
            scratch_shapes=[pltpu.VMEM((2, v, bf_pad), jnp.float32)],
        ),
        compiler_params=pltpu.CompilerParams(
            # Order axis carries the recursion dependency through the T ring;
            # row axis read-modify-writes the shared resident output block.
            dimension_semantics=("arbitrary", "arbitrary"),
            vmem_limit_bytes=vmem_limit,
        ),
    )(lap_c, x_r, w_c, bias_row)

    out = out_vn[:, : b * fout].reshape(v, b, fout)
    return jnp.transpose(out, (1, 0, 2))


# ------------------------ pure-JAX reference (torch semantics) ---------------
def cheb_conv_ref(laplacian, inputs, weight, bias):
    B, V, Fin = inputs.shape
    K, _, Fout = weight.shape
    x0 = jnp.transpose(inputs, (1, 2, 0)).reshape(V, Fin * B)
    cheb = [x0]
    if K > 1:
        cheb.append(laplacian @ x0)
        for i in range(2, K):
            cheb.append(2.0 * (laplacian @ cheb[i - 1]) - cheb[i - 2])
    cheb = jnp.stack(cheb, axis=0)                 # (K, V, Fin*B)
    cheb = cheb.reshape(K, V, Fin, B)
    cheb = jnp.transpose(cheb, (3, 1, 2, 0))       # (B, V, Fin, K)
    cheb = cheb.reshape(B * V, Fin * K)
    w = weight.reshape(Fin * K, Fout)              # same as torch .view(Fin*K, Fout)
    out = (cheb @ w).reshape(B, V, Fout)
    if bias is not None:
        out = out + bias
    return out


# ---------------------------------- main --------------------------------------
if __name__ == "__main__":
    B, V, Fin, Fout, K = 2, 256, 8, 16, 3

    key = jax.random.PRNGKey(0)
    k_lap, k_x, k_w = jax.random.split(key, 3)

    # Dense symmetric stand-in for the sparse spherical-graph Laplacian.
    # TODO(synk): the torch module uses torch.sparse.mm; sparse SpMM has no
    # clean dense-BlockSpec Pallas equivalent, so the Laplacian is densified.
    a = jax.random.normal(k_lap, (V, V), jnp.float32)
    lap = 0.5 * (a + a.T) / math.sqrt(V)

    x = jax.random.normal(k_x, (B, V, Fin), jnp.float32)

    # ChebConv params: xavier-normal weight, bias filled with 0.01.
    std = math.sqrt(2.0 / (Fin + Fout))
    weight = std * jax.random.normal(k_w, (K, Fin, Fout), jnp.float32)
    bias = jnp.full((Fout,), 0.01, jnp.float32)

    # One-time "module init" parameter repacking (hoisted out of forward).
    w_eff, bias_p = prepare_cheb_params(weight, bias)
    ref = cheb_conv_ref(lap, x, weight, bias)

    # 1) f32, resident-Laplacian path (exact torch-float32 parity, tight check).
    out = jax.block_until_ready(spherical_cheb_conv(lap, x, w_eff, bias_p))
    assert out.shape == (B, V, Fout)
    err = float(jnp.max(jnp.abs(out - ref)))
    assert jnp.allclose(out, ref, atol=1e-4, rtol=1e-4), err

    # 2) bf16 Laplacian / bf16 MXU operands + streamed row tiles (perf path).
    out_bf = jax.block_until_ready(
        spherical_cheb_conv(lap, x, w_eff, bias_p, row_tile=128,
                            lap_mode="stream", lap_dtype=jnp.bfloat16))
    err_bf = float(jnp.max(jnp.abs(out_bf - ref)))
    assert jnp.allclose(out_bf, ref, atol=6e-2, rtol=6e-2), err_bf

    print("KERNEL_OK")
</pallas_src>

<mosaic_0001>
module attributes {stable_mosaic.version = 11 : i64} {
  func.func @_cheb_conv_kernel(%arg0: i32, %arg1: i32, %arg2: memref<256x256xf32, #tpu.memory_space<vmem>>, %arg3: memref<256x128xf32, #tpu.memory_space<vmem>>, %arg4: memref<3x8x16xf32, #tpu.memory_space<vmem>>, %arg5: memref<1x128xf32, #tpu.memory_space<vmem>>, %arg6: memref<256x128xf32, #tpu.memory_space<vmem>>, %arg7: memref<2x256x128xf32, #tpu.memory_space<vmem>>) attributes {dimension_semantics = [#tpu.dimension_semantics<arbitrary>, #tpu.dimension_semantics<arbitrary>], iteration_bounds = array<i64: 2, 1>, scalar_prefetch = 0 : i64, scratch_operands = 1 : i64, tpu.core_type = #tpu.core_type<tc>, window_params = [{pipeline_mode = #tpu.pipeline_mode<synchronous>, transform_indices = @transform_0, window_bounds = array<i64: 256, 256>}, {pipeline_mode = #tpu.pipeline_mode<synchronous>, transform_indices = @transform_1, window_bounds = array<i64: 256, 128>}, {pipeline_mode = #tpu.pipeline_mode<synchronous>, transform_indices = @transform_2, window_bounds = array<i64: 3, 8, 16>}, {pipeline_mode = #tpu.pipeline_mode<synchronous>, transform_indices = @transform_3, window_bounds = array<i64: 1, 128>}, {pipeline_mode = #tpu.pipeline_mode<synchronous>, transform_indices = @transform_4, window_bounds = array<i64: 256, 128>}]} {
    %c256_i32 = arith.constant 256 : i32
    %0 = arith.muli %arg1, %c256_i32 : i32
    %1 = tpu.assume_multiple %0, 256 : i32
    %2 = arith.index_cast %1 : i32 to index
    %c0 = arith.constant 0 : index
    %3 = vector.load %arg2[%2, %c0] : memref<256x256xf32, #tpu.memory_space<vmem>>, vector<256x256xf32>
    %c0_i32 = arith.constant 0 : i32
    %4 = arith.cmpi eq, %arg0, %c0_i32 : i32
    %5 = arith.extui %4 : i1 to i32
    %c0_i32_0 = arith.constant 0 : i32
    %6 = arith.cmpi ne, %5, %c0_i32_0 : i32
    scf.if %6 {
      %c0_2 = arith.constant 0 : index
      %c0_3 = arith.constant 0 : index
      %10 = vector.load %arg3[%c0_2, %c0_3] : memref<256x128xf32, #tpu.memory_space<vmem>>, vector<256x128xf32>
      %cst = arith.constant dense<0.000000e+00> : vector<256x128xf32>
      %11 = tpu.matmul %3, %10, %cst {dimension_numbers = #tpu.dot_dimension_numbers<[1], [0], [0], [1], [0, 0, 1, 1], [], []>} : vector<256x256xf32>, vector<256x128xf32>, vector<256x128xf32> -> vector<256x128xf32>
      %c1 = arith.constant 1 : index
      %12 = arith.index_cast %1 : i32 to index
      %c0_4 = arith.constant 0 : index
      %13 = vector.load %arg7[%c1, %12, %c0_4] : memref<2x256x128xf32, #tpu.memory_space<vmem>>, vector<1x256x128xf32>
      %14 = vector.shape_cast %13 : vector<1x256x128xf32> to vector<256x128xf32>
      %15 = vector.shape_cast %11 : vector<256x128xf32> to vector<1x256x128xf32>
      tpu.vector_store %arg7[%c1, %12, %c0_4], %15 {strides = array<i32>} : memref<2x256x128xf32, #tpu.memory_space<vmem>>, vector<1x256x128xf32>,
      %c0_5 = arith.constant 0 : index
      %c0_6 = arith.constant 0 : index
      %16 = vector.load %arg5[%c0_5, %c0_6] : memref<1x128xf32, #tpu.memory_space<vmem>>, vector<1x128xf32>
      %17 = arith.index_cast %1 : i32 to index
      %c0_7 = arith.constant 0 : index
      %18 = vector.load %arg3[%17, %c0_7] : memref<256x128xf32, #tpu.memory_space<vmem>>, vector<256x128xf32>
      %c0_8 = arith.constant 0 : index
      %c0_9 = arith.constant 0 : index
      %c0_10 = arith.constant 0 : index
      %19 = vector.load %arg4[%c0_8, %c0_9, %c0_10] : memref<3x8x16xf32, #tpu.memory_space<vmem>>, vector<1x8x16xf32>
      %20 = vector.shape_cast %19 : vector<1x8x16xf32> to vector<8x16xf32>
      %21 = vector.extract_strided_slice %18 {offsets = [0, 0], sizes = [256, 8], strides = [1, 1]} : vector<256x128xf32> to vector<256x8xf32>
      %cst_11 = arith.constant dense<0.000000e+00> : vector<256x16xf32>
      %22 = tpu.matmul %21, %20, %cst_11 {dimension_numbers = #tpu.dot_dimension_numbers<[1], [0], [0], [1], [0, 0, 1, 1], [], []>} : vector<256x8xf32>, vector<8x16xf32>, vector<256x16xf32> -> vector<256x16xf32>
      %23 = vector.extract_strided_slice %18 {offsets = [0, 8], sizes = [256, 8], strides = [1, 1]} : vector<256x128xf32> to vector<256x8xf32>
      %cst_12 = arith.constant dense<0.000000e+00> : vector<256x16xf32>
      %24 = tpu.matmul %23, %20, %cst_12 {dimension_numbers = #tpu.dot_dimension_numbers<[1], [0], [0], [1], [0, 0, 1, 1], [], []>} : vector<256x8xf32>, vector<8x16xf32>, vector<256x16xf32> -> vector<256x16xf32>
      %cst_13 = arith.constant 0.000000e+00 : f32
      %25 = vector.broadcast %cst_13 : f32 to vector<256x96xf32>
      %26 = tpu.concatenate %22, %24, %25 in 1 : vector<256x16xf32>, vector<256x16xf32>, vector<256x96xf32> -> vector<256x128xf32>
      %27 = vector.broadcast %16 : vector<1x128xf32> to vector<256x128xf32>
      %28 = arith.addf %27, %26 : vector<256x128xf32>
      %c1_14 = arith.constant 1 : index
      %c0_15 = arith.constant 0 : index
      %c0_16 = arith.constant 0 : index
      %29 = vector.load %arg4[%c1_14, %c0_15, %c0_16] : memref<3x8x16xf32, #tpu.memory_space<vmem>>, vector<1x8x16xf32>
      %30 = vector.shape_cast %29 : vector<1x8x16xf32> to vector<8x16xf32>
      %31 = vector.extract_strided_slice %11 {offsets = [0, 0], sizes = [256, 8], strides = [1, 1]} : vector<256x128xf32> to vector<256x8xf32>
      %cst_17 = arith.constant dense<0.000000e+00> : vector<256x16xf32>
      %32 = tpu.matmul %31, %30, %cst_17 {dimension_numbers = #tpu.dot_dimension_numbers<[1], [0], [0], [1], [0, 0, 1, 1], [], []>} : vector<256x8xf32>, vector<8x16xf32>, vector<256x16xf32> -> vector<256x16xf32>
      %33 = vector.extract_strided_slice %11 {offsets = [0, 8], sizes = [256, 8], strides = [1, 1]} : vector<256x128xf32> to vector<256x8xf32>
      %cst_18 = arith.constant dense<0.000000e+00> : vector<256x16xf32>
      %34 = tpu.matmul %33, %30, %cst_18 {dimension_numbers = #tpu.dot_dimension_numbers<[1], [0], [0], [1], [0, 0, 1, 1], [], []>} : vector<256x8xf32>, vector<8x16xf32>, vector<256x16xf32> -> vector<256x16xf32>
      %cst_19 = arith.constant 0.000000e+00 : f32
      %35 = vector.broadcast %cst_19 : f32 to vector<256x96xf32>
      %36 = tpu.concatenate %32, %34, %35 in 1 : vector<256x16xf32>, vector<256x16xf32>, vector<256x96xf32> -> vector<256x128xf32>
      %37 = arith.addf %28, %36 : vector<256x128xf32>
      %38 = arith.index_cast %1 : i32 to index
      %c0_20 = arith.constant 0 : index
      %39 = vector.load %arg6[%38, %c0_20] : memref<256x128xf32, #tpu.memory_space<vmem>>, vector<256x128xf32>
      tpu.vector_store %arg6[%38, %c0_20], %37 {strides = array<i32>} : memref<256x128xf32, #tpu.memory_space<vmem>>, vector<256x128xf32>,
    } else {
    }
    %c1_i32 = arith.constant 1 : i32
    %7 = arith.cmpi eq, %arg0, %c1_i32 : i32
    %8 = arith.extui %7 : i1 to i32
    %c0_i32_1 = arith.constant 0 : i32
    %9 = arith.cmpi ne, %8, %c0_i32_1 : i32
    scf.if %9 {
      %10 = arith.index_cast %1 : i32 to index
      %c0_2 = arith.constant 0 : index
      %11 = vector.load %arg3[%10, %c0_2] : memref<256x128xf32, #tpu.memory_space<vmem>>, vector<256x128xf32>
      %c2 = arith.constant 2 : index
      %c0_3 = arith.constant 0 : index
      %c0_4 = arith.constant 0 : index
      %12 = vector.load %arg4[%c2, %c0_3, %c0_4] : memref<3x8x16xf32, #tpu.memory_space<vmem>>, vector<1x8x16xf32>
      %13 = vector.shape_cast %12 : vector<1x8x16xf32> to vector<8x16xf32>
      %c1 = arith.constant 1 : index
      %c0_5 = arith.constant 0 : index
      %c0_6 = arith.constant 0 : index
      %14 = vector.load %arg7[%c1, %c0_5, %c0_6] : memref<2x256x128xf32, #tpu.memory_space<vmem>>, vector<1x256x128xf32>
      %15 = vector.shape_cast %14 : vector<1x256x128xf32> to vector<256x128xf32>
      %cst = arith.constant dense<0.000000e+00> : vector<256x128xf32>
      %16 = tpu.matmul %3, %15, %cst {dimension_numbers = #tpu.dot_dimension_numbers<[1], [0], [0], [1], [0, 0, 1, 1], [], []>} : vector<256x256xf32>, vector<256x128xf32>, vector<256x128xf32> -> vector<256x128xf32>
      %cst_7 = arith.constant 2.000000e+00 : f32
      %17 = vector.broadcast %cst_7 : f32 to vector<256x128xf32>
      %18 = arith.mulf %17, %16 : vector<256x128xf32>
      %19 = arith.subf %18, %11 : vector<256x128xf32>
      %c0_8 = arith.constant 0 : index
      %20 = arith.index_cast %1 : i32 to index
      %c0_9 = arith.constant 0 : index
      %21 = vector.load %arg7[%c0_8, %20, %c0_9] : memref<2x256x128xf32, #tpu.memory_space<vmem>>, vector<1x256x128xf32>
      %22 = vector.shape_cast %21 : vector<1x256x128xf32> to vector<256x128xf32>
      %23 = vector.shape_cast %19 : vector<256x128xf32> to vector<1x256x128xf32>
      tpu.vector_store %arg7[%c0_8, %20, %c0_9], %23 {strides = array<i32>} : memref<2x256x128xf32, #tpu.memory_space<vmem>>, vector<1x256x128xf32>,
      %24 = arith.index_cast %1 : i32 to index
      %c0_10 = arith.constant 0 : index
      %25 = vector.load %arg6[%24, %c0_10] : memref<256x128xf32, #tpu.memory_space<vmem>>, vector<256x128xf32>
      %26 = vector.extract_strided_slice %19 {offsets = [0, 0], sizes = [256, 8], strides = [1, 1]} : vector<256x128xf32> to vector<256x8xf32>
      %cst_11 = arith.constant dense<0.000000e+00> : vector<256x16xf32>
      %27 = tpu.matmul %26, %13, %cst_11 {dimension_numbers = #tpu.dot_dimension_numbers<[1], [0], [0], [1], [0, 0, 1, 1], [], []>} : vector<256x8xf32>, vector<8x16xf32>, vector<256x16xf32> -> vector<256x16xf32>
      %28 = vector.extract_strided_slice %19 {offsets = [0, 8], sizes = [256, 8], strides = [1, 1]} : vector<256x128xf32> to vector<256x8xf32>
      %cst_12 = arith.constant dense<0.000000e+00> : vector<256x16xf32>
      %29 = tpu.matmul %28, %13, %cst_12 {dimension_numbers = #tpu.dot_dimension_numbers<[1], [0], [0], [1], [0, 0, 1, 1], [], []>} : vector<256x8xf32>, vector<8x16xf32>, vector<256x16xf32> -> vector<256x16xf32>
      %cst_13 = arith.constant 0.000000e+00 : f32
      %30 = vector.broadcast %cst_13 : f32 to vector<256x96xf32>
      %31 = tpu.concatenate %27, %29, %30 in 1 : vector<256x16xf32>, vector<256x16xf32>, vector<256x96xf32> -> vector<256x128xf32>
      %32 = arith.addf %25, %31 : vector<256x128xf32>
      %33 = arith.index_cast %1 : i32 to index
      %c0_14 = arith.constant 0 : index
      %34 = vector.load %arg6[%33, %c0_14] : memref<256x128xf32, #tpu.memory_space<vmem>>, vector<256x128xf32>
      tpu.vector_store %arg6[%33, %c0_14], %32 {strides = array<i32>} : memref<256x128xf32, #tpu.memory_space<vmem>>, vector<256x128xf32>,
    } else {
    }
    return
  }
  func.func @transform_0(%arg0: i32, %arg1: i32) -> (i32, i32) {
    %c0_i32 = arith.constant 0 : i32
    %c0_i32_0 = arith.constant 0 : i32
    %c0_i32_1 = arith.constant 0 : i32
    return %c0_i32, %c0_i32_0 : i32, i32
  }
  func.func @transform_1(%arg0: i32, %arg1: i32) -> (i32, i32) {
    %c0_i32 = arith.constant 0 : i32
    %c0_i32_0 = arith.constant 0 : i32
    %c0_i32_1 = arith.constant 0 : i32
    return %c0_i32, %c0_i32_0 : i32, i32
  }
  func.func @transform_2(%arg0: i32, %arg1: i32) -> (i32, i32, i32) {
    %c0_i32 = arith.constant 0 : i32
    %c0_i32_0 = arith.constant 0 : i32
    %c0_i32_1 = arith.constant 0 : i32
    %c0_i32_2 = arith.constant 0 : i32
    return %c0_i32, %c0_i32_0, %c0_i32_1 : i32, i32, i32
  }
  func.func @transform_3(%arg0: i32, %arg1: i32) -> (i32, i32) {
    %c0_i32 = arith.constant 0 : i32
    %c0_i32_0 = arith.constant 0 : i32
    %c0_i32_1 = arith.constant 0 : i32
    return %c0_i32, %c0_i32_0 : i32, i32
  }
  func.func @transform_4(%arg0: i32, %arg1: i32) -> (i32, i32) {
    %c0_i32 = arith.constant 0 : i32
    %c0_i32_0 = arith.constant 0 : i32
    %c0_i32_1 = arith.constant 0 : i32
    return %c0_i32, %c0_i32_0 : i32, i32
  }
}

</mosaic_0001>

<bundles_post_ra>
// kernel: tile.8
= control target key start
LH: loop header
LB: loop body
LE: loop exit
PB: predicated region body
PF: predicated region fallthrough
CT: control target
= control target key end

     0   :  { %s22_s0 = inlined_call_operand.vmem [shape: f32[16], index: 0, kind: input, shape index: {}]   ;;  %s23_s1 = inlined_call_operand.vmem [shape: f32[2,16], index: 1, kind: output, shape index: {}]  }
   0x1   :  { %v4_v0 = vld [vmem:[%s22_s0] ss:$0 sm:$0xff] }
   0x2   :  { %5 = vst [vmem:[%s23_s1] sm:$0x3] %v4_v0 }

// kernel: tile.9
= control target key start
LH: loop header
LB: loop body
LE: loop exit
PB: predicated region body
PF: predicated region fallthrough
CT: control target
= control target key end

     0   :  { %vm7_vm0 = vcmask 130048   ;;  %vm13_vm1 = vcmask 261248   ;;  %s39_s0 = inlined_call_operand.vmem [shape: f32[2,16], index: 0, kind: input, shape index: {}]   ;;  %s40_s1 = inlined_call_operand.vmem [shape: f32[32], index: 1, kind: output, shape index: {}]  }
   0x1   :  { %v4_v0 = vld [vmem:[%s39_s0] sm:$0x3]  ;;  %s22_s0 = smov 16  }
   0x2   :  { %5 = vst [vmem:[#allocation1] sm:$0x3] %v4_v0 }
   0x9   :  { %v10_v1 = vld [vmem:[#allocation1 + $0x1] sm:$0x1]   ;;  %v6_v2 = vld [vmem:[#allocation1] sm:$0x1]  }
   0xa   :  { %11 = vrot.lane.b32.xlu0 %v10_v1, %s22_s0  ;;  %8 = vst.msk [vmem:[#allocation0] sm:$0x1] %vm7_vm0, %v6_v2  }
  0x7c   :  { %v12_v3 = vpop.permute.xlu0 %11  }
  0x7d   :  { %14 = vst.msk [vmem:[#allocation0] sm:$0x1] %vm13_vm1, %v12_v3  }
  0x84   :  { %v18_v4 = vld [vmem:[#allocation0] sm:$0x1] }
  0x85   :  { %20 = vst [vmem:[%s40_s1] sm:$0x1] %v18_v4 }

// kernel: spherical_cheb_conv.1
= control target key start
LH: loop header
LB: loop body
LE: loop exit
PB: predicated region body
PF: predicated region fallthrough
CT: control target
= control target key end

     0   :  { %s4729_s15 = smov 0   ;;  %s4731_s16 = smov 0   ;;  %s6782_s0 = inlined_call_operand.vmem [shape: f32[256,256], index: 0, kind: input, shape index: {}]   ;;  %s6783_s1 = inlined_call_operand.vmem [shape: f32[256,128], index: 1, kind: input, shape index: {}]   ;;  %s6784_s2 = inlined_call_operand.vmem [shape: f32[3,8,16], index: 2, kind: input, shape index: {}]   ;;  %s6785_s3 = inlined_call_operand.vmem [shape: f32[1,128], index: 3, kind: input, shape index: {}]   ;;  %s6786_s4 = inlined_call_operand.vmem [shape: f32[256,128], index: 4, kind: output, shape index: {}]  }
   0x1   :  { %s4733_s17 = smov 0  }
   0x2 LB: > { %s26_s18 = sadd.s32 1, %s4692_s16  ;;  %p3816_p0 = scmp.ge.s32.totalorder %s4696_s17, 1  ;;  %s4696_s17 = sphi %s4733_s17, %s14_s17   ;;  %s4692_s16 = sphi %s4731_s16, %s7008_s16   ;;  %s4688_s15 = sphi %s4729_s15, %s7007_s15  }
   0x3   : > { %p28_p1 = scmp.ge.s32.totalorder %s26_s18, 2  ;;  %p159_p2 = scmp.lt.s32.totalorder %s4696_s17, 3 }
   0x5   : > { %s7010_s18 = smov (%p28_p1, %s26_s18), 0  ;;  %p160_p3 = pnand %p3816_p0, %p159_p2 }
   0x7   : > { %163 = sbr.rel (%p160_p3) target bundleno = 1752 (0x6d8), region = 36 }
   0xe   : > { %v4752_v0 = vld [vmem:[%s6782_s0] sm:$0xff]  ;;  %v4757_v1 = vld [vmem:[%s6782_s0 + $0x8] sm:$0xff]  ;;  %v4762_v2 = vld [vmem:[%s6782_s0 + $0x10] sm:$0xff]  ;;  %p3817_p4 = scmp.ne.s32.totalorder %s4688_s15, 0 }
   0xf   : > { %6837 = vst [vmem:[#allocation3_spill] sm:$0xff] %v4752_v0  ;;  %6838 = vst [vmem:[#allocation4_spill] sm:$0xff] %v4757_v1  ;;  %v4767_v3 = vld [vmem:[%s6782_s0 + $0x18] sm:$0xff]  ;;  %v4772_v4 = vld [vmem:[%s6782_s0 + $0x20] sm:$0xff] }
  0x10   : > { %6839 = vst [vmem:[#allocation5_spill] sm:$0xff] %v4762_v2  ;;  %6840 = vst [vmem:[#allocation6_spill] sm:$0xff] %v4767_v3  ;;  %v4777_v5 = vld [vmem:[%s6782_s0 + $0x28] sm:$0xff]  ;;  %v4782_v6 = vld [vmem:[%s6782_s0 + $0x30] sm:$0xff] }
  0x11   : > { %6841 = vst [vmem:[#allocation7_spill] sm:$0xff] %v4772_v4  ;;  %6842 = vst [vmem:[#allocation8_spill] sm:$0xff] %v4777_v5  ;;  %v4787_v7 = vld [vmem:[%s6782_s0 + $0x38] sm:$0xff]  ;;  %v4792_v8 = vld [vmem:[%s6782_s0 + $0x40] sm:$0xff] }
  0x12   : > { %6843 = vst [vmem:[#allocation9_spill] sm:$0xff] %v4782_v6  ;;  %6844 = vst [vmem:[#allocation10_spill] sm:$0xff] %v4787_v7  ;;  %v4797_v9 = vld [vmem:[%s6782_s0 + $0x48] sm:$0xff]  ;;  %v4802_v10 = vld [vmem:[%s6782_s0 + $0x50] sm:$0xff] }
  0x13   : > { %6845 = vst [vmem:[#allocation11_spill] sm:$0xff] %v4792_v8  ;;  %6846 = vst [vmem:[#allocation12_spill] sm:$0xff] %v4797_v9  ;;  %v4807_v11 = vld [vmem:[%s6782_s0 + $0x58] sm:$0xff]  ;;  %v4812_v12 = vld [vmem:[%s6782_s0 + $0x60] sm:$0xff] }
  0x14   : > { %6847 = vst [vmem:[#allocation13_spill] sm:$0xff] %v4802_v10  ;;  %6848 = vst [vmem:[#allocation14_spill] sm:$0xff] %v4807_v11  ;;  %v4817_v13 = vld [vmem:[%s6782_s0 + $0x68] sm:$0xff]  ;;  %v4822_v14 = vld [vmem:[%s6782_s0 + $0x70] sm:$0xff] }
  0x15   : > { %6849 = vst [vmem:[#allocation15_spill] sm:$0xff] %v4812_v12  ;;  %6850 = vst [vmem:[#allocation16_spill] sm:$0xff] %v4817_v13  ;;  %v4827_v15 = vld [vmem:[%s6782_s0 + $0x78] sm:$0xff]  ;;  %v4832_v16 = vld [vmem:[%s6782_s0 + $0x80] sm:$0xff] }
  0x16   : > { %6851 = vst [vmem:[#allocation17_spill] sm:$0xff] %v4822_v14  ;;  %6852 = vst [vmem:[#allocation18_spill] sm:$0xff] %v4827_v15  ;;  %v4837_v17 = vld [vmem:[%s6782_s0 + $0x88] sm:$0xff]  ;;  %v4842_v18 = vld [vmem:[%s6782_s0 + $0x90] sm:$0xff] }
  0x17   : > { %6853 = vst [vmem:[#allocation19_spill] sm:$0xff] %v4832_v16  ;;  %6854 = vst [vmem:[#allocation20_spill] sm:$0xff] %v4837_v17  ;;  %v4847_v19 = vld [vmem:[%s6782_s0 + $0x98] sm:$0xff]  ;;  %v4852_v20 = vld [vmem:[%s6782_s0 + $0xa0] sm:$0xff] }
  0x18   : > { %6855 = vst [vmem:[#allocation21_spill] sm:$0xff] %v4842_v18  ;;  %6856 = vst [vmem:[#allocation22_spill] sm:$0xff] %v4847_v19  ;;  %v4857_v21 = vld [vmem:[%s6782_s0 + $0xa8] sm:$0xff]  ;;  %v4862_v22 = vld [vmem:[%s6782_s0 + $0xb0] sm:$0xff] }
  0x19   : > { %6857 = vst [vmem:[#allocation23_spill] sm:$0xff] %v4852_v20  ;;  %6858 = vst [vmem:[#allocation24_spill] sm:$0xff] %v4857_v21  ;;  %v4867_v23 = vld [vmem:[%s6782_s0 + $0xb8] sm:$0xff]  ;;  %v4872_v24 = vld [vmem:[%s6782_s0 + $0xc0] sm:$0xff] }
  0x1a   : > { %6859 = vst [vmem:[#allocation25_spill] sm:$0xff] %v4862_v22  ;;  %6860 = vst [vmem:[#allocation26_spill] sm:$0xff] %v4867_v23  ;;  %v4877_v25 = vld [vmem:[%s6782_s0 + $0xc8] sm:$0xff]  ;;  %v4882_v26 = vld [vmem:[%s6782_s0 + $0xd0] sm:$0xff] }
  0x1b   : > { %6861 = vst [vmem:[#allocation27_spill] sm:$0xff] %v4872_v24  ;;  %6862 = vst [vmem:[#allocation28_spill] sm:$0xff] %v4877_v25  ;;  %v4887_v27 = vld [vmem:[%s6782_s0 + $0xd8] sm:$0xff]  ;;  %v4892_v28 = vld [vmem:[%s6782_s0 + $0xe0] sm:$0xff] }
  0x1c   : > { %6863 = vst [vmem:[#allocation29_spill] sm:$0xff] %v4882_v26  ;;  %6864 = vst [vmem:[#allocation30_spill] sm:$0xff] %v4887_v27  ;;  %v4897_v29 = vld [vmem:[%s6782_s0 + $0xe8] sm:$0xff]  ;;  %v4902_v30 = vld [vmem:[%s6782_s0 + $0xf0] sm:$0xff] }
  0x1d   : > { %6865 = vst [vmem:[#allocation31_spill] sm:$0xff] %v4892_v28  ;;  %6866 = vst [vmem:[#allocation32_spill] sm:$0xff] %v4897_v29  ;;  %v4907_v31 = vld [vmem:[%s6782_s0 + $0xf8] sm:$0xff]  ;;  %v4912_v32 = vld [vmem:[%s6782_s0 + $0x100] sm:$0xff] }
  0x1e   : > { %6867 = vst [vmem:[#allocation33_spill] sm:$0xff] %v4902_v30  ;;  %6868 = vst [vmem:[#allocation34_spill] sm:$0xff] %v4907_v31  ;;  %v4917_v33 = vld [vmem:[%s6782_s0 + $0x108] sm:$0xff]  ;;  %v4922_v34 = vld [vmem:[%s6782_s0 + $0x110] sm:$0xff] }
  0x1f   : > { %6869 = vst [vmem:[#allocation35_spill] sm:$0xff] %v4912_v32  ;;  %6870 = vst [vmem:[#allocation36_spill] sm:$0xff] %v4917_v33  ;;  %v4927_v35 = vld [vmem:[%s6782_s0 + $0x118] sm:$0xff]  ;;  %v4932_v36 = vld [vmem:[%s6782_s0 + $0x120] sm:$0xff] }
  0x20   : > { %6871 = vst [vmem:[#allocation37_spill] sm:$0xff] %v4922_v34  ;;  %6872 = vst [vmem:[#allocation38_spill] sm:$0xff] %v4927_v35  ;;  %v4937_v37 = vld [vmem:[%s6782_s0 + $0x128] sm:$0xff]  ;;  %v4942_v38 = vld [vmem:[%s6782_s0 + $0x130] sm:$0xff] }
  0x21   : > { %6873 = vst [vmem:[#allocation39_spill] sm:$0xff] %v4932_v36  ;;  %6874 = vst [vmem:[#allocation40_spill] sm:$0xff] %v4937_v37  ;;  %v4947_v39 = vld [vmem:[%s6782_s0 + $0x138] sm:$0xff]  ;;  %v4952_v40 = vld [vmem:[%s6782_s0 + $0x140] sm:$0xff] }
  0x22   : > { %6875 = vst [vmem:[#allocation41_spill] sm:$0xff] %v4942_v38  ;;  %6876 = vst [vmem:[#allocation42_spill] sm:$0xff] %v4947_v39  ;;  %v4957_v41 = vld [vmem:[%s6782_s0 + $0x148] sm:$0xff]  ;;  %v4962_v42 = vld [vmem:[%s6782_s0 + $0x150] sm:$0xff] }
  0x23   : > { %6877 = vst [vmem:[#allocation43_spill] sm:$0xff] %v4952_v40  ;;  %6878 = vst [vmem:[#allocation44_spill] sm:$0xff] %v4957_v41  ;;  %v4967_v43 = vld [vmem:[%s6782_s0 + $0x158] sm:$0xff]  ;;  %v4972_v44 = vld [vmem:[%s6782_s0 + $0x160] sm:$0xff] }
  0x24   : > { %6879 = vst [vmem:[#allocation45_spill] sm:$0xff] %v4962_v42  ;;  %6880 = vst [vmem:[#allocation46_spill] sm:$0xff] %v4967_v43  ;;  %v4977_v45 = vld [vmem:[%s6782_s0 + $0x168] sm:$0xff]  ;;  %v4982_v46 = vld [vmem:[%s6782_s0 + $0x170] sm:$0xff] }
  0x25   : > { %6881 = vst [vmem:[#allocation47_spill] sm:$0xff] %v4972_v44  ;;  %6882 = vst [vmem:[#allocation48_spill] sm:$0xff] %v4977_v45  ;;  %v4987_v47 = vld [vmem:[%s6782_s0 + $0x178] sm:$0xff]  ;;  %v4992_v48 = vld [vmem:[%s6782_s0 + $0x180] sm:$0xff] }
  0x26   : > { %6883 = vst [vmem:[#allocation49_spill] sm:$0xff] %v4982_v46  ;;  %6884 = vst [vmem:[#allocation50_spill] sm:$0xff] %v4987_v47  ;;  %v4997_v49 = vld [vmem:[%s6782_s0 + $0x188] sm:$0xff]  ;;  %v5002_v50 = vld [vmem:[%s6782_s0 + $0x190] sm:$0xff] }
  0x27   : > { %6885 = vst [vmem:[#allocation51_spill] sm:$0xff] %v4992_v48  ;;  %6886 = vst [vmem:[#allocation52_spill] sm:$0xff] %v4997_v49  ;;  %v5007_v51 = vld [vmem:[%s6782_s0 + $0x198] sm:$0xff]  ;;  %v5012_v52 = vld [vmem:[%s6782_s0 + $0x1a0] sm:$0xff] }
  0x28   : > { %6887 = vst [vmem:[#allocation53_spill] sm:$0xff] %v5002_v50  ;;  %6888 = vst [vmem:[#allocation54_spill] sm:$0xff] %v5007_v51  ;;  %v5017_v53 = vld [vmem:[%s6782_s0 + $0x1a8] sm:$0xff]  ;;  %v5022_v54 = vld [vmem:[%s6782_s0 + $0x1b0] sm:$0xff]  ;;  %248 = sbr.rel (%p3817_p4) target bundleno = 897 (0x381), region = 40 }
  0x29   : > { %6889 = vst [vmem:[#allocation55_spill] sm:$0xff] %v5012_v52  ;;  %6890 = vst [vmem:[#allocation56_spill] sm:$0xff] %v5017_v53  ;;  %v5027_v55 = vld [vmem:[%s6782_s0 + $0x1b8] sm:$0xff]  ;;  %v5032_v56 = vld [vmem:[%s6782_s0 + $0x1c0] sm:$0xff] }
  0x2a   : > { %6891 = vst [vmem:[#allocation57_spill] sm:$0xff] %v5022_v54  ;;  %6892 = vst [vmem:[#allocation58_spill] sm:$0xff] %v5027_v55  ;;  %v5037_v57 = vld [vmem:[%s6782_s0 + $0x1c8] sm:$0xff]  ;;  %v5042_v58 = vld [vmem:[%s6782_s0 + $0x1d0] sm:$0xff] }
  0x2b   : > { %6893 = vst [vmem:[#allocation59_spill] sm:$0xff] %v5032_v56  ;;  %6894 = vst [vmem:[#allocation60_spill] sm:$0xff] %v5037_v57  ;;  %v5047_v59 = vld [vmem:[%s6782_s0 + $0x1d8] sm:$0xff]  ;;  %v5052_v60 = vld [vmem:[%s6782_s0 + $0x1e0] sm:$0xff] }
  0x2c   : > { %6895 = vst [vmem:[#allocation61_spill] sm:$0xff] %v5042_v58  ;;  %6896 = vst [vmem:[#allocation62_spill] sm:$0xff] %v5047_v59  ;;  %v5057_v61 = vld [vmem:[%s6782_s0 + $0x1e8] sm:$0xff]  ;;  %v5062_v62 = vld [vmem:[%s6782_s0 + $0x1f0] sm:$0xff] }
  0x2d   : > { %6897 = vst [vmem:[#allocation63_spill] sm:$0xff] %v5052_v60  ;;  %6898 = vst [vmem:[#allocation64_spill] sm:$0xff] %v5057_v61  ;;  %v5067_v63 = vld [vmem:[%s6782_s0 + $0x1f8] sm:$0xff] }
  0x2e   : > { %6899 = vst [vmem:[#allocation65_spill] sm:$0xff] %v5062_v62  ;;  %6900 = vst [vmem:[#allocation66_spill] sm:$0xff] %v5067_v63 }
  0x2f   : > { %v249_v60 = vld [vmem:[%s6783_s1] sm:$0xff]  ;;  %v250_v61 = vld [vmem:[%s6783_s1 + $0x8] sm:$0xff]  ;;  %v251_v62 = vld [vmem:[%s6783_s1 + $0x10] sm:$0xff]  ;;  %345 = vmatprep.mubr.f32.mxu0 %v4757_v1  ;;  %vm575_vm0 = vcmask 64512   ;;  %v4698_v58 = vmov 0.0|0.0   ;;  %s4699_s23 = smov 120  }
  0x30   : > { %4546 = vmatprep.subr.bf16.mxu0 %v4698_v58  ;;  %v4547_v63 = vpack.c.bf16 %v250_v61, %v249_v60  ;;  %v252_v59 = vld [vmem:[%s6783_s1 + $0x18] sm:$0xff]  ;;  %897 = vrot.lane.b32.xlu0 %v249_v60, %s4699_s23  ;;  %v253_v1 = vld [vmem:[%s6783_s1 + $0x20] sm:$0xff]  ;;  %v254_v57 = vld [vmem:[%s6783_s1 + $0x28] sm:$0xff]  ;;  %s4700_s20 = smov 16   ;;  %vm1378_vm1 = vcmask 130048   ;;  %vm1411_vm2 = vcmask 261120  }
  0x31   : > { %901 = vrot.lane.b32.xlu1 %v251_v62, %s4699_s23  ;;  %4248 = vmatprep.mubr.msk.f32.mxu1 %vm575_vm0, %v249_v60  ;;  %v4550_v56 = vpack.c.bf16 %v252_v59, %v251_v62  ;;  %v4553_v54 = vpack.c.bf16 %v254_v57, %v253_v1  ;;  %v255_v60 = vld [vmem:[%s6783_s1 + $0x30] sm:$0xff]  ;;  %v574_v55 = vld [vmem:[%s6784_s2] sm:$0xff]  ;;  %v258_v53 = vld [vmem:[%s6783_s1 + $0x48] sm:$0xff] }
  0x32   : > { %4548 = vmatpush1.bf16.msra.mxu0 %v4547_v63  ;;  %v256_v63 = vld [vmem:[%s6783_s1 + $0x38] sm:$0xff]  ;;  %4246 = vmatprep.subr.mxu1 %v574_v55  ;;  %v257_v52 = vld [vmem:[%s6783_s1 + $0x40] sm:$0xff]  ;;  %v259_v50 = vld [vmem:[%s6783_s1 + $0x50] sm:$0xff] }
  0x33   : > { %4549 = vmatprep.subr.bf16.mxu0 %v4698_v58  ;;  %4247 = vmatpush3.msra.mxu1 %v574_v55  ;;  %v260_v51 = vld [vmem:[%s6783_s1 + $0x58] sm:$0xff] }
  0x34   : > { %899 = vrot.lane.b32.xlu0 %v250_v61, %s4699_s23  ;;  %4249 = vmatmul.mubr.msk.f32.vlgmr.msra.gmra.mrb[0].mxu1 %vm575_vm0, %v250_v61  ;;  %v4562_v61 = vpack.c.bf16 %v260_v51, %v259_v50 }
  0x35   : > { %903 = vrot.lane.b32.xlu1 %v252_v59, %s4699_s23  ;;  %4251 = vmatprep.mubr.msk.f32.mxu1 %vm575_vm0, %v251_v62  ;;  %v261_v62 = vld [vmem:[%s6783_s1 + $0x60] sm:$0xff] }
  0x36   : > { %4551 = vmatpush1.bf16.msra.mxu0 %v4550_v56  ;;  %v4556_v56 = vpack.c.bf16 %v256_v63, %v255_v60  ;;  %4296 = vmatprep.subr.mxu1 %v574_v55 }
  0x37   : > { %4552 = vmatprep.subr.bf16.mxu0 %v4698_v58  ;;  %4297 = vmatpush3.msra.mxu1 %v574_v55  ;;  %v262_v55 = vld [vmem:[%s6783_s1 + $0x68] sm:$0xff] }
  0x38   : > { %905 = vrot.lane.b32.xlu0 %v253_v1, %s4699_s23  ;;  %4252 = vmatmul.mubr.msk.f32.gmra.mrb[2].mxu1 %vm575_vm0, %v252_v59  ;;  %v263_v59 = vld [vmem:[%s6783_s1 + $0x70] sm:$0xff] }
  0x39   : > { %907 = vrot.lane.b32.xlu1 %v254_v57, %s4699_s23  ;;  %4254 = vmatprep.mubr.msk.f32.mxu1 %vm575_vm0, %v253_v1  ;;  %v4565_v1 = vpack.c.bf16 %v262_v55, %v261_v62 }
  0x3a   : > { %4554 = vmatpush1.bf16.msra.mxu0 %v4553_v54  ;;  %v4559_v54 = vpack.c.bf16 %v258_v53, %v257_v52 }
  0x3b   : > { %4555 = vmatprep.subr.bf16.mxu0 %v4698_v58 }
  0x3c   : > { %909 = vrot.lane.b32.xlu0 %v255_v60, %s4699_s23  ;;  %4255 = vmatmul.mubr.msk.f32.gmra.mrb[4].mxu1 %vm575_vm0, %v254_v57 }
  0x3d   : > { %911 = vrot.lane.b32.xlu1 %v256_v63, %s4699_s23  ;;  %4257 = vmatprep.mubr.msk.f32.mxu1 %vm575_vm0, %v255_v60  ;;  %v265_v60 = vld [vmem:[%s6783_s1 + $0x80] sm:$0xff] }
  0x3e   : > { %4557 = vmatpush1.bf16.msra.mxu0 %v4556_v56  ;;  %v264_v56 = vld [vmem:[%s6783_s1 + $0x78] sm:$0xff] }
  0x3f   : > { %4558 = vmatprep.subr.bf16.mxu0 %v4698_v58  ;;  %v4568_v57 = vpack.c.bf16 %v264_v56, %v263_v59 }
  0x40   : > { %913 = vrot.lane.b32.xlu0 %v257_v52, %s4699_s23  ;;  %4258 = vmatmul.mubr.msk.f32.gmra.mrb[6].mxu1 %vm575_vm0, %v256_v63  ;;  %v267_v63 = vld [vmem:[%s6783_s1 + $0x90] sm:$0xff] }
  0x41   : > { %915 = vrot.lane.b32.xlu1 %v258_v53, %s4699_s23  ;;  %4260 = vmatprep.mubr.msk.f32.mxu1 %vm575_vm0, %v257_v52 }
  0x42   : > { %4560 = vmatpush1.bf16.msra.mxu0 %v4559_v54  ;;  %v266_v54 = vld [vmem:[%s6783_s1 + $0x88] sm:$0xff] }
  0x43   : > { %4561 = vmatprep.subr.bf16.mxu0 %v4698_v58  ;;  %v4571_v52 = vpack.c.bf16 %v266_v54, %v265_v60 }
  0x44   : > { %917 = vrot.lane.b32.xlu0 %v259_v50, %s4699_s23  ;;  %4261 = vmatmul.mubr.msk.f32.gmra.mrb[8].mxu1 %vm575_vm0, %v258_v53  ;;  %v269_v53 = vld [vmem:[%s6783_s1 + $0xa0] sm:$0xff] }
  0x45   : > { %919 = vrot.lane.b32.xlu1 %v260_v51, %s4699_s23  ;;  %4263 = vmatprep.mubr.msk.f32.mxu1 %vm575_vm0, %v259_v50 }
  0x46   : > { %4563 = vmatpush1.bf16.msra.mxu0 %v4562_v61  ;;  %v268_v61 = vld [vmem:[%s6783_s1 + $0x98] sm:$0xff] }
  0x47   : > { %4564 = vmatprep.subr.bf16.mxu0 %v4698_v58  ;;  %v4574_v50 = vpack.c.bf16 %v268_v61, %v267_v63 }
  0x48   : > { %921 = vrot.lane.b32.xlu0 %v261_v62, %s4699_s23  ;;  %4264 = vmatmul.mubr.msk.f32.gmra.mrb[10].mxu1 %vm575_vm0, %v260_v51 }
  0x49   : > { %923 = vrot.lane.b32.xlu1 %v262_v55, %s4699_s23  ;;  %4266 = vmatprep.mubr.msk.f32.mxu1 %vm575_vm0, %v261_v62  ;;  %v271_v62 = vld [vmem:[%s6783_s1 + $0xb0] sm:$0xff] }
  0x4a   : > { %4566 = vmatpush1.bf16.msra.mxu0 %v4565_v1  ;;  %v270_v1 = vld [vmem:[%s6783_s1 + $0xa8] sm:$0xff] }
  0x4b   : > { %4567 = vmatprep.subr.bf16.mxu0 %v4698_v58  ;;  %v4577_v51 = vpack.c.bf16 %v270_v1, %v269_v53 }
  0x4c   : > { %925 = vrot.lane.b32.xlu0 %v263_v59, %s4699_s23  ;;  %4267 = vmatmul.mubr.msk.f32.gmra.mrb[12].mxu1 %vm575_vm0, %v262_v55 }
  0x4d   : > { %927 = vrot.lane.b32.xlu1 %v264_v56, %s4699_s23  ;;  %4269 = vmatprep.mubr.msk.f32.mxu1 %vm575_vm0, %v263_v59  ;;  %v273_v59 = vld [vmem:[%s6783_s1 + $0xc0] sm:$0xff] }
  0x4e   : > { %4569 = vmatpush1.bf16.msra.mxu0 %v4568_v57  ;;  %v272_v57 = vld [vmem:[%s6783_s1 + $0xb8] sm:$0xff] }
  0x4f   : > { %4570 = vmatprep.subr.bf16.mxu0 %v4698_v58  ;;  %v4580_v55 = vpack.c.bf16 %v272_v57, %v271_v62 }
  0x50   : > { %929 = vrot.lane.b32.xlu0 %v265_v60, %s4699_s23  ;;  %4270 = vmatmul.mubr.msk.f32.gmra.mrb[14].mxu1 %vm575_vm0, %v264_v56 }
  0x51   : > { %931 = vrot.lane.b32.xlu1 %v266_v54, %s4699_s23  ;;  %4272 = vmatprep.mubr.msk.f32.mxu1 %vm575_vm0, %v265_v60  ;;  %v275_v60 = vld [vmem:[%s6783_s1 + $0xd0] sm:$0xff] }
  0x52   : > { %4572 = vmatpush1.bf16.msra.mxu0 %v4571_v52  ;;  %v274_v52 = vld [vmem:[%s6783_s1 + $0xc8] sm:$0xff] }
  0x53   : > { %4573 = vmatprep.subr.bf16.mxu0 %v4698_v58  ;;  %v4583_v56 = vpack.c.bf16 %v274_v52, %v273_v59 }
  0x54   : > { %933 = vrot.lane.b32.xlu0 %v267_v63, %s4699_s23  ;;  %4273 = vmatmul.mubr.msk.f32.gmra.mrb[16].mxu1 %vm575_vm0, %v266_v54 }
  0x55   : > { %935 = vrot.lane.b32.xlu1 %v268_v61, %s4699_s23  ;;  %4275 = vmatprep.mubr.msk.f32.mxu1 %vm575_vm0, %v267_v63  ;;  %v277_v63 = vld [vmem:[%s6783_s1 + $0xe0] sm:$0xff] }
  0x56   : > { %4575 = vmatpush1.bf16.msra.mxu0 %v4574_v50  ;;  %v276_v50 = vld [vmem:[%s6783_s1 + $0xd8] sm:$0xff] }
  0x57   : > { %4576 = vmatprep.subr.bf16.mxu0 %v4698_v58  ;;  %v4586_v54 = vpack.c.bf16 %v276_v50, %v275_v60 }
  0x58   : > { %937 = vrot.lane.b32.xlu0 %v269_v53, %s4699_s23  ;;  %4276 = vmatmul.mubr.msk.f32.gmra.mrb[18].mxu1 %vm575_vm0, %v268_v61 }
  0x59   : > { %939 = vrot.lane.b32.xlu1 %v270_v1, %s4699_s23  ;;  %4278 = vmatprep.mubr.msk.f32.mxu1 %vm575_vm0, %v269_v53  ;;  %v279_v53 = vld [vmem:[%s6783_s1 + $0xf0] sm:$0xff] }
  0x5a   : > { %4578 = vmatpush1.bf16.msra.mxu0 %v4577_v51  ;;  %v278_v51 = vld [vmem:[%s6783_s1 + $0xe8] sm:$0xff] }
  0x5b   : > { %4579 = vmatprep.subr.bf16.mxu0 %v4698_v58  ;;  %v4589_v61 = vpack.c.bf16 %v278_v51, %v277_v63 }
  0x5c   : > { %941 = vrot.lane.b32.xlu0 %v271_v62, %s4699_s23  ;;  %4279 = vmatmul.mubr.msk.f32.gmra.mrb[20].mxu1 %vm575_vm0, %v270_v1 }
  0x5d   : > { %943 = vrot.lane.b32.xlu1 %v272_v57, %s4699_s23  ;;  %4281 = vmatprep.mubr.msk.f32.mxu1 %vm575_vm0, %v271_v62 }
  0x5e   : > { %4581 = vmatpush1.bf16.msra.mxu0 %v4580_v55  ;;  %v280_v55 = vld [vmem:[%s6783_s1 + $0xf8] sm:$0xff] }
  0x5f   : > { %4582 = vmatprep.subr.bf16.mxu0 %v4698_v58  ;;  %v4592_v1 = vpack.c.bf16 %v280_v55, %v279_v53 }
  0x60   : > { %945 = vrot.lane.b32.xlu0 %v273_v59, %s4699_s23  ;;  %4282 = vmatmul.mubr.msk.f32.gmra.mrb[22].mxu1 %vm575_vm0, %v272_v57 }
  0x61   : > { %947 = vrot.lane.b32.xlu1 %v274_v52, %s4699_s23  ;;  %4284 = vmatprep.mubr.msk.f32.mxu1 %vm575_vm0, %v273_v59 }
  0x62   : > { %4584 = vmatpush1.bf16.msra.mxu0 %v4583_v56 }
  0x63   : > { %4585 = vmatprep.subr.bf16.mxu0 %v4698_v58 }
  0x64   : > { %949 = vrot.lane.b32.xlu0 %v275_v60, %s4699_s23  ;;  %4285 = vmatmul.mubr.msk.f32.gmra.mrb[24].mxu1 %vm575_vm0, %v274_v52 }
  0x65   : > { %951 = vrot.lane.b32.xlu1 %v276_v50, %s4699_s23  ;;  %4287 = vmatprep.mubr.msk.f32.mxu1 %vm575_vm0, %v275_v60 }
  0x66   : > { %4587 = vmatpush1.bf16.msra.mxu0 %v4586_v54 }
  0x67   : > { %4588 = vmatprep.subr.bf16.mxu0 %v4698_v58 }
  0x68   : > { %953 = vrot.lane.b32.xlu0 %v277_v63, %s4699_s23  ;;  %4288 = vmatmul.mubr.msk.f32.gmra.mrb[26].mxu1 %vm575_vm0, %v276_v50 }
  0x69   : > { %955 = vrot.lane.b32.xlu1 %v278_v51, %s4699_s23  ;;  %4290 = vmatprep.mubr.msk.f32.mxu1 %vm575_vm0, %v277_v63 }
  0x6a   : > { %4590 = vmatpush1.bf16.msra.mxu0 %v4589_v61 }
  0x6b   : > { %4591 = vmatprep.subr.bf16.mxu0 %v4698_v58 }
  0x6c   : > { %957 = vrot.lane.b32.xlu0 %v279_v53, %s4699_s23  ;;  %4291 = vmatmul.mubr.msk.f32.gmra.mrb[28].mxu1 %vm575_vm0, %v278_v51 }
  0x6d   : > { %959 = vrot.lane.b32.xlu1 %v280_v55, %s4699_s23  ;;  %4293 = vmatprep.mubr.msk.f32.mxu1 %vm575_vm0, %v279_v53 }
  0x6e   : > { %4593 = vmatpush1.bf16.msra.mxu0 %v4592_v1 }
  0x70   : > { %4294 = vmatmul.mubr.msk.f32.gmra.mrb[30].mxu1 %vm575_vm0, %v280_v55 }
  0x71   : > { %346 = vmatmul.mubr.f32.vlgmr.msra.gmra.mrb[0].mxu0 %v4752_v0 }
  0x72   : > { %350 = vmatprep.mubr.f32.mxu0 %v4767_v3 }
  0x75   : > { %351 = vmatmul.mubr.f32.gmra.mrb[2].mxu0 %v4762_v2 }
  0x76   : > { %355 = vmatprep.mubr.f32.mxu0 %v4777_v5 }
  0x79   : > { %356 = vmatmul.mubr.f32.gmra.mrb[4].mxu0 %v4772_v4 }
  0x7a   : > { %360 = vmatprep.mubr.f32.mxu0 %v4787_v7 }
  0x7d   : > { %361 = vmatmul.mubr.f32.gmra.mrb[6].mxu0 %v4782_v6 }
  0x7e   : > { %365 = vmatprep.mubr.f32.mxu0 %v4797_v9 }
  0x81   : > { %366 = vmatmul.mubr.f32.gmra.mrb[8].mxu0 %v4792_v8 }
  0x82   : > { %370 = vmatprep.mubr.f32.mxu0 %v4807_v11 }
  0x85   : > { %371 = vmatmul.mubr.f32.gmra.mrb[10].mxu0 %v4802_v10 }
  0x86   : > { %375 = vmatprep.mubr.f32.mxu0 %v4817_v13 }
  0x89   : > { %376 = vmatmul.mubr.f32.gmra.mrb[12].mxu0 %v4812_v12 }
  0x8a   : > { %380 = vmatprep.mubr.f32.mxu0 %v4827_v15 }
  0x8d   : > { %381 = vmatmul.mubr.f32.gmra.mrb[14].mxu0 %v4822_v14 }
  0x8e   : > { %385 = vmatprep.mubr.f32.mxu0 %v4837_v17 }
  0x91   : > { %386 = vmatmul.mubr.f32.gmra.mrb[16].mxu0 %v4832_v16 }
  0x92   : > { %390 = vmatprep.mubr.f32.mxu0 %v4847_v19 }
  0x95   : > { %391 = vmatmul.mubr.f32.gmra.mrb[18].mxu0 %v4842_v18 }
  0x96   : > { %395 = vmatprep.mubr.f32.mxu0 %v4857_v21 }
  0x99   : > { %396 = vmatmul.mubr.f32.gmra.mrb[20].mxu0 %v4852_v20 }
  0x9a   : > { %400 = vmatprep.mubr.f32.mxu0 %v4867_v23 }
  0x9d   : > { %401 = vmatmul.mubr.f32.gmra.mrb[22].mxu0 %v4862_v22 }
  0x9e   : > { %405 = vmatprep.mubr.f32.mxu0 %v4877_v25 }
  0xa1   : > { %406 = vmatmul.mubr.f32.gmra.mrb[24].mxu0 %v4872_v24 }
  0xa2   : > { %410 = vmatprep.mubr.f32.mxu0 %v4887_v27  ;;  %v898_v58 = vpop.permute.xlu0 %897 }
  0xa3   : > { %v902_v62 = vpop.permute.xlu1 %901  ;;  %4298 = vmatprep.mubr.msk.f32.mxu1 %vm575_vm0, %v898_v58 }
  0xa5   : > { %411 = vmatmul.mubr.f32.gmra.mrb[26].mxu0 %v4882_v26 }
  0xa6   : > { %415 = vmatprep.mubr.f32.mxu0 %v4897_v29  ;;  %v900_v57 = vpop.permute.xlu0 %899 }
  0xa7   : > { %4299 = vmatmul.mubr.msk.f32.vlgmr.msra.gmra.mrb[32].mxu1 %vm575_vm0, %v900_v57  ;;  %v904_v59 = vpop.permute.xlu1 %903 }
  0xa8   : > { %4301 = vmatprep.mubr.msk.f32.mxu1 %vm575_vm0, %v902_v62 }
  0xa9   : > { %416 = vmatmul.mubr.f32.gmra.mrb[28].mxu0 %v4892_v28 }
  0xaa   : > { %420 = vmatprep.mubr.f32.mxu0 %v4907_v31  ;;  %v906_v52 = vpop.permute.xlu0 %905 }
  0xab   : > { %4302 = vmatmul.mubr.msk.f32.gmra.mrb[34].mxu1 %vm575_vm0, %v904_v59  ;;  %v908_v56 = vpop.permute.xlu1 %907  ;;  %v5313_v59 = vld [vmem:[%s6784_s2 + $0x8] sm:$0xff] }
  0xac   : > { %4304 = vmatprep.mubr.msk.f32.mxu1 %vm575_vm0, %v906_v52  ;;  %4346 = vmatprep.subr.mxu1 %v5313_v59 }
  0xad   : > { %421 = vmatmul.mubr.f32.gmra.mrb[30].mxu0 %v4902_v30  ;;  %4396 = vmatprep.subr.mxu0 %v5313_v59 }
  0xae   : > { %425 = vmatprep.mubr.f32.mxu0 %v4917_v33  ;;  %v910_v60 = vpop.permute.xlu0 %909  ;;  %4347 = vmatpush3.msra.mxu1 %v5313_v59 }
  0xaf   : > { %4305 = vmatmul.mubr.msk.f32.gmra.mrb[36].mxu1 %vm575_vm0, %v908_v56  ;;  %v912_v50 = vpop.permute.xlu1 %911  ;;  %4642 = vmatprep.subr.mxu1 %v5313_v59 }
  0xb0   : > { %4307 = vmatprep.mubr.msk.f32.mxu1 %vm575_vm0, %v910_v60  ;;  %4397 = vmatpush3.msra.mxu0 %v5313_v59 }
  0xb1   : > { %426 = vmatmul.mubr.f32.gmra.mrb[32].mxu0 %v4912_v32 }
  0xb2   : > { %430 = vmatprep.mubr.f32.mxu0 %v4927_v35  ;;  %v914_v54 = vpop.permute.xlu0 %913 }
  0xb3   : > { %4308 = vmatmul.mubr.msk.f32.gmra.mrb[38].mxu1 %vm575_vm0, %v912_v50  ;;  %v916_v63 = vpop.permute.xlu1 %915 }
  0xb4   : > { %4310 = vmatprep.mubr.msk.f32.mxu1 %vm575_vm0, %v914_v54 }
  0xb5   : > { %431 = vmatmul.mubr.f32.gmra.mrb[34].mxu0 %v4922_v34 }
  0xb6   : > { %435 = vmatprep.mubr.f32.mxu0 %v4937_v37  ;;  %v918_v51 = vpop.permute.xlu0 %917 }
  0xb7   : > { %4311 = vmatmul.mubr.msk.f32.gmra.mrb[40].mxu1 %vm575_vm0, %v916_v63  ;;  %v920_v61 = vpop.permute.xlu1 %919 }
  0xb8   : > { %4313 = vmatprep.mubr.msk.f32.mxu1 %vm575_vm0, %v918_v51  ;;  %v6901_v51 = vld [vmem:[#allocation54_spill] sm:$0xff] }
  0xb9   : > { %436 = vmatmul.mubr.f32.gmra.mrb[36].mxu0 %v4932_v36 }
  0xba   : > { %440 = vmatprep.mubr.f32.mxu0 %v4947_v39  ;;  %v922_v53 = vpop.permute.xlu0 %921 }
  0xbb   : > { %4314 = vmatmul.mubr.msk.f32.gmra.mrb[42].mxu1 %vm575_vm0, %v920_v61  ;;  %v924_v55 = vpop.permute.xlu1 %923 }
  0xbc   : > { %4316 = vmatprep.mubr.msk.f32.mxu1 %vm575_vm0, %v922_v53 }
  0xbd   : > { %441 = vmatmul.mubr.f32.gmra.mrb[38].mxu0 %v4942_v38 }
  0xbe   : > { %445 = vmatprep.mubr.f32.mxu0 %v4957_v41  ;;  %v926_v1 = vpop.permute.xlu0 %925 }
  0xbf   : > { %4317 = vmatmul.mubr.msk.f32.gmra.mrb[44].mxu1 %vm575_vm0, %v924_v55  ;;  %v928_v58 = vpop.permute.xlu1 %927  ;;  %v6902_v55 = vld [vmem:[#allocation53_spill] sm:$0xff] }
  0xc0   : > { %4319 = vmatprep.mubr.msk.f32.mxu1 %vm575_vm0, %v926_v1  ;;  %v6903_v1 = vld [vmem:[#allocation56_spill] sm:$0xff] }
  0xc1   : > { %446 = vmatmul.mubr.f32.gmra.mrb[40].mxu0 %v4952_v40 }
  0xc2   : > { %450 = vmatprep.mubr.f32.mxu0 %v4967_v43  ;;  %v930_v62 = vpop.permute.xlu0 %929 }
  0xc3   : > { %4320 = vmatmul.mubr.msk.f32.gmra.mrb[46].mxu1 %vm575_vm0, %v928_v58  ;;  %v932_v57 = vpop.permute.xlu1 %931 }
  0xc4   : > { %4322 = vmatprep.mubr.msk.f32.mxu1 %vm575_vm0, %v930_v62 }
  0xc5   : > { %451 = vmatmul.mubr.f32.gmra.mrb[42].mxu0 %v4962_v42 }
  0xc6   : > { %455 = vmatprep.mubr.f32.mxu0 %v4977_v45  ;;  %v934_v52 = vpop.permute.xlu0 %933 }
  0xc7   : > { %4323 = vmatmul.mubr.msk.f32.gmra.mrb[48].mxu1 %vm575_vm0, %v932_v57  ;;  %v936_v56 = vpop.permute.xlu1 %935  ;;  %v6904_v57 = vld [vmem:[#allocation55_spill] sm:$0xff] }
  0xc8   : > { %4325 = vmatprep.mubr.msk.f32.mxu1 %vm575_vm0, %v934_v52  ;;  %v6905_v52 = vld [vmem:[#allocation58_spill] sm:$0xff] }
  0xc9   : > { %456 = vmatmul.mubr.f32.gmra.mrb[44].mxu0 %v4972_v44 }
  0xca   : > { %460 = vmatprep.mubr.f32.mxu0 %v4987_v47  ;;  %v938_v60 = vpop.permute.xlu0 %937 }
  0xcb   : > { %4326 = vmatmul.mubr.msk.f32.gmra.mrb[50].mxu1 %vm575_vm0, %v936_v56  ;;  %v940_v50 = vpop.permute.xlu1 %939 }
  0xcc   : > { %4328 = vmatprep.mubr.msk.f32.mxu1 %vm575_vm0, %v938_v60 }
  0xcd   : > { %461 = vmatmul.mubr.f32.gmra.mrb[46].mxu0 %v4982_v46 }
  0xce   : > { %465 = vmatprep.mubr.f32.mxu0 %v4997_v49  ;;  %v942_v54 = vpop.permute.xlu0 %941 }
  0xcf   : > { %4329 = vmatmul.mubr.msk.f32.gmra.mrb[52].mxu1 %vm575_vm0, %v940_v50  ;;  %v944_v63 = vpop.permute.xlu1 %943  ;;  %v6906_v50 = vld [vmem:[#allocation57_spill] sm:$0xff] }
  0xd0   : > { %4331 = vmatprep.mubr.msk.f32.mxu1 %vm575_vm0, %v942_v54  ;;  %v6907_v54 = vld [vmem:[#allocation60_spill] sm:$0xff] }
  0xd1   : > { %466 = vmatmul.mubr.f32.gmra.mrb[48].mxu0 %v4992_v48 }
  0xd2   : > { %470 = vmatprep.mubr.f32.mxu0 %v6901_v51  ;;  %v946_v61 = vpop.permute.xlu0 %945 }
  0xd3   : > { %4332 = vmatmul.mubr.msk.f32.gmra.mrb[54].mxu1 %vm575_vm0, %v944_v63  ;;  %v948_v53 = vpop.permute.xlu1 %947 }
  0xd4   : > { %4334 = vmatprep.mubr.msk.f32.mxu1 %vm575_vm0, %v946_v61  ;;  %v6908_v61 = vld [vmem:[#allocation59_spill] sm:$0xff] }
  0xd5   : > { %471 = vmatmul.mubr.f32.gmra.mrb[50].mxu0 %v6902_v55  ;;  %v6910_v55 = vld [vmem:[#allocation61_spill] sm:$0xff] }
  0xd6   : > { %475 = vmatprep.mubr.f32.mxu0 %v6903_v1  ;;  %v950_v58 = vpop.permute.xlu0 %949  ;;  %v6911_v1 = vld [vmem:[#allocation64_spill] sm:$0xff] }
  0xd7   : > { %4335 = vmatmul.mubr.msk.f32.gmra.mrb[56].mxu1 %vm575_vm0, %v948_v53  ;;  %v952_v62 = vpop.permute.xlu1 %951  ;;  %v6909_v53 = vld [vmem:[#allocation62_spill] sm:$0xff] }
  0xd8   : > { %4337 = vmatprep.mubr.msk.f32.mxu1 %vm575_vm0, %v950_v58  ;;  %v6912_v58 = vld [vmem:[#allocation63_spill] sm:$0xff] }
  0xd9   : > { %476 = vmatmul.mubr.f32.gmra.mrb[52].mxu0 %v6904_v57  ;;  %v6914_v57 = vld [vmem:[#allocation65_spill] sm:$0xff] }
  0xda   : > { %480 = vmatprep.mubr.f32.mxu0 %v6905_v52  ;;  %v954_v56 = vpop.permute.xlu0 %953 }
  0xdb   : > { %4338 = vmatmul.mubr.msk.f32.gmra.mrb[58].mxu1 %vm575_vm0, %v952_v62  ;;  %v956_v60 = vpop.permute.xlu1 %955  ;;  %v6913_v62 = vld [vmem:[#allocation66_spill] sm:$0xff] }
  0xdc   : > { %4340 = vmatprep.mubr.msk.f32.mxu1 %vm575_vm0, %v954_v56 }
  0xdd   : > { %481 = vmatmul.mubr.f32.gmra.mrb[54].mxu0 %v6906_v50 }
  0xde   : > { %485 = vmatprep.mubr.f32.mxu0 %v6907_v54  ;;  %v958_v63 = vpop.permute.xlu0 %957 }
  0xdf   : > { %4341 = vmatmul.mubr.msk.f32.gmra.mrb[60].mxu1 %vm575_vm0, %v956_v60  ;;  %v960_v51 = vpop.permute.xlu1 %959 }
  0xe0   : > { %4343 = vmatprep.mubr.msk.f32.mxu1 %vm575_vm0, %v958_v63 }
  0xe1   : > { %486 = vmatmul.mubr.f32.gmra.mrb[56].mxu0 %v6908_v61 }
  0xe2   : > { %490 = vmatprep.mubr.f32.mxu0 %v6909_v53 }
  0xe3   : > { %4344 = vmatmul.mubr.msk.f32.gmra.mrb[62].mxu1 %vm575_vm0, %v960_v51 }
  0xe5   : > { %491 = vmatmul.mubr.f32.gmra.mrb[58].mxu0 %v6910_v55 }
  0xe6   : > { %495 = vmatprep.mubr.f32.mxu0 %v6911_v1 }
  0xe9   : > { %496 = vmatmul.mubr.f32.gmra.mrb[60].mxu0 %v6912_v58 }
  0xea   : > { %500 = vmatprep.mubr.f32.mxu0 %v6913_v62 }
  0xed   : > { %501 = vmatmul.mubr.f32.gmra.mrb[62].mxu0 %v6914_v57 }
 0x107   : > { %v5355_v52 = vpop.f32.mrb[0].mxu1 }
 0x108   : > { %v5357_v56 = vpop.f32.mrb[1].mxu1 }
 0x10b   : > { %v5359_v60 = vpop.f32.mrb[2].mxu1 }
 0x10c   : > { %v5361_v50 = vpop.f32.mrb[3].mxu1 }
 0x10f   : > { %v5363_v54 = vpop.f32.mrb[4].mxu1 }
 0x110   : > { %v5365_v63 = vpop.f32.mrb[5].mxu1 }
 0x113   : > { %v5367_v51 = vpop.f32.mrb[6].mxu1 }
 0x114   : > { %v5369_v61 = vpop.f32.mrb[7].mxu1 }
 0x117   : > { %v5371_v53 = vpop.f32.mrb[8].mxu1 }
 0x118   : > { %v5373_v55 = vpop.f32.mrb[9].mxu1 }
 0x11b   : > { %v5375_v1 = vpop.f32.mrb[10].mxu1 }
 0x11c   : > { %v5377_v58 = vpop.f32.mrb[11].mxu1 }
 0x11f   : > { %v5379_v62 = vpop.f32.mrb[12].mxu1 }
 0x120   : > { %v5381_v57 = vpop.f32.mrb[13].mxu1 }
 0x123   : > { %v5383_v48 = vpop.f32.mrb[14].mxu1 }
 0x124   : > { %v5385_v49 = vpop.f32.mrb[15].mxu1 }
 0x127   : > { %v5387_v46 = vpop.f32.mrb[16].mxu1 }
 0x128   : > { %v5389_v47 = vpop.f32.mrb[17].mxu1 }
 0x12b   : > { %v5391_v44 = vpop.f32.mrb[18].mxu1 }
 0x12c   : > { %v5393_v45 = vpop.f32.mrb[19].mxu1 }
 0x12f   : > { %v5395_v42 = vpop.f32.mrb[20].mxu1 }
 0x130   : > { %v5397_v43 = vpop.f32.mrb[21].mxu1 }
 0x133   : > { %v5399_v40 = vpop.f32.mrb[22].mxu1 }
 0x134   : > { %v5401_v41 = vpop.f32.mrb[23].mxu1 }
 0x137   : > { %v5403_v38 = vpop.f32.mrb[24].mxu1 }
 0x138   : > { %v5405_v39 = vpop.f32.mrb[25].mxu1 }
 0x13b   : > { %v5407_v36 = vpop.f32.mrb[26].mxu1 }
 0x13c   : > { %v5409_v34 = vpop.f32.mrb[27].mxu1 }
 0x13f   : > { %v5413_v32 = vpop.f32.mrb[28].mxu1 }
 0x140   : > { %v5415_v30 = vpop.f32.mrb[29].mxu1 }
 0x143   : > { %v5420_v28 = vpop.f32.mrb[30].mxu1 }
 0x144   : > { %v347_v37 = vpop.f32.mrb[0].mxu0  ;;  %6915 = vst [vmem:[#allocation67_spill] sm:$0xff] %v5420_v28  ;;  %v5422_v26 = vpop.f32.mrb[31].mxu1 }
 0x145   : > { %3818 = vst [vmem:[#allocation2 + $0x100] sm:$0xff] %v347_v37  ;;  %1805 = vrot.lane.b32.xlu0 %v347_v37, %s4699_s23  ;;  %v349_v35 = vpop.f32.mrb[1].mxu0  ;;  %4348 = vmatprep.mubr.msk.f32.mxu1 %vm575_vm0, %v347_v37  ;;  %6916 = vst [vmem:[#allocation68_spill] sm:$0xff] %v5422_v26 }
 0x148   : > { %v352_v33 = vpop.f32.mrb[2].mxu0 }
 0x149   : > { %3819 = vst [vmem:[#allocation2 + $0x108] sm:$0xff] %v352_v33  ;;  %1807 = vrot.lane.b32.xlu1 %v352_v33, %s4699_s23  ;;  %v354_v31 = vpop.f32.mrb[3].mxu0  ;;  %4349 = vmatmul.mubr.msk.f32.vlgmr.msra.gmra.mrb[64].mxu1 %vm575_vm0, %v352_v33 }
 0x14a   : > { %4643 = vmatpush3.msra.mxu1 %v5313_v59 }
 0x14c   : > { %v357_v29 = vpop.f32.mrb[4].mxu0 }
 0x14d   : > { %3820 = vst [vmem:[#allocation2 + $0x110] sm:$0xff] %v357_v29  ;;  %1809 = vrot.lane.b32.xlu0 %v357_v29, %s4699_s23  ;;  %v359_v35 = vpop.f32.mrb[5].mxu0  ;;  %4351 = vmatprep.mubr.msk.f32.mxu1 %vm575_vm0, %v357_v29 }
 0x150   : > { %v362_v37 = vpop.f32.mrb[6].mxu0 }
 0x151   : > { %3821 = vst [vmem:[#allocation2 + $0x118] sm:$0xff] %v362_v37  ;;  %1811 = vrot.lane.b32.xlu1 %v362_v37, %s4699_s23  ;;  %v364_v31 = vpop.f32.mrb[7].mxu0  ;;  %4352 = vmatmul.mubr.msk.f32.gmra.mrb[66].mxu1 %vm575_vm0, %v362_v37 }
 0x154   : > { %v367_v33 = vpop.f32.mrb[8].mxu0 }
 0x155   : > { %3822 = vst [vmem:[#allocation2 + $0x120] sm:$0xff] %v367_v33  ;;  %1813 = vrot.lane.b32.xlu0 %v367_v33, %s4699_s23  ;;  %v369_v59 = vpop.f32.mrb[9].mxu0  ;;  %4354 = vmatprep.mubr.msk.f32.mxu1 %vm575_vm0, %v367_v33 }
 0x158   : > { %v372_v27 = vpop.f32.mrb[10].mxu0 }
 0x159   : > { %3823 = vst [vmem:[#allocation2 + $0x128] sm:$0xff] %v372_v27  ;;  %1815 = vrot.lane.b32.xlu0 %v372_v27, %s4699_s23  ;;  %v374_v35 = vpop.f32.mrb[11].mxu0  ;;  %4355 = vmatmul.mubr.msk.f32.gmra.mrb[68].mxu1 %vm575_vm0, %v372_v27 }
 0x15c   : > { %v377_v29 = vpop.f32.mrb[12].mxu0 }
 0x15d   : > { %3824 = vst [vmem:[#allocation2 + $0x130] sm:$0xff] %v377_v29  ;;  %1817 = vrot.lane.b32.xlu0 %v377_v29, %s4699_s23  ;;  %v379_v31 = vpop.f32.mrb[13].mxu0  ;;  %4357 = vmatprep.mubr.msk.f32.mxu1 %vm575_vm0, %v377_v29 }
 0x160   : > { %v382_v37 = vpop.f32.mrb[14].mxu0 }
 0x161   : > { %3825 = vst [vmem:[#allocation2 + $0x138] sm:$0xff] %v382_v37  ;;  %1819 = vrot.lane.b32.xlu0 %v382_v37, %s4699_s23  ;;  %v384_v59 = vpop.f32.mrb[15].mxu0  ;;  %4358 = vmatmul.mubr.msk.f32.gmra.mrb[70].mxu1 %vm575_vm0, %v382_v37 }
 0x164   : > { %v387_v33 = vpop.f32.mrb[16].mxu0 }
 0x165   : > { %3826 = vst [vmem:[#allocation2 + $0x140] sm:$0xff] %v387_v33  ;;  %1821 = vrot.lane.b32.xlu0 %v387_v33, %s4699_s23  ;;  %v389_v35 = vpop.f32.mrb[17].mxu0  ;;  %4360 = vmatprep.mubr.msk.f32.mxu1 %vm575_vm0, %v387_v33 }
 0x168   : > { %v392_v27 = vpop.f32.mrb[18].mxu0 }
 0x169   : > { %3827 = vst [vmem:[#allocation2 + $0x148] sm:$0xff] %v392_v27  ;;  %1823 = vrot.lane.b32.xlu0 %v392_v27, %s4699_s23  ;;  %v394_v31 = vpop.f32.mrb[19].mxu0  ;;  %4361 = vmatmul.mubr.msk.f32.gmra.mrb[72].mxu1 %vm575_vm0, %v392_v27 }
 0x16c   : > { %v397_v29 = vpop.f32.mrb[20].mxu0 }
 0x16d   : > { %3828 = vst [vmem:[#allocation2 + $0x150] sm:$0xff] %v397_v29  ;;  %1825 = vrot.lane.b32.xlu0 %v397_v29, %s4699_s23  ;;  %v399_v59 = vpop.f32.mrb[21].mxu0  ;;  %4363 = vmatprep.mubr.msk.f32.mxu1 %vm575_vm0, %v397_v29 }
 0x170   : > { %v402_v37 = vpop.f32.mrb[22].mxu0 }
 0x171   : > { %3829 = vst [vmem:[#allocation2 + $0x158] sm:$0xff] %v402_v37  ;;  %1827 = vrot.lane.b32.xlu0 %v402_v37, %s4699_s23  ;;  %v404_v35 = vpop.f32.mrb[23].mxu0  ;;  %4364 = vmatmul.mubr.msk.f32.gmra.mrb[74].mxu1 %vm575_vm0, %v402_v37 }
 0x174   : > { %v407_v33 = vpop.f32.mrb[24].mxu0 }
 0x175   : > { %3830 = vst [vmem:[#allocation2 + $0x160] sm:$0xff] %v407_v33  ;;  %1829 = vrot.lane.b32.xlu0 %v407_v33, %s4699_s23  ;;  %v409_v31 = vpop.f32.mrb[25].mxu0  ;;  %4366 = vmatprep.mubr.msk.f32.mxu1 %vm575_vm0, %v407_v33 }
 0x178   : > { %v412_v27 = vpop.f32.mrb[26].mxu0 }
 0x179   : > { %3831 = vst [vmem:[#allocation2 + $0x168] sm:$0xff] %v412_v27  ;;  %1831 = vrot.lane.b32.xlu0 %v412_v27, %s4699_s23  ;;  %v414_v59 = vpop.f32.mrb[27].mxu0  ;;  %4367 = vmatmul.mubr.msk.f32.gmra.mrb[76].mxu1 %vm575_vm0, %v412_v27 }
 0x17a   : > { %v5448_v29 = vpop.f32.mrb[32].mxu1 }
 0x17b   : > { %v1091_v24 = vpop.f32.mrb[33].mxu1 }
 0x17c   : > { %v417_v35 = vpop.f32.mrb[28].mxu0 }
 0x17d   : > { %3832 = vst [vmem:[#allocation2 + $0x170] sm:$0xff] %v417_v35  ;;  %1833 = vrot.lane.b32.xlu0 %v417_v35, %s4699_s23  ;;  %v419_v37 = vpop.f32.mrb[29].mxu0  ;;  %4369 = vmatprep.mubr.msk.f32.mxu1 %vm575_vm0, %v417_v35 }
 0x17e   : > { %v5452_v31 = vpop.f32.mrb[34].mxu1 }
 0x17f   : > { %v1101_v33 = vpop.f32.mrb[35].mxu1 }
 0x180   : > { %v422_v25 = vpop.f32.mrb[30].mxu0 }
 0x181   : > { %3833 = vst [vmem:[#allocation2 + $0x178] sm:$0xff] %v422_v25  ;;  %1835 = vrot.lane.b32.xlu0 %v422_v25, %s4699_s23  ;;  %v424_v59 = vpop.f32.mrb[31].mxu0  ;;  %4370 = vmatmul.mubr.msk.f32.gmra.mrb[78].mxu1 %vm575_vm0, %v422_v25 }
 0x182   : > { %v5456_v27 = vpop.f32.mrb[36].mxu1 }
 0x183   : > { %v1111_v22 = vpop.f32.mrb[37].mxu1 }
 0x184   : > { %v427_v23 = vpop.f32.mrb[32].mxu0 }
 0x185   : > { %3834 = vst [vmem:[#allocation2 + $0x180] sm:$0xff] %v427_v23  ;;  %1837 = vrot.lane.b32.xlu0 %v427_v23, %s4699_s23  ;;  %v429_v37 = vpop.f32.mrb[33].mxu0  ;;  %4372 = vmatprep.mubr.msk.f32.mxu1 %vm575_vm0, %v427_v23 }
 0x186   : > { %v5460_v35 = vpop.f32.mrb[38].mxu1 }
 0x187   : > { %v1121_v20 = vpop.f32.mrb[39].mxu1 }
 0x188   : > { %v432_v21 = vpop.f32.mrb[34].mxu0 }
 0x189   : > { %3835 = vst [vmem:[#allocation2 + $0x188] sm:$0xff] %v432_v21  ;;  %1839 = vrot.lane.b32.xlu0 %v432_v21, %s4699_s23  ;;  %v434_v59 = vpop.f32.mrb[35].mxu0  ;;  %4373 = vmatmul.mubr.msk.f32.gmra.mrb[80].mxu1 %vm575_vm0, %v432_v21 }
 0x18a   : > { %v5464_v25 = vpop.f32.mrb[40].mxu1 }
 0x18b   : > { %v1131_v18 = vpop.f32.mrb[41].mxu1 }
 0x18c   : > { %v437_v19 = vpop.f32.mrb[36].mxu0 }
 0x18d   : > { %3836 = vst [vmem:[#allocation2 + $0x190] sm:$0xff] %v437_v19  ;;  %1841 = vrot.lane.b32.xlu1 %v437_v19, %s4699_s23  ;;  %v439_v37 = vpop.f32.mrb[37].mxu0  ;;  %4375 = vmatprep.mubr.msk.f32.mxu1 %vm575_vm0, %v437_v19 }
 0x18e   : > { %1282 = vrot.lane.b32.xlu0 %v1091_v24, %s4700_s20  ;;  %v5469_v23 = vpop.f32.mrb[42].mxu1 }
 0x18f   : > { %v1141_v16 = vpop.f32.mrb[43].mxu1 }
 0x190   : > { %v442_v17 = vpop.f32.mrb[38].mxu0 }
 0x191   : > { %3837 = vst [vmem:[#allocation2 + $0x198] sm:$0xff] %v442_v17  ;;  %1843 = vrot.lane.b32.xlu1 %v442_v17, %s4699_s23  ;;  %v444_v21 = vpop.f32.mrb[39].mxu0  ;;  %4376 = vmatmul.mubr.msk.f32.gmra.mrb[82].mxu1 %vm575_vm0, %v442_v17 }
 0x192   : > { %1286 = vrot.lane.b32.xlu0 %v1101_v33, %s4700_s20  ;;  %v5474_v59 = vpop.f32.mrb[44].mxu1 }
 0x193   : > { %v1151_v37 = vpop.f32.mrb[45].mxu1 }
 0x194   : > { %v447_v14 = vpop.f32.mrb[40].mxu0 }
 0x195   : > { %3838 = vst [vmem:[#allocation2 + $0x1a0] sm:$0xff] %v447_v14  ;;  %1845 = vrot.lane.b32.xlu1 %v447_v14, %s4699_s23  ;;  %v449_v19 = vpop.f32.mrb[41].mxu0  ;;  %4378 = vmatprep.mubr.msk.f32.mxu1 %vm575_vm0, %v447_v14 }
 0x196   : > { %1290 = vrot.lane.b32.xlu0 %v1111_v22, %s4700_s20  ;;  %v5479_v24 = vpop.f32.mrb[46].mxu1 }
 0x197   : > { %v1161_v15 = vpop.f32.mrb[47].mxu1 }
 0x198   : > { %v452_v21 = vpop.f32.mrb[42].mxu0 }
 0x199   : > { %3839 = vst [vmem:[#allocation2 + $0x1a8] sm:$0xff] %v452_v21  ;;  %1847 = vrot.lane.b32.xlu1 %v452_v21, %s4699_s23  ;;  %v454_v17 = vpop.f32.mrb[43].mxu0  ;;  %4379 = vmatmul.mubr.msk.f32.gmra.mrb[84].mxu1 %vm575_vm0, %v452_v21 }
 0x19a   : > { %1294 = vrot.lane.b32.xlu0 %v1121_v20, %s4700_s20  ;;  %v5484_v33 = vpop.f32.mrb[48].mxu1 }
 0x19b   : > { %v1171_v12 = vpop.f32.mrb[49].mxu1 }
 0x19c   : > { %v457_v19 = vpop.f32.mrb[44].mxu0 }
 0x19d   : > { %3840 = vst [vmem:[#allocation2 + $0x1b0] sm:$0xff] %v457_v19  ;;  %1849 = vrot.lane.b32.xlu1 %v457_v19, %s4699_s23  ;;  %v459_v14 = vpop.f32.mrb[45].mxu0  ;;  %4381 = vmatprep.mubr.msk.f32.mxu1 %vm575_vm0, %v457_v19 }
 0x19e   : > { %1298 = vrot.lane.b32.xlu0 %v1131_v18, %s4700_s20  ;;  %v5489_v22 = vpop.f32.mrb[50].mxu1 }
 0x19f   : > { %v1181_v13 = vpop.f32.mrb[51].mxu1 }
 0x1a0   : > { %v462_v17 = vpop.f32.mrb[46].mxu0 }
 0x1a1   : > { %3841 = vst [vmem:[#allocation2 + $0x1b8] sm:$0xff] %v462_v17  ;;  %1851 = vrot.lane.b32.xlu1 %v462_v17, %s4699_s23  ;;  %v464_v20 = vpop.f32.mrb[47].mxu0  ;;  %4382 = vmatmul.mubr.msk.f32.gmra.mrb[86].mxu1 %vm575_vm0, %v462_v17 }
 0x1a2   : > { %1302 = vrot.lane.b32.xlu0 %v1141_v16, %s4700_s20  ;;  %v5494_v21 = vpop.f32.mrb[52].mxu1 }
 0x1a3   : > { %v1191_v10 = vpop.f32.mrb[53].mxu1 }
 0x1a4   : > { %v467_v14 = vpop.f32.mrb[48].mxu0 }
 0x1a5   : > { %3842 = vst [vmem:[#allocation2 + $0x1c0] sm:$0xff] %v467_v14  ;;  %1853 = vrot.lane.b32.xlu1 %v467_v14, %s4699_s23  ;;  %v469_v18 = vpop.f32.mrb[49].mxu0  ;;  %4384 = vmatprep.mubr.msk.f32.mxu1 %vm575_vm0, %v467_v14 }
 0x1a6   : > { %1306 = vrot.lane.b32.xlu0 %v1151_v37, %s4700_s20  ;;  %v5499_v19 = vpop.f32.mrb[54].mxu1 }
 0x1a7   : > { %v1201_v11 = vpop.f32.mrb[55].mxu1 }
 0x1a8   : > { %v472_v20 = vpop.f32.mrb[50].mxu0 }
 0x1a9   : > { %3843 = vst [vmem:[#allocation2 + $0x1c8] sm:$0xff] %v472_v20  ;;  %1855 = vrot.lane.b32.xlu1 %v472_v20, %s4699_s23  ;;  %v474_v16 = vpop.f32.mrb[51].mxu0  ;;  %4385 = vmatmul.mubr.msk.f32.gmra.mrb[88].mxu1 %vm575_vm0, %v472_v20 }
 0x1aa   : > { %1310 = vrot.lane.b32.xlu0 %v1161_v15, %s4700_s20  ;;  %v5504_v17 = vpop.f32.mrb[56].mxu1 }
 0x1ab   : > { %v1211_v8 = vpop.f32.mrb[57].mxu1 }
 0x1ac   : > { %v477_v18 = vpop.f32.mrb[52].mxu0 }
 0x1ad   : > { %3844 = vst [vmem:[#allocation2 + $0x1d0] sm:$0xff] %v477_v18  ;;  %1857 = vrot.lane.b32.xlu1 %v477_v18, %s4699_s23  ;;  %v479_v37 = vpop.f32.mrb[53].mxu0  ;;  %4387 = vmatprep.mubr.msk.f32.mxu1 %vm575_vm0, %v477_v18 }
 0x1ae   : > { %1314 = vrot.lane.b32.xlu0 %v1171_v12, %s4700_s20  ;;  %v5509_v14 = vpop.f32.mrb[58].mxu1 }
 0x1af   : > { %v1221_v9 = vpop.f32.mrb[59].mxu1 }
 0x1b0   : > { %v482_v16 = vpop.f32.mrb[54].mxu0 }
 0x1b1   : > { %3845 = vst [vmem:[#allocation2 + $0x1d8] sm:$0xff] %v482_v16  ;;  %1859 = vrot.lane.b32.xlu1 %v482_v16, %s4699_s23  ;;  %v484_v15 = vpop.f32.mrb[55].mxu0  ;;  %4388 = vmatmul.mubr.msk.f32.gmra.mrb[90].mxu1 %vm575_vm0, %v482_v16 }
 0x1b2   : > { %1318 = vrot.lane.b32.xlu0 %v1181_v13, %s4700_s20  ;;  %v5514_v20 = vpop.f32.mrb[60].mxu1 }
 0x1b3   : > { %v1231_v6 = vpop.f32.mrb[61].mxu1 }
 0x1b4   : > { %v487_v37 = vpop.f32.mrb[56].mxu0 }
 0x1b5   : > { %3846 = vst [vmem:[#allocation2 + $0x1e0] sm:$0xff] %v487_v37  ;;  %1861 = vrot.lane.b32.xlu1 %v487_v37, %s4699_s23  ;;  %v489_v12 = vpop.f32.mrb[57].mxu0  ;;  %4390 = vmatprep.mubr.msk.f32.mxu1 %vm575_vm0, %v487_v37 }
 0x1b6   : > { %1322 = vrot.lane.b32.xlu0 %v1191_v10, %s4700_s20  ;;  %v5519_v18 = vpop.f32.mrb[62].mxu1 }
 0x1b7   : > { %v1806_v7 = vpop.permute.xlu0 %1805  ;;  %v1241_v15 = vpop.f32.mrb[63].mxu1 }
 0x1b8   : > { %v492_v4 = vpop.f32.mrb[58].mxu0  ;;  %4398 = vmatprep.mubr.msk.f32.mxu0 %vm575_vm0, %v1806_v7 }
 0x1b9   : > { %3847 = vst [vmem:[#allocation2 + $0x1e8] sm:$0xff] %v492_v4  ;;  %1863 = vrot.lane.b32.xlu1 %v492_v4, %s4699_s23  ;;  %v494_v13 = vpop.f32.mrb[59].mxu0  ;;  %4391 = vmatmul.mubr.msk.f32.gmra.mrb[92].mxu1 %vm575_vm0, %v492_v4 }
 0x1ba   : > { %1326 = vrot.lane.b32.xlu0 %v1201_v11, %s4700_s20 }
 0x1bb   : > { %v1808_v16 = vpop.permute.xlu1 %1807 }
 0x1bc   : > { %v497_v12 = vpop.f32.mrb[60].mxu0  ;;  %4399 = vmatmul.mubr.msk.f32.vlgmr.msra.gmra.mrb[64].mxu0 %vm575_vm0, %v1808_v16 }
 0x1bd   : > { %3848 = vst [vmem:[#allocation2 + $0x1f0] sm:$0xff] %v497_v12  ;;  %1865 = vrot.lane.b32.xlu1 %v497_v12, %s4699_s23  ;;  %v499_v10 = vpop.f32.mrb[61].mxu0  ;;  %4393 = vmatprep.mubr.msk.f32.mxu1 %vm575_vm0, %v497_v12 }
 0x1be   : > { %1330 = vrot.lane.b32.xlu0 %v1211_v8, %s4700_s20 }
 0x1bf   : > { %v1810_v7 = vpop.permute.xlu0 %1809 }
 0x1c0   : > { %v502_v37 = vpop.f32.mrb[62].mxu0  ;;  %4401 = vmatprep.mubr.msk.f32.mxu0 %vm575_vm0, %v1810_v7 }
 0x1c1   : > { %3849 = vst [vmem:[#allocation2 + $0x1f8] sm:$0xff] %v502_v37  ;;  %1867 = vrot.lane.b32.xlu1 %v502_v37, %s4699_s23  ;;  %v504_v4 = vpop.f32.mrb[63].mxu0  ;;  %4394 = vmatmul.mubr.msk.f32.gmra.mrb[94].mxu1 %vm575_vm0, %v502_v37 }
 0x1c2   : > { %1334 = vrot.lane.b32.xlu0 %v1221_v9, %s4700_s20 }
 0x1c3   : > { %v1812_v11 = vpop.permute.xlu1 %1811 }
 0x1c4   : > { %4402 = vmatmul.mubr.msk.f32.gmra.mrb[66].mxu0 %vm575_vm0, %v1812_v11 }
 0x1c5   : > { %1284 = vrot.lane.b32.xlu1 %v5448_v29, %s4700_s20 }
 0x1c6   : > { %1338 = vrot.lane.b32.xlu0 %v1231_v6, %s4700_s20 }
 0x1c7   : > { %v1814_v8 = vpop.permute.xlu0 %1813 }
 0x1c8   : > { %4404 = vmatprep.mubr.msk.f32.mxu0 %vm575_vm0, %v1814_v8 }
 0x1c9   : > { %1288 = vrot.lane.b32.xlu1 %v5452_v31, %s4700_s20 }
 0x1ca   : > { %1342 = vrot.lane.b32.xlu0 %v1241_v15, %s4700_s20 }
 0x1cb   : > { %v1816_v13 = vpop.permute.xlu0 %1815 }
 0x1cc   : > { %4405 = vmatmul.mubr.msk.f32.gmra.mrb[68].mxu0 %vm575_vm0, %v1816_v13 }
 0x1cd   : > { %1292 = vrot.lane.b32.xlu1 %v5456_v27, %s4700_s20 }
 0x1cf   : > { %v1818_v9 = vpop.permute.xlu0 %1817 }
 0x1d0   : > { %4407 = vmatprep.mubr.msk.f32.mxu0 %vm575_vm0, %v1818_v9 }
 0x1d1   : > { %1296 = vrot.lane.b32.xlu1 %v5460_v35, %s4700_s20 }
 0x1d3   : > { %v1820_v6 = vpop.permute.xlu0 %1819 }
 0x1d4   : > { %4408 = vmatmul.mubr.msk.f32.gmra.mrb[70].mxu0 %vm575_vm0, %v1820_v6 }
 0x1d5   : > { %1300 = vrot.lane.b32.xlu1 %v5464_v25, %s4700_s20 }
 0x1d7   : > { %v1822_v29 = vpop.permute.xlu0 %1821 }
 0x1d8   : > { %4410 = vmatprep.mubr.msk.f32.mxu0 %vm575_vm0, %v1822_v29 }
 0x1d9   : > { %1304 = vrot.lane.b32.xlu1 %v5469_v23, %s4700_s20 }
 0x1db   : > { %v1824_v31 = vpop.permute.xlu0 %1823 }
 0x1dc   : > { %4411 = vmatmul.mubr.msk.f32.gmra.mrb[72].mxu0 %vm575_vm0, %v1824_v31 }
 0x1dd   : > { %1308 = vrot.lane.b32.xlu1 %v5474_v59, %s4700_s20 }
 0x1df   : > { %v1826_v27 = vpop.permute.xlu0 %1825 }
 0x1e0   : > { %4413 = vmatprep.mubr.msk.f32.mxu0 %vm575_vm0, %v1826_v27 }
 0x1e1   : > { %1312 = vrot.lane.b32.xlu1 %v5479_v24, %s4700_s20 }
 0x1e3   : > { %v1828_v35 = vpop.permute.xlu0 %1827 }
 0x1e4   : > { %4414 = vmatmul.mubr.msk.f32.gmra.mrb[74].mxu0 %vm575_vm0, %v1828_v35 }
 0x1e5   : > { %1316 = vrot.lane.b32.xlu1 %v5484_v33, %s4700_s20 }
 0x1e7   : > { %v1830_v25 = vpop.permute.xlu0 %1829 }
 0x1e8   : > { %4416 = vmatprep.mubr.msk.f32.mxu0 %vm575_vm0, %v1830_v25 }
 0x1e9   : > { %1320 = vrot.lane.b32.xlu1 %v5489_v22, %s4700_s20 }
 0x1eb   : > { %v1832_v23 = vpop.permute.xlu0 %1831 }
 0x1ec   : > { %4417 = vmatmul.mubr.msk.f32.gmra.mrb[76].mxu0 %vm575_vm0, %v1832_v23 }
 0x1ed   : > { %1324 = vrot.lane.b32.xlu1 %v5494_v21, %s4700_s20 }
 0x1ef   : > { %v1834_v59 = vpop.permute.xlu0 %1833 }
 0x1f0   : > { %4419 = vmatprep.mubr.msk.f32.mxu0 %vm575_vm0, %v1834_v59 }
 0x1f1   : > { %1328 = vrot.lane.b32.xlu1 %v5499_v19, %s4700_s20 }
 0x1f3   : > { %v1836_v24 = vpop.permute.xlu0 %1835 }
 0x1f4   : > { %4420 = vmatmul.mubr.msk.f32.gmra.mrb[78].mxu0 %vm575_vm0, %v1836_v24 }
 0x1f5   : > { %1332 = vrot.lane.b32.xlu1 %v5504_v17, %s4700_s20 }
 0x1f7   : > { %v1838_v33 = vpop.permute.xlu0 %1837 }
 0x1f8   : > { %4422 = vmatprep.mubr.msk.f32.mxu0 %vm575_vm0, %v1838_v33 }
 0x1f9   : > { %1336 = vrot.lane.b32.xlu1 %v5509_v14, %s4700_s20 }
 0x1fb   : > { %v1840_v22 = vpop.permute.xlu0 %1839 }
 0x1fc   : > { %4423 = vmatmul.mubr.msk.f32.gmra.mrb[80].mxu0 %vm575_vm0, %v1840_v22 }
 0x1fd   : > { %1340 = vrot.lane.b32.xlu1 %v5514_v20, %s4700_s20 }
 0x1ff   : > { %v1842_v21 = vpop.permute.xlu1 %1841 }
 0x200   : > { %4425 = vmatprep.mubr.msk.f32.mxu1 %vm575_vm0, %v1842_v21  ;;  %v5581_v19 = vpop.permute.xlu0 %1282 }
 0x201   : > { %1344 = vrot.lane.b32.xlu1 %v5519_v18, %s4700_s20 }
 0x203   : > { %v1844_v17 = vpop.permute.xlu1 %1843 }
 0x204   : > { %4426 = vmatmul.mubr.msk.f32.vlgmr.msra.gmra.mrb[96].mxu1 %vm575_vm0, %v1844_v17  ;;  %v1287_v15 = vpop.permute.xlu0 %1286 }
 0x205   : > { %v5588_v14 = vsel %vm1378_vm1, %v5361_v50, %v1287_v15 }
 0x207   : > { %v1846_v16 = vpop.permute.xlu1 %1845 }
 0x208   : > { %4428 = vmatprep.mubr.msk.f32.mxu1 %vm575_vm0, %v1846_v16  ;;  %v1291_v20 = vpop.permute.xlu0 %1290 }
 0x209   : > { %v5593_v12 = vsel %vm1378_vm1, %v5365_v63, %v1291_v20 }
 0x20b   : > { %v1848_v10 = vpop.permute.xlu1 %1847 }
 0x20c   : > { %4429 = vmatmul.mubr.msk.f32.gmra.mrb[98].mxu1 %vm575_vm0, %v1848_v10  ;;  %v1295_v18 = vpop.permute.xlu0 %1294 }
 0x20d   : > { %v5598_v7 = vsel %vm1378_vm1, %v5369_v61, %v1295_v18 }
 0x20f   : > { %v1850_v37 = vpop.permute.xlu1 %1849 }
 0x210   : > { %4431 = vmatprep.mubr.msk.f32.mxu1 %vm575_vm0, %v1850_v37  ;;  %v1299_v50 = vpop.permute.xlu0 %1298 }
 0x211   : > { %v5603_v4 = vsel %vm1378_vm1, %v5373_v55, %v1299_v50 }
 0x213   : > { %v1852_v11 = vpop.permute.xlu1 %1851 }
 0x214   : > { %4432 = vmatmul.mubr.msk.f32.gmra.mrb[100].mxu1 %vm575_vm0, %v1852_v11  ;;  %v1303_v63 = vpop.permute.xlu0 %1302 }
 0x215   : > { %v5608_v8 = vsel %vm1378_vm1, %v5377_v58, %v1303_v63 }
 0x217   : > { %v1854_v13 = vpop.permute.xlu1 %1853 }
 0x218   : > { %4434 = vmatprep.mubr.msk.f32.mxu1 %vm575_vm0, %v1854_v13  ;;  %v1307_v61 = vpop.permute.xlu0 %1306 }
 0x219   : > { %v5613_v9 = vsel %vm1378_vm1, %v5381_v57, %v1307_v61 }
 0x21b   : > { %v1856_v6 = vpop.permute.xlu1 %1855 }
 0x21c   : > { %v5615_v29 = vpop.f32.mrb[64].mxu1  ;;  %4435 = vmatmul.mubr.msk.f32.gmra.mrb[102].mxu1 %vm575_vm0, %v1856_v6  ;;  %v1311_v55 = vpop.permute.xlu0 %1310 }
 0x21d   : > { %v5618_v31 = vpop.f32.mrb[65].mxu1  ;;  %v5622_v58 = vsel %vm1378_vm1, %v5385_v49, %v1311_v55 }
 0x21f   : > { %v1858_v27 = vpop.permute.xlu1 %1857 }
 0x220   : > { %4437 = vmatprep.mubr.msk.f32.mxu1 %vm575_vm0, %v1858_v27  ;;  %v1315_v35 = vpop.permute.xlu0 %1314 }
 0x221   : > { %v5627_v57 = vsel %vm1378_vm1, %v5389_v47, %v1315_v35 }
 0x223   : > { %v1860_v25 = vpop.permute.xlu1 %1859 }
 0x224   : > { %v5629_v23 = vpop.f32.mrb[66].mxu1  ;;  %4438 = vmatmul.mubr.msk.f32.gmra.mrb[104].mxu1 %vm575_vm0, %v1860_v25  ;;  %v1319_v59 = vpop.permute.xlu0 %1318 }
 0x225   : > { %v5632_v24 = vpop.f32.mrb[67].mxu1  ;;  %v5636_v49 = vsel %vm1378_vm1, %v5393_v45, %v1319_v59 }
 0x227   : > { %v1862_v33 = vpop.permute.xlu1 %1861 }
 0x228   : > { %4440 = vmatprep.mubr.msk.f32.mxu1 %vm575_vm0, %v1862_v33  ;;  %v1323_v22 = vpop.permute.xlu0 %1322 }
 0x229   : > { %v5641_v47 = vsel %vm1378_vm1, %v5397_v43, %v1323_v22 }
 0x22b   : > { %v1864_v21 = vpop.permute.xlu1 %1863 }
 0x22c   : > { %v5643_v17 = vpop.f32.mrb[68].mxu1  ;;  %4441 = vmatmul.mubr.msk.f32.gmra.mrb[106].mxu1 %vm575_vm0, %v1864_v21  ;;  %v1327_v15 = vpop.permute.xlu0 %1326 }
 0x22d   : > { %v5646_v16 = vpop.f32.mrb[69].mxu1  ;;  %v5650_v45 = vsel %vm1378_vm1, %v5401_v41, %v1327_v15 }
 0x22f   : > { %v1866_v20 = vpop.permute.xlu1 %1865 }
 0x230   : > { %4443 = vmatprep.mubr.msk.f32.mxu1 %vm575_vm0, %v1866_v20  ;;  %v1331_v10 = vpop.permute.xlu0 %1330 }
 0x231   : > { %v5655_v43 = vsel %vm1378_vm1, %v5405_v39, %v1331_v10 }
 0x233   : > { %v1868_v18 = vpop.permute.xlu1 %1867 }
 0x234   : > { %v5657_v37 = vpop.f32.mrb[70].mxu1  ;;  %4444 = vmatmul.mubr.msk.f32.gmra.mrb[108].mxu1 %vm575_vm0, %v1868_v18  ;;  %v1335_v50 = vpop.permute.xlu0 %1334 }
 0x235   : > { %v5660_v11 = vpop.f32.mrb[71].mxu1  ;;  %v5664_v41 = vsel %vm1378_vm1, %v5409_v34, %v1335_v50 }
 0x236   : > { %6917 = vst [vmem:[#allocation69_spill] sm:$0xff] %v5664_v41 }
 0x237   : > { %v5666_v63 = vpop.permute.xlu1 %1284 }
 0x238   : > { %v1339_v13 = vpop.permute.xlu0 %1338 }
 0x239   : > { %v5670_v61 = vsel %vm1378_vm1, %v5415_v30, %v1339_v13 }
 0x23a   : > { %6918 = vst [vmem:[#allocation70_spill] sm:$0xff] %v5670_v61 }
 0x23b   : > { %v1289_v39 = vpop.permute.xlu1 %1288 }
 0x23c   : > { %v5674_v6 = vsel %vm1378_vm1, %v5359_v60, %v1289_v39  ;;  %v5676_v55 = vpop.f32.mrb[72].mxu1 }
 0x23d   : > { %v5678_v27 = vpop.f32.mrb[73].mxu1 }
 0x23f   : > { %v1293_v35 = vpop.permute.xlu1 %1292 }
 0x240   : > { %v5682_v34 = vsel %vm1378_vm1, %v5363_v54, %v1293_v35 }
 0x243   : > { %v1297_v25 = vpop.permute.xlu1 %1296 }
 0x244   : > { %v5686_v59 = vsel %vm1378_vm1, %v5367_v51, %v1297_v25  ;;  %v5688_v30 = vpop.f32.mrb[74].mxu1 }
 0x245   : > { %v5690_v33 = vpop.f32.mrb[75].mxu1 }
 0x247   : > { %v1301_v60 = vpop.permute.xlu1 %1300 }
 0x248   : > { %v5694_v22 = vsel %vm1378_vm1, %v5371_v53, %v1301_v60 }
 0x24b   : > { %v1305_v21 = vpop.permute.xlu1 %1304 }
 0x24c   : > { %v5698_v15 = vsel %vm1378_vm1, %v5375_v1, %v1305_v21  ;;  %v5700_v54 = vpop.f32.mrb[76].mxu1 }
 0x24d   : > { %v5702_v20 = vpop.f32.mrb[77].mxu1 }
 0x24f   : > { %v1309_v51 = vpop.permute.xlu1 %1308 }
 0x250   : > { %v5706_v10 = vsel %vm1378_vm1, %v5379_v62, %v1309_v51 }
 0x253   : > { %v1313_v18 = vpop.permute.xlu1 %1312 }
 0x254   : > { %v5710_v50 = vsel %vm1378_vm1, %v5383_v48, %v1313_v18  ;;  %v5712_v53 = vpop.f32.mrb[78].mxu1 }
 0x255   : > { %v5714_v13 = vpop.f32.mrb[79].mxu1 }
 0x257   : > { %v1317_v1 = vpop.permute.xlu1 %1316 }
 0x258   : > { %v5718_v39 = vsel %vm1378_vm1, %v5387_v46, %v1317_v1 }
 0x25b   : > { %v1321_v35 = vpop.permute.xlu1 %1320 }
 0x25c   : > { %v5722_v25 = vsel %vm1378_vm1, %v5391_v44, %v1321_v35  ;;  %v5724_v62 = vpop.f32.mrb[80].mxu1 }
 0x25d   : > { %v5726_v60 = vpop.f32.mrb[81].mxu1 }
 0x25f   : > { %v1325_v48 = vpop.permute.xlu1 %1324 }
 0x260   : > { %v5730_v21 = vsel %vm1378_vm1, %v5395_v42, %v1325_v48 }
 0x263   : > { %v1329_v51 = vpop.permute.xlu1 %1328 }
 0x264   : > { %v5734_v18 = vsel %vm1378_vm1, %v5399_v40, %v1329_v51  ;;  %v5736_v46 = vpop.f32.mrb[82].mxu1 }
 0x265   : > { %v5738_v1 = vpop.f32.mrb[83].mxu1 }
 0x267   : > { %v1333_v44 = vpop.permute.xlu1 %1332 }
 0x268   : > { %v5742_v35 = vsel %vm1378_vm1, %v5403_v38, %v1333_v44 }
 0x26b   : > { %v1337_v5 = vpop.permute.xlu1 %1336 }
 0x26c   : > { %v5746_v2 = vsel %vm1378_vm1, %v5407_v36, %v1337_v5  ;;  %v5748_v42 = vpop.f32.mrb[84].mxu1 }
 0x26d   : > { %6919 = vst [vmem:[#allocation71_spill] sm:$0xff] %v5746_v2  ;;  %v5750_v48 = vpop.f32.mrb[85].mxu1 }
 0x26f   : > { %v1341_v40 = vpop.permute.xlu1 %1340 }
 0x270   : > { %v5754_v51 = vsel %vm1378_vm1, %v5413_v32, %v1341_v40 }
 0x271   : > { %6920 = vst [vmem:[#allocation72_spill] sm:$0xff] %v5754_v51 }
 0x274   : > { %v5756_v3 = vpop.f32.mrb[86].mxu1 }
 0x275   : > { %v5758_v0 = vpop.f32.mrb[87].mxu1 }
 0x27c   : > { %v5760_v38 = vpop.f32.mrb[88].mxu1 }
 0x27d   : > { %v5762_v44 = vpop.f32.mrb[89].mxu1 }
 0x284   : > { %v5764_v26 = vpop.f32.mrb[90].mxu1 }
 0x285   : > { %6921 = vst [vmem:[#allocation73_spill] sm:$0xff] %v5764_v26  ;;  %v5766_v5 = vpop.f32.mrb[91].mxu1 }
 0x286   : > { %6922 = vst [vmem:[#allocation74_spill] sm:$0xff] %v5766_v5 }
 0x28c   : > { %v5768_v36 = vpop.f32.mrb[92].mxu1 }
 0x28d   : > { %6923 = vst [vmem:[#allocation75_spill] sm:$0xff] %v5768_v36  ;;  %v5770_v28 = vpop.f32.mrb[93].mxu1 }
 0x28e   : > { %6924 = vst [vmem:[#allocation76_spill] sm:$0xff] %v5770_v28 }
 0x28f   : > { %v4400_v61 = vpop.f32.mrb[64].mxu0 }
 0x290   : > { %2192 = vrot.lane.b32.xlu1 %v4400_v61, %s4700_s20  ;;  %v1999_v32 = vpop.f32.mrb[65].mxu0 }
 0x291   : > { %2190 = vrot.lane.b32.xlu0 %v1999_v32, %s4700_s20 }
 0x294   : > { %v5774_v40 = vpop.f32.mrb[94].mxu1 }
 0x295   : > { %6925 = vst [vmem:[#allocation77_spill] sm:$0xff] %v5774_v40  ;;  %v5776_v51 = vpop.f32.mrb[95].mxu1 }
 0x296   : > { %6926 = vst [vmem:[#allocation78_spill] sm:$0xff] %v5776_v51 }
 0x297   : > { %v4403_v41 = vpop.f32.mrb[66].mxu0 }
 0x298   : > { %2196 = vrot.lane.b32.xlu1 %v4403_v41, %s4700_s20  ;;  %v2009_v26 = vpop.f32.mrb[67].mxu0 }
 0x299   : > { %2194 = vrot.lane.b32.xlu0 %v2009_v26, %s4700_s20 }
 0x29f   : > { %v4406_v5 = vpop.f32.mrb[68].mxu0 }
 0x2a0   : > { %2200 = vrot.lane.b32.xlu1 %v4406_v5, %s4700_s20  ;;  %v2019_v28 = vpop.f32.mrb[69].mxu0 }
 0x2a1   : > { %2198 = vrot.lane.b32.xlu0 %v2019_v28, %s4700_s20 }
 0x2a7   : > { %v4409_v61 = vpop.f32.mrb[70].mxu0 }
 0x2a8   : > { %2204 = vrot.lane.b32.xlu1 %v4409_v61, %s4700_s20  ;;  %v2029_v32 = vpop.f32.mrb[71].mxu0 }
 0x2a9   : > { %2202 = vrot.lane.b32.xlu0 %v2029_v32, %s4700_s20 }
 0x2af   : > { %v4412_v40 = vpop.f32.mrb[72].mxu0 }
 0x2b0   : > { %2208 = vrot.lane.b32.xlu1 %v4412_v40, %s4700_s20  ;;  %v2039_v51 = vpop.f32.mrb[73].mxu0 }
 0x2b1   : > { %2206 = vrot.lane.b32.xlu0 %v2039_v51, %s4700_s20 }
 0x2b7   : > { %v4415_v41 = vpop.f32.mrb[74].mxu0 }
 0x2b8   : > { %2212 = vrot.lane.b32.xlu1 %v4415_v41, %s4700_s20  ;;  %v2049_v26 = vpop.f32.mrb[75].mxu0 }
 0x2b9   : > { %2210 = vrot.lane.b32.xlu0 %v2049_v26, %s4700_s20 }
 0x2bf   : > { %v4418_v5 = vpop.f32.mrb[76].mxu0 }
 0x2c0   : > { %2216 = vrot.lane.b32.xlu1 %v4418_v5, %s4700_s20  ;;  %v2059_v28 = vpop.f32.mrb[77].mxu0 }
 0x2c1   : > { %2214 = vrot.lane.b32.xlu0 %v2059_v28, %s4700_s20 }
 0x2c7   : > { %v4421_v61 = vpop.f32.mrb[78].mxu0 }
 0x2c8   : > { %2220 = vrot.lane.b32.xlu1 %v4421_v61, %s4700_s20  ;;  %v2069_v32 = vpop.f32.mrb[79].mxu0 }
 0x2c9   : > { %2218 = vrot.lane.b32.xlu0 %v2069_v32, %s4700_s20 }
 0x2cf   : > { %v4424_v40 = vpop.f32.mrb[80].mxu0 }
 0x2d0   : > { %2224 = vrot.lane.b32.xlu1 %v4424_v40, %s4700_s20  ;;  %v2079_v51 = vpop.f32.mrb[81].mxu0 }
 0x2d1   : > { %2222 = vrot.lane.b32.xlu0 %v2079_v51, %s4700_s20 }
 0x2d7   : > { %v4427_v41 = vpop.f32.mrb[96].mxu1 }
 0x2d8   : > { %v2089_v26 = vpop.f32.mrb[97].mxu1  ;;  %2228 = vrot.lane.b32.xlu1 %v4427_v41, %s4700_s20 }
 0x2d9   : > { %2226 = vrot.lane.b32.xlu0 %v2089_v26, %s4700_s20 }
 0x2df   : > { %v4430_v5 = vpop.f32.mrb[98].mxu1 }
 0x2e0   : > { %v2099_v28 = vpop.f32.mrb[99].mxu1  ;;  %2232 = vrot.lane.b32.xlu1 %v4430_v5, %s4700_s20  ;;  %v1380_v5 = vsel %vm1378_vm1, %v5355_v52, %v5666_v63 }
 0x2e1   : > { %2230 = vrot.lane.b32.xlu0 %v2099_v28, %s4700_s20  ;;  %v1379_v28 = vsel %vm1378_vm1, %v5357_v56, %v5581_v19 }
 0x2e2   : > { %v1412_v52 = vsel %vm1411_vm2, %v1379_v28, 0.0 }
 0x2e7   : > { %v4433_v61 = vpop.f32.mrb[100].mxu1 }
 0x2e8   : > { %v2109_v32 = vpop.f32.mrb[101].mxu1  ;;  %2236 = vrot.lane.b32.xlu1 %v4433_v61, %s4700_s20  ;;  %v5810_v61 = vpop.permute.xlu1 %1344 }
 0x2e9   : > { %2234 = vrot.lane.b32.xlu0 %v2109_v32, %s4700_s20  ;;  %6927 = vst [vmem:[#allocation79_spill] sm:$0xff] %v5810_v61  ;;  %v5812_v32 = vpop.permute.xlu0 %1342 }
 0x2ea   : > { %6928 = vst [vmem:[#allocation80_spill] sm:$0xff] %v5812_v32 }
 0x2ef   : > { %v4436_v40 = vpop.f32.mrb[102].mxu1 }
 0x2f0   : > { %v2119_v51 = vpop.f32.mrb[103].mxu1  ;;  %2240 = vrot.lane.b32.xlu1 %v4436_v40, %s4700_s20 }
 0x2f1   : > { %2238 = vrot.lane.b32.xlu0 %v2119_v51, %s4700_s20  ;;  %v1413_v51 = vsel %vm1411_vm2, %v1380_v5, 0.0 }
 0x2f7   : > { %v4439_v41 = vpop.f32.mrb[104].mxu1 }
 0x2f8   : > { %v2129_v26 = vpop.f32.mrb[105].mxu1  ;;  %2244 = vrot.lane.b32.xlu1 %v4439_v41, %s4700_s20  ;;  %v5819_v41 = vld [vmem:[%s6785_s3] ss:$0 sm:$0xff] }
 0x2f9   : > { %2242 = vrot.lane.b32.xlu0 %v2129_v26, %s4700_s20  ;;  %v1451_v19 = vadd.f32 %v5819_v41, %v1413_v51  ;;  %v1450_v5 = vadd.f32 %v5819_v41, %v1412_v52 }
 0x2ff   : > { %v4442_v40 = vpop.f32.mrb[106].mxu1 }
 0x300   : > { %v2139_v36 = vpop.f32.mrb[107].mxu1  ;;  %2248 = vrot.lane.b32.xlu1 %v4442_v40, %s4700_s20 }
 0x301   : > { %2246 = vrot.lane.b32.xlu0 %v2139_v36, %s4700_s20 }
 0x302   : > { %v2193_v56 = vpop.permute.xlu1 %2192 }
 0x303   : > { %v2287_v63 = vsel %vm1378_vm1, %v5615_v29, %v2193_v56  ;;  %v2191_v26 = vpop.permute.xlu0 %2190  ;;  %v1415_v29 = vsel %vm1411_vm2, %v5674_v6, 0.0 }
 0x304   : > { %v2319_v40 = vsel %vm1411_vm2, %v2287_v63, 0.0  ;;  %v2286_v32 = vsel %vm1378_vm1, %v5618_v31, %v2191_v26  ;;  %v1414_v31 = vsel %vm1411_vm2, %v5588_v14, 0.0 }
 0x305   : > { %v2351_v61 = vadd.f32 %v2319_v40, %v1451_v19  ;;  %v2318_v2 = vsel %vm1411_vm2, %v2286_v32, 0.0  ;;  %v1453_v32 = vadd.f32 %v5819_v41, %v1415_v29  ;;  %v1452_v6 = vadd.f32 %v5819_v41, %v1414_v31 }
 0x306   : > { %v2350_v28 = vadd.f32 %v2318_v2, %v1450_v5  ;;  %v1417_v5 = vsel %vm1411_vm2, %v5682_v34, 0.0 }
 0x307   : > { %2384 = vst [vmem:[%s6786_s4 + $0x8] sm:$0xff] %v2351_v61  ;;  %v4445_v36 = vpop.f32.mrb[108].mxu1 }
 0x308   : > { %2383 = vst [vmem:[%s6786_s4] sm:$0xff] %v2350_v28  ;;  %v2149_v51 = vpop.f32.mrb[109].mxu1  ;;  %2252 = vrot.lane.b32.xlu1 %v4445_v36, %s4700_s20 }
 0x309   : > { %2250 = vrot.lane.b32.xlu0 %v2149_v51, %s4700_s20 }
 0x30a   : > { %v2197_v2 = vpop.permute.xlu1 %2196 }
 0x30b   : > { %v2289_v61 = vsel %vm1378_vm1, %v5629_v23, %v2197_v2  ;;  %v2195_v52 = vpop.permute.xlu0 %2194  ;;  %v1416_v23 = vsel %vm1411_vm2, %v5593_v12, 0.0  ;;  %v1419_v12 = vsel %vm1411_vm2, %v5686_v59, 0.0 }
 0x30c   : > { %v2321_v56 = vsel %vm1411_vm2, %v2289_v61, 0.0  ;;  %v2288_v19 = vsel %vm1378_vm1, %v5632_v24, %v2195_v52  ;;  %v1455_v24 = vadd.f32 %v5819_v41, %v1417_v5  ;;  %v1454_v29 = vadd.f32 %v5819_v41, %v1416_v23 }
 0x30d   : > { %v2353_v63 = vadd.f32 %v2321_v56, %v1453_v32  ;;  %v2320_v26 = vsel %vm1411_vm2, %v2288_v19, 0.0 }
 0x30e   : > { %v2352_v14 = vadd.f32 %v2320_v26, %v1452_v6 }
 0x30f   : > { %2386 = vst [vmem:[%s6786_s4 + $0x18] sm:$0xff] %v2353_v63 }
 0x310   : > { %2385 = vst [vmem:[%s6786_s4 + $0x10] sm:$0xff] %v2352_v14 }
 0x312   : > { %v2201_v40 = vpop.permute.xlu1 %2200 }
 0x313   : > { %v2291_v28 = vsel %vm1378_vm1, %v5643_v17, %v2201_v40  ;;  %v2199_v36 = vpop.permute.xlu0 %2198  ;;  %v1418_v17 = vsel %vm1411_vm2, %v5598_v7, 0.0  ;;  %v1421_v7 = vsel %vm1411_vm2, %v5694_v22, 0.0 }
 0x314   : > { %v2323_v51 = vsel %vm1411_vm2, %v2291_v28, 0.0  ;;  %v2290_v34 = vsel %vm1378_vm1, %v5646_v16, %v2199_v36  ;;  %v1457_v16 = vadd.f32 %v5819_v41, %v1419_v12  ;;  %v1456_v56 = vadd.f32 %v5819_v41, %v1418_v17 }
 0x315   : > { %v2355_v31 = vadd.f32 %v2323_v51, %v1455_v24  ;;  %v2322_v2 = vsel %vm1411_vm2, %v2290_v34, 0.0 }
 0x316   : > { %v2354_v32 = vadd.f32 %v2322_v2, %v1454_v29 }
 0x317   : > { %2388 = vst [vmem:[%s6786_s4 + $0x28] sm:$0xff] %v2355_v31 }
 0x318   : > { %2387 = vst [vmem:[%s6786_s4 + $0x20] sm:$0xff] %v2354_v32 }
 0x31a   : > { %v2205_v61 = vpop.permute.xlu1 %2204 }
 0x31b   : > { %v2293_v52 = vsel %vm1378_vm1, %v5657_v37, %v2205_v61  ;;  %v2203_v6 = vpop.permute.xlu0 %2202  ;;  %v1420_v37 = vsel %vm1411_vm2, %v5603_v4, 0.0  ;;  %v1423_v4 = vsel %vm1411_vm2, %v5698_v15, 0.0 }
 0x31c   : > { %v2325_v19 = vsel %vm1411_vm2, %v2293_v52, 0.0  ;;  %v2292_v59 = vsel %vm1378_vm1, %v5660_v11, %v2203_v6  ;;  %v1459_v11 = vadd.f32 %v5819_v41, %v1421_v7  ;;  %v1458_v24 = vadd.f32 %v5819_v41, %v1420_v37 }
 0x31d   : > { %v2357_v63 = vadd.f32 %v2325_v19, %v1457_v16  ;;  %v2324_v26 = vsel %vm1411_vm2, %v2292_v59, 0.0 }
 0x31e   : > { %v2356_v14 = vadd.f32 %v2324_v26, %v1456_v56 }
 0x31f   : > { %2390 = vst [vmem:[%s6786_s4 + $0x38] sm:$0xff] %v2357_v63 }
 0x320   : > { %2389 = vst [vmem:[%s6786_s4 + $0x30] sm:$0xff] %v2356_v14 }
 0x322   : > { %v2209_v5 = vpop.permute.xlu1 %2208 }
 0x323   : > { %v2295_v23 = vsel %vm1378_vm1, %v5676_v55, %v2209_v5  ;;  %v2207_v40 = vpop.permute.xlu0 %2206  ;;  %v1422_v55 = vsel %vm1411_vm2, %v5608_v8, 0.0  ;;  %v1425_v8 = vsel %vm1411_vm2, %v5706_v10, 0.0 }
 0x324   : > { %v2327_v28 = vsel %vm1411_vm2, %v2295_v23, 0.0  ;;  %v2294_v22 = vsel %vm1378_vm1, %v5678_v27, %v2207_v40  ;;  %v1461_v27 = vadd.f32 %v5819_v41, %v1423_v4  ;;  %v1460_v32 = vadd.f32 %v5819_v41, %v1422_v55 }
 0x325   : > { %v2359_v36 = vadd.f32 %v2327_v28, %v1459_v11  ;;  %v2326_v29 = vsel %vm1411_vm2, %v2294_v22, 0.0 }
 0x326   : > { %v2358_v51 = vadd.f32 %v2326_v29, %v1458_v24 }
 0x327   : > { %2392 = vst [vmem:[%s6786_s4 + $0x48] sm:$0xff] %v2359_v36 }
 0x328   : > { %2391 = vst [vmem:[%s6786_s4 + $0x40] sm:$0xff] %v2358_v51 }
 0x32a   : > { %v2213_v34 = vpop.permute.xlu1 %2212 }
 0x32b   : > { %v2297_v31 = vsel %vm1378_vm1, %v5688_v30, %v2213_v34  ;;  %v2211_v2 = vpop.permute.xlu0 %2210  ;;  %v1424_v30 = vsel %vm1411_vm2, %v5613_v9, 0.0  ;;  %v1427_v9 = vsel %vm1411_vm2, %v5710_v50, 0.0 }
 0x32c   : > { %v2329_v12 = vsel %vm1411_vm2, %v2297_v31, 0.0  ;;  %v2296_v15 = vsel %vm1378_vm1, %v5690_v33, %v2211_v2  ;;  %v1463_v33 = vadd.f32 %v5819_v41, %v1425_v8  ;;  %v1462_v19 = vadd.f32 %v5819_v41, %v1424_v30 }
 0x32d   : > { %v2361_v17 = vadd.f32 %v2329_v12, %v1461_v27  ;;  %v2328_v61 = vsel %vm1411_vm2, %v2296_v15, 0.0 }
 0x32e   : > { %v2360_v16 = vadd.f32 %v2328_v61, %v1460_v32 }
 0x32f   : > { %2394 = vst [vmem:[%s6786_s4 + $0x58] sm:$0xff] %v2361_v17 }
 0x330   : > { %2393 = vst [vmem:[%s6786_s4 + $0x50] sm:$0xff] %v2360_v16 }
 0x332   : > { %v2217_v52 = vpop.permute.xlu1 %2216 }
 0x333   : > { %v2299_v6 = vsel %vm1378_vm1, %v5700_v54, %v2217_v52  ;;  %v2215_v56 = vpop.permute.xlu0 %2214  ;;  %v1426_v54 = vsel %vm1411_vm2, %v5622_v58, 0.0  ;;  %v1429_v58 = vsel %vm1411_vm2, %v5718_v39, 0.0 }
 0x334   : > { %v2331_v59 = vsel %vm1411_vm2, %v2299_v6, 0.0  ;;  %v2298_v10 = vsel %vm1378_vm1, %v5702_v20, %v2215_v56  ;;  %v1465_v20 = vadd.f32 %v5819_v41, %v1427_v9  ;;  %v1464_v11 = vadd.f32 %v5819_v41, %v1426_v54 }
 0x335   : > { %v2363_v63 = vadd.f32 %v2331_v59, %v1463_v33  ;;  %v2330_v26 = vsel %vm1411_vm2, %v2298_v10, 0.0 }
 0x336   : > { %v2362_v14 = vadd.f32 %v2330_v26, %v1462_v19 }
 0x337   : > { %2396 = vst [vmem:[%s6786_s4 + $0x68] sm:$0xff] %v2363_v63 }
 0x338   : > { %2395 = vst [vmem:[%s6786_s4 + $0x60] sm:$0xff] %v2362_v14 }
 0x33a   : > { %v2221_v7 = vpop.permute.xlu1 %2220 }
 0x33b   : > { %v2301_v37 = vsel %vm1378_vm1, %v5712_v53, %v2221_v7  ;;  %v2219_v5 = vpop.permute.xlu0 %2218  ;;  %v1428_v53 = vsel %vm1411_vm2, %v5627_v57, 0.0  ;;  %v1431_v57 = vsel %vm1411_vm2, %v5722_v25, 0.0 }
 0x33c   : > { %v2333_v23 = vsel %vm1411_vm2, %v2301_v37, 0.0  ;;  %v2300_v50 = vsel %vm1378_vm1, %v5714_v13, %v2219_v5  ;;  %v1467_v13 = vadd.f32 %v5819_v41, %v1429_v58  ;;  %v1466_v51 = vadd.f32 %v5819_v41, %v1428_v53 }
 0x33d   : > { %v2365_v40 = vadd.f32 %v2333_v23, %v1465_v20  ;;  %v2332_v24 = vsel %vm1411_vm2, %v2300_v50, 0.0 }
 0x33e   : > { %v2364_v28 = vadd.f32 %v2332_v24, %v1464_v11 }
 0x33f   : > { %2398 = vst [vmem:[%s6786_s4 + $0x78] sm:$0xff] %v2365_v40 }
 0x340   : > { %2397 = vst [vmem:[%s6786_s4 + $0x70] sm:$0xff] %v2364_v28 }
 0x342   : > { %v2225_v22 = vpop.permute.xlu1 %2224 }
 0x343   : > { %v2303_v36 = vsel %vm1378_vm1, %v5724_v62, %v2225_v22  ;;  %v2223_v29 = vpop.permute.xlu0 %2222  ;;  %v1430_v62 = vsel %vm1411_vm2, %v5636_v49, 0.0  ;;  %v1433_v49 = vsel %vm1411_vm2, %v5730_v21, 0.0 }
 0x344   : > { %v2335_v4 = vsel %vm1411_vm2, %v2303_v36, 0.0  ;;  %v2302_v39 = vsel %vm1378_vm1, %v5726_v60, %v2223_v29  ;;  %v1469_v60 = vadd.f32 %v5819_v41, %v1431_v57  ;;  %v1468_v12 = vadd.f32 %v5819_v41, %v1430_v62  ;;  %v6933_v62 = vld [vmem:[#allocation72_spill] sm:$0xff] }
 0x345   : > { %v2367_v55 = vadd.f32 %v2335_v4, %v1467_v13  ;;  %v2334_v34 = vsel %vm1411_vm2, %v2302_v39, 0.0  ;;  %v6931_v13 = vld [vmem:[#allocation73_spill] sm:$0xff]  ;;  %v6932_v39 = vld [vmem:[#allocation74_spill] sm:$0xff] }
 0x346   : > { %v2366_v27 = vadd.f32 %v2334_v34, %v1466_v51 }
 0x347   : > { %2400 = vst [vmem:[%s6786_s4 + $0x88] sm:$0xff] %v2367_v55 }
 0x348   : > { %2399 = vst [vmem:[%s6786_s4 + $0x80] sm:$0xff] %v2366_v27 }
 0x34a   : > { %v2229_v31 = vpop.permute.xlu1 %2228 }
 0x34b   : > { %v2305_v2 = vsel %vm1378_vm1, %v5736_v46, %v2229_v31  ;;  %v2227_v32 = vpop.permute.xlu0 %2226  ;;  %v1432_v46 = vsel %vm1411_vm2, %v5641_v47, 0.0  ;;  %v1435_v47 = vsel %vm1411_vm2, %v5734_v18, 0.0  ;;  %v1441_v31 = vsel %vm1411_vm2, %v6933_v62, 0.0 }
 0x34c   : > { %v2337_v15 = vsel %vm1411_vm2, %v2305_v2, 0.0  ;;  %v2304_v25 = vsel %vm1378_vm1, %v5738_v1, %v2227_v32  ;;  %v1471_v1 = vadd.f32 %v5819_v41, %v1433_v49  ;;  %v1470_v33 = vadd.f32 %v5819_v41, %v1432_v46  ;;  %v6936_v49 = vld [vmem:[#allocation76_spill] sm:$0xff] }
 0x34d   : > { %v2369_v17 = vadd.f32 %v2337_v15, %v1469_v60  ;;  %v2336_v61 = vsel %vm1411_vm2, %v2304_v25, 0.0  ;;  %v6934_v60 = vld [vmem:[#allocation70_spill] sm:$0xff]  ;;  %v6935_v15 = vld [vmem:[#allocation75_spill] sm:$0xff] }
 0x34e   : > { %v2368_v16 = vadd.f32 %v2336_v61, %v1468_v12  ;;  %v1440_v2 = vsel %vm1411_vm2, %v6934_v60, 0.0  ;;  %v1479_v12 = vadd.f32 %v5819_v41, %v1441_v31 }
 0x34f   : > { %2402 = vst [vmem:[%s6786_s4 + $0x98] sm:$0xff] %v2369_v17  ;;  %v1478_v61 = vadd.f32 %v5819_v41, %v1440_v2 }
 0x350   : > { %2401 = vst [vmem:[%s6786_s4 + $0x90] sm:$0xff] %v2368_v16 }
 0x352   : > { %v2233_v8 = vpop.permute.xlu1 %2232 }
 0x353   : > { %v2307_v30 = vsel %vm1378_vm1, %v5748_v42, %v2233_v8  ;;  %v2231_v52 = vpop.permute.xlu0 %2230  ;;  %v1434_v42 = vsel %vm1411_vm2, %v5650_v45, 0.0  ;;  %v1437_v45 = vsel %vm1411_vm2, %v5742_v35, 0.0  ;;  %v6937_v8 = vld [vmem:[#allocation79_spill] sm:$0xff] }
 0x354   : > { %v2339_v6 = vsel %vm1411_vm2, %v2307_v30, 0.0  ;;  %v2306_v21 = vsel %vm1378_vm1, %v5750_v48, %v2231_v52  ;;  %v1473_v48 = vadd.f32 %v5819_v41, %v1435_v47  ;;  %v1472_v14 = vadd.f32 %v5819_v41, %v1434_v42 }
 0x355   : > { %v2371_v56 = vadd.f32 %v2339_v6, %v1471_v1  ;;  %v2338_v19 = vsel %vm1411_vm2, %v2306_v21, 0.0  ;;  %v6938_v1 = vld [vmem:[#allocation67_spill] sm:$0xff]  ;;  %v6939_v6 = vld [vmem:[#allocation80_spill] sm:$0xff] }
 0x356   : > { %v2370_v59 = vadd.f32 %v2338_v19, %v1470_v33  ;;  %v1410_v30 = vsel %vm1378_vm1, %v6938_v1, %v6937_v8  ;;  %v6940_v21 = vld [vmem:[#allocation68_spill] sm:$0xff] }
 0x357   : > { %2404 = vst [vmem:[%s6786_s4 + $0xa8] sm:$0xff] %v2371_v56  ;;  %v1409_v56 = vsel %vm1378_vm1, %v6940_v21, %v6939_v6 }
 0x358   : > { %2403 = vst [vmem:[%s6786_s4 + $0xa0] sm:$0xff] %v2370_v59  ;;  %v1443_v59 = vsel %vm1411_vm2, %v1410_v30, 0.0  ;;  %v1442_v47 = vsel %vm1411_vm2, %v1409_v56, 0.0 }
 0x35a   : > { %v2237_v10 = vpop.permute.xlu1 %2236 }
 0x35b   : > { %v2309_v63 = vsel %vm1378_vm1, %v5756_v3, %v2237_v10  ;;  %v2235_v26 = vpop.permute.xlu0 %2234  ;;  %v1436_v3 = vsel %vm1411_vm2, %v5655_v43, 0.0  ;;  %v6929_v43 = vld [vmem:[#allocation71_spill] sm:$0xff]  ;;  %v1481_v10 = vadd.f32 %v5819_v41, %v1443_v59 }
 0x35c   : > { %v2341_v9 = vsel %vm1411_vm2, %v2309_v63, 0.0  ;;  %v2308_v18 = vsel %vm1378_vm1, %v5758_v0, %v2235_v26  ;;  %v1475_v0 = vadd.f32 %v5819_v41, %v1437_v45  ;;  %v1474_v23 = vadd.f32 %v5819_v41, %v1436_v3 }
 0x35d   : > { %v2373_v54 = vadd.f32 %v2341_v9, %v1473_v48  ;;  %v2340_v7 = vsel %vm1411_vm2, %v2308_v18, 0.0  ;;  %v1439_v58 = vsel %vm1411_vm2, %v6929_v43, 0.0  ;;  %v6941_v48 = vld [vmem:[#allocation77_spill] sm:$0xff]  ;;  %v6942_v18 = vld [vmem:[#allocation78_spill] sm:$0xff] }
 0x35e   : > { %v2372_v20 = vadd.f32 %v2340_v7, %v1472_v14  ;;  %v1480_v14 = vadd.f32 %v5819_v41, %v1442_v47 }
 0x35f   : > { %2406 = vst [vmem:[%s6786_s4 + $0xb8] sm:$0xff] %v2373_v54 }
 0x360   : > { %2405 = vst [vmem:[%s6786_s4 + $0xb0] sm:$0xff] %v2372_v20 }
 0x362   : > { %v2241_v37 = vpop.permute.xlu1 %2240 }
 0x363   : > { %v2311_v5 = vsel %vm1378_vm1, %v5760_v38, %v2241_v37  ;;  %v2239_v11 = vpop.permute.xlu0 %2238  ;;  %v6930_v38 = vld [vmem:[#allocation69_spill] sm:$0xff] }
 0x364   : > { %v2343_v50 = vsel %vm1411_vm2, %v2311_v5, 0.0  ;;  %v2310_v35 = vsel %vm1378_vm1, %v5762_v44, %v2239_v11  ;;  %v1438_v53 = vsel %vm1411_vm2, %v6930_v38, 0.0  ;;  %v1477_v44 = vadd.f32 %v5819_v41, %v1439_v58 }
 0x365   : > { %v2375_v40 = vadd.f32 %v2343_v50, %v1475_v0  ;;  %v2342_v24 = vsel %vm1411_vm2, %v2310_v35, 0.0  ;;  %v1476_v51 = vadd.f32 %v5819_v41, %v1438_v53 }
 0x366   : > { %v2374_v28 = vadd.f32 %v2342_v24, %v1474_v23 }
 0x367   : > { %2408 = vst [vmem:[%s6786_s4 + $0xc8] sm:$0xff] %v2375_v40 }
 0x368   : > { %2407 = vst [vmem:[%s6786_s4 + $0xc0] sm:$0xff] %v2374_v28 }
 0x36a   : > { %v2245_v22 = vpop.permute.xlu1 %2244 }
 0x36b   : > { %v2313_v36 = vsel %vm1378_vm1, %v6931_v13, %v2245_v22  ;;  %v2243_v29 = vpop.permute.xlu0 %2242 }
 0x36c   : > { %v2345_v4 = vsel %vm1411_vm2, %v2313_v36, 0.0  ;;  %v2312_v55 = vsel %vm1378_vm1, %v6932_v39, %v2243_v29 }
 0x36d   : > { %v2377_v34 = vadd.f32 %v2345_v4, %v1477_v44  ;;  %v2344_v27 = vsel %vm1411_vm2, %v2312_v55, 0.0 }
 0x36e   : > { %v2376_v57 = vadd.f32 %v2344_v27, %v1476_v51 }
 0x36f   : > { %2410 = vst [vmem:[%s6786_s4 + $0xd8] sm:$0xff] %v2377_v34 }
 0x370   : > { %2409 = vst [vmem:[%s6786_s4 + $0xd0] sm:$0xff] %v2376_v57 }
 0x372   : > { %v2249_v32 = vpop.permute.xlu1 %2248 }
 0x373   : > { %v2315_v25 = vsel %vm1378_vm1, %v6935_v15, %v2249_v32  ;;  %v2247_v17 = vpop.permute.xlu0 %2246 }
 0x374   : > { %v2347_v16 = vsel %vm1411_vm2, %v2315_v25, 0.0  ;;  %v2314_v46 = vsel %vm1378_vm1, %v6936_v49, %v2247_v17 }
 0x375   : > { %v2379_v52 = vadd.f32 %v2347_v16, %v1479_v12  ;;  %v2346_v33 = vsel %vm1411_vm2, %v2314_v46, 0.0 }
 0x376   : > { %v2378_v19 = vadd.f32 %v2346_v33, %v1478_v61 }
 0x377   : > { %2412 = vst [vmem:[%s6786_s4 + $0xe8] sm:$0xff] %v2379_v52 }
 0x378   : > { %2411 = vst [vmem:[%s6786_s4 + $0xe0] sm:$0xff] %v2378_v19 }
 0x37a   : > { %v2253_v42 = vpop.permute.xlu1 %2252 }
 0x37b   : > { %v2317_v63 = vsel %vm1378_vm1, %v6941_v48, %v2253_v42  ;;  %v2251_v26 = vpop.permute.xlu0 %2250 }
 0x37c   : > { %v2349_v9 = vsel %vm1411_vm2, %v2317_v63, 0.0  ;;  %v2316_v54 = vsel %vm1378_vm1, %v6942_v18, %v2251_v26 }
 0x37d   : > { %v2381_v7 = vadd.f32 %v2349_v9, %v1481_v10  ;;  %v2348_v20 = vsel %vm1411_vm2, %v2316_v54, 0.0 }
 0x37e   : > { %v2380_v45 = vadd.f32 %v2348_v20, %v1480_v14 }
 0x37f   : > { %2414 = vst [vmem:[%s6786_s4 + $0xf8] sm:$0xff] %v2381_v7 }
 0x380   : > { %2413 = vst [vmem:[%s6786_s4 + $0xf0] sm:$0xff] %v2380_v45 }
 0x381 PF: > { %p3980_p5 = scmp.ne.s32.totalorder %s4688_s15, 1 }
 0x382   : > { %v2455_v41 = vld [vmem:[#allocation2 + $0x100] sm:$0xff] (!%p3980_p5)  ;;  %v2456_v3 = vld [vmem:[#allocation2 + $0x108] sm:$0xff] (!%p3980_p5)  ;;  %v2457_v37 = vld [vmem:[#allocation2 + $0x110] sm:$0xff] (!%p3980_p5)  ;;  %v4701_v5 = vmov (!%p3980_p5), 0.0|0.0   ;;  %vm2842_vm3 = vcmask (!%p3980_p5), 64512   ;;  %s4702_s26 = smov (!%p3980_p5), 120  }
 0x383   : > { %2418 = sbr.rel (%p3980_p5) target bundleno = 1752 (0x6d8), region = 44  ;;  %v6943_v0 = vld [vmem:[#allocation4_spill] sm:$0xff] (!%p3980_p5)  ;;  %4594 = vmatprep.subr.bf16.mxu0 (!%p3980_p5), %v4701_v5  ;;  %v4595_v11 = vpack.c.bf16 (!%p3980_p5), %v2456_v3, %v2455_v41  ;;  %v2458_v23 = vld [vmem:[#allocation2 + $0x118] sm:$0xff] (!%p3980_p5)  ;;  %v2459_v35 = vld [vmem:[#allocation2 + $0x120] sm:$0xff] (!%p3980_p5)  ;;  %vm3645_vm4 = vcmask (!%p3980_p5), 130048   ;;  %vm3678_vm5 = vcmask (!%p3980_p5), 261120  }
 0x384   : > { %2551 = vmatprep.mubr.f32.mxu0 (!%p3980_p5), %v6943_v0  ;;  %v4598_v50 = vpack.c.bf16 (!%p3980_p5), %v2458_v23, %v2457_v37  ;;  %v2460_v40 = vld [vmem:[#allocation2 + $0x128] sm:$0xff] (!%p3980_p5)  ;;  %v2461_v28 = vld [vmem:[#allocation2 + $0x130] sm:$0xff] (!%p3980_p5)  ;;  %v2462_v43 = vld [vmem:[#allocation2 + $0x138] sm:$0xff] (!%p3980_p5) }
 0x385   : > { %4596 = vmatpush1.bf16.msra.mxu0 (!%p3980_p5), %v4595_v11  ;;  %v4601_v24 = vpack.c.bf16 (!%p3980_p5), %v2460_v40, %v2459_v35  ;;  %v4604_v58 = vpack.c.bf16 (!%p3980_p5), %v2462_v43, %v2461_v28  ;;  %v2463_v38 = vld [vmem:[#allocation2 + $0x140] sm:$0xff] (!%p3980_p5)  ;;  %v2464_v53 = vld [vmem:[#allocation2 + $0x148] sm:$0xff] (!%p3980_p5)  ;;  %v2465_v44 = vld [vmem:[#allocation2 + $0x150] sm:$0xff] (!%p3980_p5) }
 0x386   : > { %4597 = vmatprep.subr.bf16.mxu0 (!%p3980_p5), %v4701_v5  ;;  %v4607_v22 = vpack.c.bf16 (!%p3980_p5), %v2464_v53, %v2463_v38  ;;  %v2466_v13 = vld [vmem:[#allocation2 + $0x158] sm:$0xff] (!%p3980_p5)  ;;  %v2467_v29 = vld [vmem:[#allocation2 + $0x160] sm:$0xff] (!%p3980_p5)  ;;  %v2468_v51 = vld [vmem:[#allocation2 + $0x168] sm:$0xff] (!%p3980_p5) }
 0x387   : > { %v4610_v36 = vpack.c.bf16 (!%p3980_p5), %v2466_v13, %v2465_v44  ;;  %v4613_v4 = vpack.c.bf16 (!%p3980_p5), %v2468_v51, %v2467_v29  ;;  %v2469_v39 = vld [vmem:[#allocation2 + $0x170] sm:$0xff] (!%p3980_p5)  ;;  %v2470_v55 = vld [vmem:[#allocation2 + $0x178] sm:$0xff] (!%p3980_p5)  ;;  %v2471_v27 = vld [vmem:[#allocation2 + $0x180] sm:$0xff] (!%p3980_p5) }
 0x388   : > { %v4616_v34 = vpack.c.bf16 (!%p3980_p5), %v2470_v55, %v2469_v39  ;;  %v2472_v57 = vld [vmem:[#allocation2 + $0x188] sm:$0xff] (!%p3980_p5)  ;;  %v2473_v31 = vld [vmem:[#allocation2 + $0x190] sm:$0xff] (!%p3980_p5)  ;;  %v2474_v60 = vld [vmem:[#allocation2 + $0x198] sm:$0xff] (!%p3980_p5) }
 0x389   : > { %4599 = vmatpush1.bf16.msra.mxu0 (!%p3980_p5), %v4598_v50  ;;  %v4619_v62 = vpack.c.bf16 (!%p3980_p5), %v2472_v57, %v2471_v27  ;;  %v4622_v2 = vpack.c.bf16 (!%p3980_p5), %v2474_v60, %v2473_v31  ;;  %v2475_v32 = vld [vmem:[#allocation2 + $0x1a0] sm:$0xff] (!%p3980_p5)  ;;  %v2476_v12 = vld [vmem:[#allocation2 + $0x1a8] sm:$0xff] (!%p3980_p5)  ;;  %v2477_v25 = vld [vmem:[#allocation2 + $0x1b0] sm:$0xff] (!%p3980_p5) }
 0x38a   : > { %4600 = vmatprep.subr.bf16.mxu0 %v4701_v5  ;;  %v4625_v15 = vpack.c.bf16 %v2476_v12, %v2475_v32  ;;  %v2478_v17 = vld [vmem:[#allocation2 + $0x1b8] sm:$0xff]  ;;  %v2479_v16 = vld [vmem:[#allocation2 + $0x1c0] sm:$0xff]  ;;  %v2480_v49 = vld [vmem:[#allocation2 + $0x1c8] sm:$0xff] }
 0x38b   : > { %v4628_v61 = vpack.c.bf16 %v2478_v17, %v2477_v25  ;;  %v4631_v46 = vpack.c.bf16 %v2480_v49, %v2479_v16  ;;  %v2481_v8 = vld [vmem:[#allocation2 + $0x1d0] sm:$0xff]  ;;  %v2482_v1 = vld [vmem:[#allocation2 + $0x1d8] sm:$0xff]  ;;  %v2483_v52 = vld [vmem:[#allocation2 + $0x1e0] sm:$0xff] }
 0x38c   : > { %v4634_v30 = vpack.c.bf16 %v2482_v1, %v2481_v8  ;;  %v2484_v33 = vld [vmem:[#allocation2 + $0x1e8] sm:$0xff]  ;;  %v2485_v21 = vld [vmem:[#allocation2 + $0x1f0] sm:$0xff]  ;;  %v2486_v56 = vld [vmem:[#allocation2 + $0x1f8] sm:$0xff] }
 0x38d   : > { %4602 = vmatpush1.bf16.msra.mxu0 %v4601_v24  ;;  %v4637_v6 = vpack.c.bf16 %v2484_v33, %v2483_v52  ;;  %v4640_v19 = vpack.c.bf16 %v2486_v56, %v2485_v21  ;;  %v6944_v59 = vld [vmem:[#allocation3_spill] sm:$0xff]  ;;  %v6945_v47 = vld [vmem:[#allocation6_spill] sm:$0xff]  ;;  %v6946_v42 = vld [vmem:[#allocation5_spill] sm:$0xff] }
 0x38e   : > { %4603 = vmatprep.subr.bf16.mxu0 %v4701_v5  ;;  %v6947_v10 = vld [vmem:[#allocation8_spill] sm:$0xff]  ;;  %v6948_v48 = vld [vmem:[#allocation7_spill] sm:$0xff]  ;;  %v6949_v63 = vld [vmem:[#allocation10_spill] sm:$0xff] }
 0x38f   : > { %v6950_v26 = vld [vmem:[#allocation9_spill] sm:$0xff]  ;;  %v6951_v14 = vld [vmem:[#allocation12_spill] sm:$0xff]  ;;  %v6952_v9 = vld [vmem:[#allocation11_spill] sm:$0xff] }
 0x390   : > { %v6953_v18 = vld [vmem:[#allocation14_spill] sm:$0xff]  ;;  %v6954_v54 = vld [vmem:[#allocation13_spill] sm:$0xff]  ;;  %v6955_v7 = vld [vmem:[#allocation16_spill] sm:$0xff] }
 0x391   : > { %4605 = vmatpush1.bf16.msra.mxu0 %v4604_v58  ;;  %v6956_v20 = vld [vmem:[#allocation15_spill] sm:$0xff]  ;;  %v6957_v45 = vld [vmem:[#allocation18_spill] sm:$0xff]  ;;  %v6958_v41 = vld [vmem:[#allocation17_spill] sm:$0xff] }
 0x392   : > { %4606 = vmatprep.subr.bf16.mxu0 %v4701_v5  ;;  %v6959_v3 = vld [vmem:[#allocation20_spill] sm:$0xff]  ;;  %v6960_v37 = vld [vmem:[#allocation19_spill] sm:$0xff]  ;;  %v6961_v0 = vld [vmem:[#allocation22_spill] sm:$0xff] }
 0x393   : > { %v6963_v11 = vld [vmem:[#allocation24_spill] sm:$0xff]  ;;  %v6964_v23 = vld [vmem:[#allocation23_spill] sm:$0xff]  ;;  %v6965_v50 = vld [vmem:[#allocation26_spill] sm:$0xff] }
 0x394   : > { %v6966_v35 = vld [vmem:[#allocation25_spill] sm:$0xff]  ;;  %v6967_v40 = vld [vmem:[#allocation28_spill] sm:$0xff]  ;;  %v6968_v24 = vld [vmem:[#allocation27_spill] sm:$0xff] }
 0x395   : > { %4608 = vmatpush1.bf16.msra.mxu0 %v4607_v22  ;;  %v6969_v28 = vld [vmem:[#allocation30_spill] sm:$0xff]  ;;  %v6970_v43 = vld [vmem:[#allocation29_spill] sm:$0xff]  ;;  %v6971_v58 = vld [vmem:[#allocation32_spill] sm:$0xff] }
 0x396   : > { %4609 = vmatprep.subr.bf16.mxu0 %v4701_v5  ;;  %v6972_v38 = vld [vmem:[#allocation31_spill] sm:$0xff]  ;;  %v6973_v53 = vld [vmem:[#allocation34_spill] sm:$0xff]  ;;  %v6974_v22 = vld [vmem:[#allocation33_spill] sm:$0xff] }
 0x397   : > { %v6975_v44 = vld [vmem:[#allocation36_spill] sm:$0xff]  ;;  %v6976_v13 = vld [vmem:[#allocation35_spill] sm:$0xff]  ;;  %v6978_v29 = vld [vmem:[#allocation37_spill] sm:$0xff] }
 0x398   : > { %v6979_v51 = vld [vmem:[#allocation40_spill] sm:$0xff]  ;;  %v6981_v39 = vld [vmem:[#allocation42_spill] sm:$0xff]  ;;  %v6982_v55 = vld [vmem:[#allocation41_spill] sm:$0xff] }
 0x399   : > { %4611 = vmatpush1.bf16.msra.mxu0 %v4610_v36  ;;  %v6977_v36 = vld [vmem:[#allocation38_spill] sm:$0xff]  ;;  %v6984_v27 = vld [vmem:[#allocation43_spill] sm:$0xff]  ;;  %v6987_v31 = vld [vmem:[#allocation48_spill] sm:$0xff] }
 0x39a   : > { %4612 = vmatprep.subr.bf16.mxu0 %v4701_v5  ;;  %v6985_v57 = vld [vmem:[#allocation46_spill] sm:$0xff]  ;;  %v6988_v60 = vld [vmem:[#allocation47_spill] sm:$0xff]  ;;  %v3981_v32 = vld [vmem:[%s6784_s2 + $0x10] sm:$0xff] }
 0x39b   : > { %4446 = vmatprep.subr.mxu1 %v3981_v32  ;;  %v6990_v12 = vld [vmem:[#allocation49_spill] sm:$0xff]  ;;  %v6992_v25 = vld [vmem:[#allocation51_spill] sm:$0xff]  ;;  %v6993_v17 = vld [vmem:[#allocation54_spill] sm:$0xff] }
 0x39c   : > { %4447 = vmatpush3.msra.mxu1 %v3981_v32  ;;  %v6995_v16 = vld [vmem:[#allocation56_spill] sm:$0xff]  ;;  %v6996_v49 = vld [vmem:[#allocation55_spill] sm:$0xff]  ;;  %v6998_v8 = vld [vmem:[#allocation57_spill] sm:$0xff] }
 0x39d   : > { %4614 = vmatpush1.bf16.msra.mxu0 %v4613_v4  ;;  %v6980_v4 = vld [vmem:[#allocation39_spill] sm:$0xff]  ;;  %4496 = vmatprep.subr.mxu1 %v3981_v32  ;;  %v6999_v1 = vld [vmem:[#allocation60_spill] sm:$0xff]  ;;  %v7001_v52 = vld [vmem:[#allocation62_spill] sm:$0xff] }
 0x39e   : > { %4615 = vmatprep.subr.bf16.mxu0 %v4701_v5  ;;  %v7002_v33 = vld [vmem:[#allocation61_spill] sm:$0xff]  ;;  %v7004_v21 = vld [vmem:[#allocation63_spill] sm:$0xff]  ;;  %v7005_v56 = vld [vmem:[#allocation66_spill] sm:$0xff] }
 0x3a1   : > { %4617 = vmatpush1.bf16.msra.mxu0 %v4616_v34  ;;  %v6983_v34 = vld [vmem:[#allocation44_spill] sm:$0xff] }
 0x3a2   : > { %4618 = vmatprep.subr.bf16.mxu0 %v4701_v5 }
 0x3a5   : > { %4620 = vmatpush1.bf16.msra.mxu0 %v4619_v62  ;;  %v6986_v62 = vld [vmem:[#allocation45_spill] sm:$0xff] }
 0x3a6   : > { %4621 = vmatprep.subr.bf16.mxu0 %v4701_v5 }
 0x3a9   : > { %4623 = vmatpush1.bf16.msra.mxu0 %v4622_v2  ;;  %v6989_v2 = vld [vmem:[#allocation50_spill] sm:$0xff] }
 0x3aa   : > { %4624 = vmatprep.subr.bf16.mxu0 %v4701_v5 }
 0x3ad   : > { %4626 = vmatpush1.bf16.msra.mxu0 %v4625_v15  ;;  %v6991_v15 = vld [vmem:[#allocation52_spill] sm:$0xff] }
 0x3ae   : > { %4627 = vmatprep.subr.bf16.mxu0 %v4701_v5 }
 0x3b1   : > { %4629 = vmatpush1.bf16.msra.mxu0 %v4628_v61  ;;  %v6994_v61 = vld [vmem:[#allocation53_spill] sm:$0xff] }
 0x3b2   : > { %4630 = vmatprep.subr.bf16.mxu0 %v4701_v5 }
 0x3b5   : > { %4632 = vmatpush1.bf16.msra.mxu0 %v4631_v46  ;;  %v6997_v46 = vld [vmem:[#allocation58_spill] sm:$0xff] }
 0x3b6   : > { %4633 = vmatprep.subr.bf16.mxu0 %v4701_v5 }
 0x3b9   : > { %4635 = vmatpush1.bf16.msra.mxu0 %v4634_v30  ;;  %v7000_v30 = vld [vmem:[#allocation59_spill] sm:$0xff] }
 0x3ba   : > { %4636 = vmatprep.subr.bf16.mxu0 %v4701_v5 }
 0x3bd   : > { %4638 = vmatpush1.bf16.msra.mxu0 %v4637_v6  ;;  %v7003_v6 = vld [vmem:[#allocation64_spill] sm:$0xff] }
 0x3be   : > { %4639 = vmatprep.subr.bf16.mxu0 %v4701_v5  ;;  %v6962_v5 = vld [vmem:[#allocation21_spill] sm:$0xff] }
 0x3c1   : > { %4641 = vmatpush1.bf16.msra.mxu0 %v4640_v19  ;;  %v7006_v19 = vld [vmem:[#allocation65_spill] sm:$0xff] }
 0x3c4   : > { %2552 = vmatmul.mubr.f32.vlgmr.msra.gmra.mrb[0].mxu0 %v6944_v59  ;;  %v2420_v59 = vld [vmem:[%s6783_s1] sm:$0xff] }
 0x3c5   : > { %2556 = vmatprep.mubr.f32.mxu0 %v6945_v47 }
 0x3c8   : > { %2557 = vmatmul.mubr.f32.gmra.mrb[2].mxu0 %v6946_v42 }
 0x3c9   : > { %2561 = vmatprep.mubr.f32.mxu0 %v6947_v10 }
 0x3cc   : > { %2562 = vmatmul.mubr.f32.gmra.mrb[4].mxu0 %v6948_v48 }
 0x3cd   : > { %2566 = vmatprep.mubr.f32.mxu0 %v6949_v63  ;;  %v2421_v63 = vld [vmem:[%s6783_s1 + $0x8] sm:$0xff] }
 0x3d0   : > { %2567 = vmatmul.mubr.f32.gmra.mrb[6].mxu0 %v6950_v26 }
 0x3d1   : > { %2571 = vmatprep.mubr.f32.mxu0 %v6951_v14 }
 0x3d4   : > { %2572 = vmatmul.mubr.f32.gmra.mrb[8].mxu0 %v6952_v9 }
 0x3d5   : > { %2576 = vmatprep.mubr.f32.mxu0 %v6953_v18 }
 0x3d8   : > { %2577 = vmatmul.mubr.f32.gmra.mrb[10].mxu0 %v6954_v54  ;;  %v2422_v54 = vld [vmem:[%s6783_s1 + $0x10] sm:$0xff] }
 0x3d9   : > { %2581 = vmatprep.mubr.f32.mxu0 %v6955_v7 }
 0x3dc   : > { %2582 = vmatmul.mubr.f32.gmra.mrb[12].mxu0 %v6956_v20 }
 0x3dd   : > { %2586 = vmatprep.mubr.f32.mxu0 %v6957_v45 }
 0x3e0   : > { %2587 = vmatmul.mubr.f32.gmra.mrb[14].mxu0 %v6958_v41 }
 0x3e1   : > { %2591 = vmatprep.mubr.f32.mxu0 %v6959_v3  ;;  %v2423_v3 = vld [vmem:[%s6783_s1 + $0x18] sm:$0xff] }
 0x3e4   : > { %2592 = vmatmul.mubr.f32.gmra.mrb[16].mxu0 %v6960_v37 }
 0x3e5   : > { %2596 = vmatprep.mubr.f32.mxu0 %v6961_v0 }
 0x3e8   : > { %2597 = vmatmul.mubr.f32.gmra.mrb[18].mxu0 %v6962_v5 }
 0x3e9   : > { %2601 = vmatprep.mubr.f32.mxu0 %v6963_v11 }
 0x3ec   : > { %2602 = vmatmul.mubr.f32.gmra.mrb[20].mxu0 %v6964_v23  ;;  %v2424_v23 = vld [vmem:[%s6783_s1 + $0x20] sm:$0xff] }
 0x3ed   : > { %2606 = vmatprep.mubr.f32.mxu0 %v6965_v50 }
 0x3f0   : > { %2607 = vmatmul.mubr.f32.gmra.mrb[22].mxu0 %v6966_v35 }
 0x3f1   : > { %2611 = vmatprep.mubr.f32.mxu0 %v6967_v40 }
 0x3f4   : > { %2612 = vmatmul.mubr.f32.gmra.mrb[24].mxu0 %v6968_v24 }
 0x3f5   : > { %2616 = vmatprep.mubr.f32.mxu0 %v6969_v28  ;;  %v2425_v28 = vld [vmem:[%s6783_s1 + $0x28] sm:$0xff] }
 0x3f8   : > { %2617 = vmatmul.mubr.f32.gmra.mrb[26].mxu0 %v6970_v43 }
 0x3f9   : > { %2621 = vmatprep.mubr.f32.mxu0 %v6971_v58 }
 0x3fc   : > { %2622 = vmatmul.mubr.f32.gmra.mrb[28].mxu0 %v6972_v38 }
 0x3fd   : > { %2626 = vmatprep.mubr.f32.mxu0 %v6973_v53 }
 0x400   : > { %2627 = vmatmul.mubr.f32.gmra.mrb[30].mxu0 %v6974_v22  ;;  %v2426_v22 = vld [vmem:[%s6783_s1 + $0x30] sm:$0xff] }
 0x401   : > { %2631 = vmatprep.mubr.f32.mxu0 %v6975_v44 }
 0x404   : > { %2632 = vmatmul.mubr.f32.gmra.mrb[32].mxu0 %v6976_v13 }
 0x405   : > { %2636 = vmatprep.mubr.f32.mxu0 %v6977_v36 }
 0x408   : > { %2637 = vmatmul.mubr.f32.gmra.mrb[34].mxu0 %v6978_v29 }
 0x409   : > { %2641 = vmatprep.mubr.f32.mxu0 %v6979_v51  ;;  %v2427_v51 = vld [vmem:[%s6783_s1 + $0x38] sm:$0xff] }
 0x40c   : > { %2642 = vmatmul.mubr.f32.gmra.mrb[36].mxu0 %v6980_v4 }
 0x40d   : > { %2646 = vmatprep.mubr.f32.mxu0 %v6981_v39 }
 0x410   : > { %2647 = vmatmul.mubr.f32.gmra.mrb[38].mxu0 %v6982_v55 }
 0x411   : > { %2651 = vmatprep.mubr.f32.mxu0 %v6983_v34 }
 0x414   : > { %2652 = vmatmul.mubr.f32.gmra.mrb[40].mxu0 %v6984_v27  ;;  %v2428_v27 = vld [vmem:[%s6783_s1 + $0x40] sm:$0xff] }
 0x415   : > { %2656 = vmatprep.mubr.f32.mxu0 %v6985_v57 }
 0x418   : > { %2657 = vmatmul.mubr.f32.gmra.mrb[42].mxu0 %v6986_v62 }
 0x419   : > { %2661 = vmatprep.mubr.f32.mxu0 %v6987_v31 }
 0x41c   : > { %2662 = vmatmul.mubr.f32.gmra.mrb[44].mxu0 %v6988_v60 }
 0x41d   : > { %2666 = vmatprep.mubr.f32.mxu0 %v6989_v2  ;;  %v2429_v2 = vld [vmem:[%s6783_s1 + $0x48] sm:$0xff] }
 0x420   : > { %2667 = vmatmul.mubr.f32.gmra.mrb[46].mxu0 %v6990_v12 }
 0x421   : > { %2671 = vmatprep.mubr.f32.mxu0 %v6991_v15 }
 0x424   : > { %2672 = vmatmul.mubr.f32.gmra.mrb[48].mxu0 %v6992_v25 }
 0x425   : > { %2676 = vmatprep.mubr.f32.mxu0 %v6993_v17  ;;  %v2430_v17 = vld [vmem:[%s6783_s1 + $0x50] sm:$0xff] }
 0x428   : > { %2677 = vmatmul.mubr.f32.gmra.mrb[50].mxu0 %v6994_v61 }
 0x429   : > { %2681 = vmatprep.mubr.f32.mxu0 %v6995_v16 }
 0x42c   : > { %2682 = vmatmul.mubr.f32.gmra.mrb[52].mxu0 %v6996_v49 }
 0x42d   : > { %2686 = vmatprep.mubr.f32.mxu0 %v6997_v46 }
 0x430   : > { %2687 = vmatmul.mubr.f32.gmra.mrb[54].mxu0 %v6998_v8  ;;  %v2431_v8 = vld [vmem:[%s6783_s1 + $0x58] sm:$0xff] }
 0x431   : > { %2691 = vmatprep.mubr.f32.mxu0 %v6999_v1 }
 0x434   : > { %2692 = vmatmul.mubr.f32.gmra.mrb[56].mxu0 %v7000_v30 }
 0x435   : > { %2696 = vmatprep.mubr.f32.mxu0 %v7001_v52 }
 0x438   : > { %2697 = vmatmul.mubr.f32.gmra.mrb[58].mxu0 %v7002_v33 }
 0x439   : > { %2701 = vmatprep.mubr.f32.mxu0 %v7003_v6  ;;  %v2432_v6 = vld [vmem:[%s6783_s1 + $0x60] sm:$0xff] }
 0x43c   : > { %2702 = vmatmul.mubr.f32.gmra.mrb[60].mxu0 %v7004_v21 }
 0x43d   : > { %2706 = vmatprep.mubr.f32.mxu0 %v7005_v56 }
 0x440   : > { %2707 = vmatmul.mubr.f32.gmra.mrb[62].mxu0 %v7006_v19 }
 0x497   : > { %v2553_v47 = vpop.f32.mrb[0].mxu0 }
 0x498   : > { %v2712_v42 = vmul.f32 2.0, %v2553_v47  ;;  %v2555_v10 = vpop.f32.mrb[1].mxu0  ;;  %v2433_v47 = vld [vmem:[%s6783_s1 + $0x68] sm:$0xff] }
 0x49a   : > { %v2744_v48 = vsub.f32 %v2712_v42, %v2420_v59 }
 0x49b   : > { %v2558_v26 = vpop.f32.mrb[2].mxu0 }
 0x49c   : > { %v2713_v14 = vmul.f32 2.0, %v2558_v26  ;;  %v2560_v9 = vpop.f32.mrb[3].mxu0  ;;  %3164 = vrot.lane.b32.xlu0 %v2744_v48, %s4702_s26  ;;  %4448 = vmatprep.mubr.msk.f32.mxu1 %vm2842_vm3, %v2744_v48  ;;  %v2434_v26 = vld [vmem:[%s6783_s1 + $0x70] sm:$0xff] }
 0x49e   : > { %v2745_v18 = vsub.f32 %v2713_v14, %v2421_v63 }
 0x49f   : > { %v2563_v7 = vpop.f32.mrb[4].mxu0 }
 0x4a0   : > { %v2714_v20 = vmul.f32 2.0, %v2563_v7  ;;  %v2565_v45 = vpop.f32.mrb[5].mxu0  ;;  %3166 = vrot.lane.b32.xlu0 %v2745_v18, %s4702_s26  ;;  %4449 = vmatmul.mubr.msk.f32.vlgmr.msra.gmra.mrb[0].mxu1 %vm2842_vm3, %v2745_v18  ;;  %v2435_v7 = vld [vmem:[%s6783_s1 + $0x78] sm:$0xff] }
 0x4a1   : > { %4497 = vmatpush3.msra.mxu1 %v3981_v32 }
 0x4a2   : > { %v2746_v41 = vsub.f32 %v2714_v20, %v2422_v54 }
 0x4a3   : > { %v2568_v37 = vpop.f32.mrb[6].mxu0 }
 0x4a4   : > { %v2715_v0 = vmul.f32 2.0, %v2568_v37  ;;  %v2570_v5 = vpop.f32.mrb[7].mxu0  ;;  %3168 = vrot.lane.b32.xlu1 %v2746_v41, %s4702_s26  ;;  %4451 = vmatprep.mubr.msk.f32.mxu1 %vm2842_vm3, %v2746_v41  ;;  %v2436_v37 = vld [vmem:[%s6783_s1 + $0x80] sm:$0xff] }
 0x4a6   : > { %v2747_v11 = vsub.f32 %v2715_v0, %v2423_v3 }
 0x4a7   : > { %v2573_v50 = vpop.f32.mrb[8].mxu0 }
 0x4a8   : > { %v2716_v35 = vmul.f32 2.0, %v2573_v50  ;;  %v2575_v40 = vpop.f32.mrb[9].mxu0  ;;  %3170 = vrot.lane.b32.xlu1 %v2747_v11, %s4702_s26  ;;  %4452 = vmatmul.mubr.msk.f32.gmra.mrb[2].mxu1 %vm2842_vm3, %v2747_v11  ;;  %v2437_v50 = vld [vmem:[%s6783_s1 + $0x88] sm:$0xff] }
 0x4aa   : > { %v2748_v24 = vsub.f32 %v2716_v35, %v2424_v23 }
 0x4ab   : > { %v2578_v43 = vpop.f32.mrb[10].mxu0 }
 0x4ac   : > { %v2717_v58 = vmul.f32 2.0, %v2578_v43  ;;  %v2580_v38 = vpop.f32.mrb[11].mxu0  ;;  %3172 = vrot.lane.b32.xlu0 %v2748_v24, %s4702_s26  ;;  %4454 = vmatprep.mubr.msk.f32.mxu1 %vm2842_vm3, %v2748_v24  ;;  %v2438_v43 = vld [vmem:[%s6783_s1 + $0x90] sm:$0xff] }
 0x4ae   : > { %v2749_v53 = vsub.f32 %v2717_v58, %v2425_v28 }
 0x4af   : > { %v2583_v44 = vpop.f32.mrb[12].mxu0 }
 0x4b0   : > { %v2718_v13 = vmul.f32 2.0, %v2583_v44  ;;  %v2585_v36 = vpop.f32.mrb[13].mxu0  ;;  %3174 = vrot.lane.b32.xlu1 %v2749_v53, %s4702_s26  ;;  %4455 = vmatmul.mubr.msk.f32.gmra.mrb[4].mxu1 %vm2842_vm3, %v2749_v53  ;;  %v2439_v44 = vld [vmem:[%s6783_s1 + $0x98] sm:$0xff] }
 0x4b2   : > { %v2750_v29 = vsub.f32 %v2718_v13, %v2426_v22 }
 0x4b3   : > { %v2588_v4 = vpop.f32.mrb[14].mxu0 }
 0x4b4   : > { %v2719_v39 = vmul.f32 2.0, %v2588_v4  ;;  %v2590_v55 = vpop.f32.mrb[15].mxu0  ;;  %3176 = vrot.lane.b32.xlu0 %v2750_v29, %s4702_s26  ;;  %4457 = vmatprep.mubr.msk.f32.mxu1 %vm2842_vm3, %v2750_v29  ;;  %v2440_v4 = vld [vmem:[%s6783_s1 + $0xa0] sm:$0xff] }
 0x4b6   : > { %v2751_v34 = vsub.f32 %v2719_v39, %v2427_v51 }
 0x4b7   : > { %v2593_v57 = vpop.f32.mrb[16].mxu0 }
 0x4b8   : > { %v2720_v62 = vmul.f32 2.0, %v2593_v57  ;;  %v2595_v31 = vpop.f32.mrb[17].mxu0  ;;  %3178 = vrot.lane.b32.xlu1 %v2751_v34, %s4702_s26  ;;  %4458 = vmatmul.mubr.msk.f32.gmra.mrb[6].mxu1 %vm2842_vm3, %v2751_v34  ;;  %v2441_v57 = vld [vmem:[%s6783_s1 + $0xa8] sm:$0xff] }
 0x4ba   : > { %v2752_v60 = vsub.f32 %v2720_v62, %v2428_v27 }
 0x4bb   : > { %v2598_v32 = vpop.f32.mrb[18].mxu0 }
 0x4bc   : > { %v2721_v12 = vmul.f32 2.0, %v2598_v32  ;;  %v2600_v15 = vpop.f32.mrb[19].mxu0  ;;  %3180 = vrot.lane.b32.xlu0 %v2752_v60, %s4702_s26  ;;  %4460 = vmatprep.mubr.msk.f32.mxu1 %vm2842_vm3, %v2752_v60  ;;  %v2442_v32 = vld [vmem:[%s6783_s1 + $0xb0] sm:$0xff] }
 0x4be   : > { %v2753_v25 = vsub.f32 %v2721_v12, %v2429_v2 }
 0x4bf   : > { %v2603_v61 = vpop.f32.mrb[20].mxu0 }
 0x4c0   : > { %v2722_v16 = vmul.f32 2.0, %v2603_v61  ;;  %v2605_v49 = vpop.f32.mrb[21].mxu0  ;;  %3182 = vrot.lane.b32.xlu1 %v2753_v25, %s4702_s26  ;;  %4461 = vmatmul.mubr.msk.f32.gmra.mrb[8].mxu1 %vm2842_vm3, %v2753_v25  ;;  %v2443_v61 = vld [vmem:[%s6783_s1 + $0xb8] sm:$0xff] }
 0x4c2   : > { %v2754_v46 = vsub.f32 %v2722_v16, %v2430_v17 }
 0x4c3   : > { %v2608_v1 = vpop.f32.mrb[22].mxu0 }
 0x4c4   : > { %v2723_v30 = vmul.f32 2.0, %v2608_v1  ;;  %v2610_v52 = vpop.f32.mrb[23].mxu0  ;;  %3184 = vrot.lane.b32.xlu0 %v2754_v46, %s4702_s26  ;;  %4463 = vmatprep.mubr.msk.f32.mxu1 %vm2842_vm3, %v2754_v46  ;;  %v2444_v1 = vld [vmem:[%s6783_s1 + $0xc0] sm:$0xff] }
 0x4c6   : > { %v2755_v33 = vsub.f32 %v2723_v30, %v2431_v8 }
 0x4c7   : > { %v2613_v21 = vpop.f32.mrb[24].mxu0 }
 0x4c8   : > { %v2724_v56 = vmul.f32 2.0, %v2613_v21  ;;  %v2615_v19 = vpop.f32.mrb[25].mxu0  ;;  %3186 = vrot.lane.b32.xlu1 %v2755_v33, %s4702_s26  ;;  %4464 = vmatmul.mubr.msk.f32.gmra.mrb[10].mxu1 %vm2842_vm3, %v2755_v33  ;;  %v2445_v21 = vld [vmem:[%s6783_s1 + $0xc8] sm:$0xff] }
 0x4ca   : > { %v2756_v59 = vsub.f32 %v2724_v56, %v2432_v6 }
 0x4cb   : > { %v2618_v42 = vpop.f32.mrb[26].mxu0 }
 0x4cc   : > { %v2725_v10 = vmul.f32 2.0, %v2618_v42  ;;  %v2620_v48 = vpop.f32.mrb[27].mxu0  ;;  %3188 = vrot.lane.b32.xlu0 %v2756_v59, %s4702_s26  ;;  %4466 = vmatprep.mubr.msk.f32.mxu1 %vm2842_vm3, %v2756_v59  ;;  %v2446_v42 = vld [vmem:[%s6783_s1 + $0xd0] sm:$0xff] }
 0x4ce   : > { %v2757_v63 = vsub.f32 %v2725_v10, %v2433_v47 }
 0x4cf   : > { %v2623_v14 = vpop.f32.mrb[28].mxu0 }
 0x4d0   : > { %v2726_v9 = vmul.f32 2.0, %v2623_v14  ;;  %v2625_v18 = vpop.f32.mrb[29].mxu0  ;;  %3190 = vrot.lane.b32.xlu1 %v2757_v63, %s4702_s26  ;;  %4467 = vmatmul.mubr.msk.f32.gmra.mrb[12].mxu1 %vm2842_vm3, %v2757_v63  ;;  %v2447_v14 = vld [vmem:[%s6783_s1 + $0xd8] sm:$0xff] }
 0x4d2   : > { %v2758_v54 = vsub.f32 %v2726_v9, %v2434_v26 }
 0x4d3   : > { %v2628_v20 = vpop.f32.mrb[30].mxu0 }
 0x4d4   : > { %v2727_v45 = vmul.f32 2.0, %v2628_v20  ;;  %v2630_v41 = vpop.f32.mrb[31].mxu0  ;;  %3192 = vrot.lane.b32.xlu0 %v2758_v54, %s4702_s26  ;;  %4469 = vmatprep.mubr.msk.f32.mxu1 %vm2842_vm3, %v2758_v54  ;;  %v2448_v20 = vld [vmem:[%s6783_s1 + $0xe0] sm:$0xff] }
 0x4d6   : > { %v2759_v3 = vsub.f32 %v2727_v45, %v2435_v7 }
 0x4d7   : > { %v2633_v0 = vpop.f32.mrb[32].mxu0 }
 0x4d8   : > { %v2728_v5 = vmul.f32 2.0, %v2633_v0  ;;  %v2635_v11 = vpop.f32.mrb[33].mxu0  ;;  %3194 = vrot.lane.b32.xlu1 %v2759_v3, %s4702_s26  ;;  %4470 = vmatmul.mubr.msk.f32.gmra.mrb[14].mxu1 %vm2842_vm3, %v2759_v3  ;;  %v2449_v0 = vld [vmem:[%s6783_s1 + $0xe8] sm:$0xff] }
 0x4da   : > { %v2760_v23 = vsub.f32 %v2728_v5, %v2436_v37 }
 0x4db   : > { %v2638_v35 = vpop.f32.mrb[34].mxu0 }
 0x4dc   : > { %v2729_v40 = vmul.f32 2.0, %v2638_v35  ;;  %v2640_v24 = vpop.f32.mrb[35].mxu0  ;;  %3196 = vrot.lane.b32.xlu0 %v2760_v23, %s4702_s26  ;;  %4472 = vmatprep.mubr.msk.f32.mxu1 %vm2842_vm3, %v2760_v23  ;;  %v2450_v35 = vld [vmem:[%s6783_s1 + $0xf0] sm:$0xff] }
 0x4de   : > { %v2761_v28 = vsub.f32 %v2729_v40, %v2437_v50 }
 0x4df   : > { %v2643_v58 = vpop.f32.mrb[36].mxu0 }
 0x4e0   : > { %v2730_v38 = vmul.f32 2.0, %v2643_v58  ;;  %v2645_v53 = vpop.f32.mrb[37].mxu0  ;;  %3198 = vrot.lane.b32.xlu1 %v2761_v28, %s4702_s26  ;;  %4473 = vmatmul.mubr.msk.f32.gmra.mrb[16].mxu1 %vm2842_vm3, %v2761_v28  ;;  %v2451_v58 = vld [vmem:[%s6783_s1 + $0xf8] sm:$0xff] }
 0x4e2   : > { %v2762_v22 = vsub.f32 %v2730_v38, %v2438_v43 }
 0x4e3   : > { %v2648_v13 = vpop.f32.mrb[38].mxu0 }
 0x4e4   : > { %v2731_v36 = vmul.f32 2.0, %v2648_v13  ;;  %v2650_v29 = vpop.f32.mrb[39].mxu0  ;;  %3200 = vrot.lane.b32.xlu0 %v2762_v22, %s4702_s26  ;;  %4475 = vmatprep.mubr.msk.f32.mxu1 %vm2842_vm3, %v2762_v22 }
 0x4e6   : > { %v2763_v51 = vsub.f32 %v2731_v36, %v2439_v44 }
 0x4e7   : > { %v2653_v39 = vpop.f32.mrb[40].mxu0 }
 0x4e8   : > { %v2732_v55 = vmul.f32 2.0, %v2653_v39  ;;  %v2655_v34 = vpop.f32.mrb[41].mxu0  ;;  %3202 = vrot.lane.b32.xlu1 %v2763_v51, %s4702_s26  ;;  %4476 = vmatmul.mubr.msk.f32.gmra.mrb[18].mxu1 %vm2842_vm3, %v2763_v51 }
 0x4ea   : > { %v2764_v27 = vsub.f32 %v2732_v55, %v2440_v4 }
 0x4eb   : > { %v2658_v62 = vpop.f32.mrb[42].mxu0 }
 0x4ec   : > { %v2733_v31 = vmul.f32 2.0, %v2658_v62  ;;  %v2660_v60 = vpop.f32.mrb[43].mxu0  ;;  %3204 = vrot.lane.b32.xlu0 %v2764_v27, %s4702_s26  ;;  %4478 = vmatprep.mubr.msk.f32.mxu1 %vm2842_vm3, %v2764_v27 }
 0x4ee   : > { %v2765_v2 = vsub.f32 %v2733_v31, %v2441_v57 }
 0x4ef   : > { %v2663_v12 = vpop.f32.mrb[44].mxu0 }
 0x4f0   : > { %v2734_v15 = vmul.f32 2.0, %v2663_v12  ;;  %v2665_v25 = vpop.f32.mrb[45].mxu0  ;;  %3206 = vrot.lane.b32.xlu1 %v2765_v2, %s4702_s26  ;;  %4479 = vmatmul.mubr.msk.f32.gmra.mrb[20].mxu1 %vm2842_vm3, %v2765_v2 }
 0x4f2   : > { %v2766_v17 = vsub.f32 %v2734_v15, %v2442_v32 }
 0x4f3   : > { %v2668_v16 = vpop.f32.mrb[46].mxu0 }
 0x4f4   : > { %v2735_v49 = vmul.f32 2.0, %v2668_v16  ;;  %v2670_v46 = vpop.f32.mrb[47].mxu0  ;;  %3208 = vrot.lane.b32.xlu0 %v2766_v17, %s4702_s26  ;;  %4481 = vmatprep.mubr.msk.f32.mxu1 %vm2842_vm3, %v2766_v17 }
 0x4f6   : > { %v2767_v8 = vsub.f32 %v2735_v49, %v2443_v61 }
 0x4f7   : > { %v2673_v30 = vpop.f32.mrb[48].mxu0 }
 0x4f8   : > { %v2736_v52 = vmul.f32 2.0, %v2673_v30  ;;  %v2675_v33 = vpop.f32.mrb[49].mxu0  ;;  %3210 = vrot.lane.b32.xlu1 %v2767_v8, %s4702_s26  ;;  %4482 = vmatmul.mubr.msk.f32.gmra.mrb[22].mxu1 %vm2842_vm3, %v2767_v8 }
 0x4fa   : > { %v2768_v6 = vsub.f32 %v2736_v52, %v2444_v1 }
 0x4fb   : > { %v2678_v56 = vpop.f32.mrb[50].mxu0 }
 0x4fc   : > { %v2737_v19 = vmul.f32 2.0, %v2678_v56  ;;  %v2680_v59 = vpop.f32.mrb[51].mxu0  ;;  %3212 = vrot.lane.b32.xlu0 %v2768_v6, %s4702_s26  ;;  %4484 = vmatprep.mubr.msk.f32.mxu1 %vm2842_vm3, %v2768_v6 }
 0x4fe   : > { %v2769_v47 = vsub.f32 %v2737_v19, %v2445_v21 }
 0x4ff   : > { %v2683_v10 = vpop.f32.mrb[52].mxu0 }
 0x500   : > { %v2738_v48 = vmul.f32 2.0, %v2683_v10  ;;  %v2685_v63 = vpop.f32.mrb[53].mxu0  ;;  %3214 = vrot.lane.b32.xlu1 %v2769_v47, %s4702_s26  ;;  %4485 = vmatmul.mubr.msk.f32.gmra.mrb[24].mxu1 %vm2842_vm3, %v2769_v47 }
 0x502   : > { %v2770_v26 = vsub.f32 %v2738_v48, %v2446_v42 }
 0x503   : > { %v2688_v9 = vpop.f32.mrb[54].mxu0 }
 0x504   : > { %v2739_v18 = vmul.f32 2.0, %v2688_v9  ;;  %v2690_v54 = vpop.f32.mrb[55].mxu0  ;;  %3216 = vrot.lane.b32.xlu0 %v2770_v26, %s4702_s26  ;;  %4487 = vmatprep.mubr.msk.f32.mxu1 %vm2842_vm3, %v2770_v26 }
 0x506   : > { %v2771_v7 = vsub.f32 %v2739_v18, %v2447_v14 }
 0x507   : > { %v2693_v45 = vpop.f32.mrb[56].mxu0 }
 0x508   : > { %v2740_v41 = vmul.f32 2.0, %v2693_v45  ;;  %v2695_v3 = vpop.f32.mrb[57].mxu0  ;;  %3218 = vrot.lane.b32.xlu1 %v2771_v7, %s4702_s26  ;;  %4488 = vmatmul.mubr.msk.f32.gmra.mrb[26].mxu1 %vm2842_vm3, %v2771_v7 }
 0x50a   : > { %v2772_v37 = vsub.f32 %v2740_v41, %v2448_v20 }
 0x50b   : > { %v2698_v5 = vpop.f32.mrb[58].mxu0 }
 0x50c   : > { %v2741_v11 = vmul.f32 2.0, %v2698_v5  ;;  %v2700_v23 = vpop.f32.mrb[59].mxu0  ;;  %3220 = vrot.lane.b32.xlu0 %v2772_v37, %s4702_s26  ;;  %4490 = vmatprep.mubr.msk.f32.mxu1 %vm2842_vm3, %v2772_v37 }
 0x50e   : > { %v2773_v50 = vsub.f32 %v2741_v11, %v2449_v0  ;;  %v3165_v44 = vpop.permute.xlu0 %3164 }
 0x50f   : > { %v2703_v40 = vpop.f32.mrb[60].mxu0 }
 0x510   : > { %v2742_v24 = vmul.f32 2.0, %v2703_v40  ;;  %v2705_v28 = vpop.f32.mrb[61].mxu0  ;;  %3222 = vrot.lane.b32.xlu1 %v2773_v50, %s4702_s26  ;;  %4491 = vmatmul.mubr.msk.f32.gmra.mrb[28].mxu1 %vm2842_vm3, %v2773_v50 }
 0x512   : > { %v2774_v43 = vsub.f32 %v2742_v24, %v2450_v35  ;;  %v3167_v29 = vpop.permute.xlu0 %3166 }
 0x513   : > { %v2708_v38 = vpop.f32.mrb[62].mxu0 }
 0x514   : > { %v2743_v53 = vmul.f32 2.0, %v2708_v38  ;;  %v2710_v22 = vpop.f32.mrb[63].mxu0  ;;  %3224 = vrot.lane.b32.xlu0 %v2774_v43, %s4702_s26  ;;  %4493 = vmatprep.mubr.msk.f32.mxu1 %vm2842_vm3, %v2774_v43 }
 0x516   : > { %v2775_v13 = vsub.f32 %v2743_v53, %v2451_v58  ;;  %v3169_v36 = vpop.permute.xlu1 %3168 }
 0x518   : > { %3226 = vrot.lane.b32.xlu1 %v2775_v13, %s4702_s26  ;;  %4494 = vmatmul.mubr.msk.f32.gmra.mrb[30].mxu1 %vm2842_vm3, %v2775_v13  ;;  %s4703_s26 = smov 16  }
 0x519   : > { %4498 = vmatprep.mubr.msk.f32.mxu1 %vm2842_vm3, %v3165_v44 }
 0x51a   : > { %v3171_v51 = vpop.permute.xlu1 %3170 }
 0x51c   : > { %4499 = vmatmul.mubr.msk.f32.vlgmr.msra.gmra.mrb[32].mxu1 %vm2842_vm3, %v3167_v29 }
 0x51d   : > { %4501 = vmatprep.mubr.msk.f32.mxu1 %vm2842_vm3, %v3169_v36 }
 0x51e   : > { %v3173_v4 = vpop.permute.xlu0 %3172 }
 0x520   : > { %4502 = vmatmul.mubr.msk.f32.gmra.mrb[34].mxu1 %vm2842_vm3, %v3171_v51 }
 0x521   : > { %4504 = vmatprep.mubr.msk.f32.mxu1 %vm2842_vm3, %v3173_v4 }
 0x522   : > { %v3175_v39 = vpop.permute.xlu1 %3174 }
 0x524   : > { %4505 = vmatmul.mubr.msk.f32.gmra.mrb[36].mxu1 %vm2842_vm3, %v3175_v39 }
 0x526   : > { %v3177_v55 = vpop.permute.xlu0 %3176 }
 0x527   : > { %4507 = vmatprep.mubr.msk.f32.mxu1 %vm2842_vm3, %v3177_v55 }
 0x52a   : > { %v3179_v34 = vpop.permute.xlu1 %3178 }
 0x52b   : > { %4508 = vmatmul.mubr.msk.f32.gmra.mrb[38].mxu1 %vm2842_vm3, %v3179_v34 }
 0x52e   : > { %v3181_v27 = vpop.permute.xlu0 %3180 }
 0x52f   : > { %4510 = vmatprep.mubr.msk.f32.mxu1 %vm2842_vm3, %v3181_v27 }
 0x532   : > { %v3183_v57 = vpop.permute.xlu1 %3182 }
 0x533   : > { %4511 = vmatmul.mubr.msk.f32.gmra.mrb[40].mxu1 %vm2842_vm3, %v3183_v57 }
 0x536   : > { %v3185_v62 = vpop.permute.xlu0 %3184 }
 0x537   : > { %4513 = vmatprep.mubr.msk.f32.mxu1 %vm2842_vm3, %v3185_v62 }
 0x53a   : > { %v3187_v31 = vpop.permute.xlu1 %3186 }
 0x53b   : > { %4514 = vmatmul.mubr.msk.f32.gmra.mrb[42].mxu1 %vm2842_vm3, %v3187_v31 }
 0x53e   : > { %v3189_v60 = vpop.permute.xlu0 %3188 }
 0x53f   : > { %4516 = vmatprep.mubr.msk.f32.mxu1 %vm2842_vm3, %v3189_v60 }
 0x542   : > { %v3191_v2 = vpop.permute.xlu1 %3190 }
 0x543   : > { %4517 = vmatmul.mubr.msk.f32.gmra.mrb[44].mxu1 %vm2842_vm3, %v3191_v2 }
 0x546   : > { %v3193_v32 = vpop.permute.xlu0 %3192 }
 0x547   : > { %4519 = vmatprep.mubr.msk.f32.mxu1 %vm2842_vm3, %v3193_v32 }
 0x54a   : > { %v3195_v12 = vpop.permute.xlu1 %3194 }
 0x54b   : > { %4520 = vmatmul.mubr.msk.f32.gmra.mrb[46].mxu1 %vm2842_vm3, %v3195_v12 }
 0x54e   : > { %v3197_v15 = vpop.permute.xlu0 %3196 }
 0x54f   : > { %4522 = vmatprep.mubr.msk.f32.mxu1 %vm2842_vm3, %v3197_v15 }
 0x552   : > { %v3199_v25 = vpop.permute.xlu1 %3198 }
 0x553   : > { %4523 = vmatmul.mubr.msk.f32.gmra.mrb[48].mxu1 %vm2842_vm3, %v3199_v25 }
 0x556   : > { %v3201_v17 = vpop.permute.xlu0 %3200 }
 0x557   : > { %4525 = vmatprep.mubr.msk.f32.mxu1 %vm2842_vm3, %v3201_v17 }
 0x55a   : > { %v3203_v61 = vpop.permute.xlu1 %3202 }
 0x55b   : > { %4526 = vmatmul.mubr.msk.f32.gmra.mrb[50].mxu1 %vm2842_vm3, %v3203_v61 }
 0x55e   : > { %v3205_v16 = vpop.permute.xlu0 %3204 }
 0x55f   : > { %4528 = vmatprep.mubr.msk.f32.mxu1 %vm2842_vm3, %v3205_v16 }
 0x562   : > { %v3207_v49 = vpop.permute.xlu1 %3206 }
 0x563   : > { %4529 = vmatmul.mubr.msk.f32.gmra.mrb[52].mxu1 %vm2842_vm3, %v3207_v49 }
 0x566   : > { %v3209_v46 = vpop.permute.xlu0 %3208 }
 0x567   : > { %4531 = vmatprep.mubr.msk.f32.mxu1 %vm2842_vm3, %v3209_v46 }
 0x56a   : > { %v3211_v8 = vpop.permute.xlu1 %3210 }
 0x56b   : > { %4532 = vmatmul.mubr.msk.f32.gmra.mrb[54].mxu1 %vm2842_vm3, %v3211_v8 }
 0x56e   : > { %v3213_v1 = vpop.permute.xlu0 %3212 }
 0x56f   : > { %4534 = vmatprep.mubr.msk.f32.mxu1 %vm2842_vm3, %v3213_v1 }
 0x572   : > { %v3215_v30 = vpop.permute.xlu1 %3214 }
 0x573   : > { %v6382_v52 = vpop.f32.mrb[0].mxu1  ;;  %4535 = vmatmul.mubr.msk.f32.gmra.mrb[56].mxu1 %vm2842_vm3, %v3215_v30 }
 0x574   : > { %v6385_v33 = vpop.f32.mrb[1].mxu1 }
 0x576   : > { %v3217_v6 = vpop.permute.xlu0 %3216 }
 0x577   : > { %4537 = vmatprep.mubr.msk.f32.mxu1 %vm2842_vm3, %v3217_v6 }
 0x57a   : > { %v3219_v21 = vpop.permute.xlu1 %3218 }
 0x57b   : > { %v6388_v56 = vpop.f32.mrb[2].mxu1  ;;  %4538 = vmatmul.mubr.msk.f32.gmra.mrb[58].mxu1 %vm2842_vm3, %v3219_v21 }
 0x57c   : > { %v6391_v19 = vpop.f32.mrb[3].mxu1 }
 0x57e   : > { %v3221_v59 = vpop.permute.xlu0 %3220 }
 0x57f   : > { %4540 = vmatprep.mubr.msk.f32.mxu1 %vm2842_vm3, %v3221_v59 }
 0x582   : > { %v3223_v47 = vpop.permute.xlu1 %3222 }
 0x583   : > { %v6394_v42 = vpop.f32.mrb[4].mxu1  ;;  %4541 = vmatmul.mubr.msk.f32.gmra.mrb[60].mxu1 %vm2842_vm3, %v3223_v47 }
 0x584   : > { %v6397_v10 = vpop.f32.mrb[5].mxu1 }
 0x586   : > { %v3225_v48 = vpop.permute.xlu0 %3224 }
 0x587   : > { %4543 = vmatprep.mubr.msk.f32.mxu1 %vm2842_vm3, %v3225_v48 }
 0x58a   : > { %v3227_v63 = vpop.permute.xlu1 %3226 }
 0x58b   : > { %v6400_v26 = vpop.f32.mrb[6].mxu1  ;;  %4544 = vmatmul.mubr.msk.f32.gmra.mrb[62].mxu1 %vm2842_vm3, %v3227_v63 }
 0x58c   : > { %v6403_v14 = vpop.f32.mrb[7].mxu1 }
 0x593   : > { %v6405_v9 = vpop.f32.mrb[8].mxu1 }
 0x594   : > { %v6407_v18 = vpop.f32.mrb[9].mxu1 }
 0x59b   : > { %v6409_v54 = vpop.f32.mrb[10].mxu1 }
 0x59c   : > { %v6411_v7 = vpop.f32.mrb[11].mxu1 }
 0x5a3   : > { %v6413_v20 = vpop.f32.mrb[12].mxu1 }
 0x5a4   : > { %v6415_v45 = vpop.f32.mrb[13].mxu1 }
 0x5ab   : > { %v6417_v41 = vpop.f32.mrb[14].mxu1 }
 0x5ac   : > { %v6419_v3 = vpop.f32.mrb[15].mxu1 }
 0x5b3   : > { %v6421_v37 = vpop.f32.mrb[16].mxu1 }
 0x5b4   : > { %v6423_v0 = vpop.f32.mrb[17].mxu1 }
 0x5bb   : > { %v6425_v5 = vpop.f32.mrb[18].mxu1 }
 0x5bc   : > { %v6427_v11 = vpop.f32.mrb[19].mxu1 }
 0x5c3   : > { %v6429_v23 = vpop.f32.mrb[20].mxu1 }
 0x5c4   : > { %v6431_v50 = vpop.f32.mrb[21].mxu1 }
 0x5cb   : > { %v6433_v35 = vpop.f32.mrb[22].mxu1 }
 0x5cc   : > { %v6435_v40 = vpop.f32.mrb[23].mxu1 }
 0x5d3   : > { %v6437_v24 = vpop.f32.mrb[24].mxu1 }
 0x5d4   : > { %v6439_v28 = vpop.f32.mrb[25].mxu1 }
 0x5db   : > { %v6441_v43 = vpop.f32.mrb[26].mxu1 }
 0x5dc   : > { %v6443_v58 = vpop.f32.mrb[27].mxu1 }
 0x5e3   : > { %v6445_v38 = vpop.f32.mrb[28].mxu1 }
 0x5e4   : > { %v6447_v53 = vpop.f32.mrb[29].mxu1 }
 0x5eb   : > { %v6449_v22 = vpop.f32.mrb[30].mxu1 }
 0x5ec   : > { %v6451_v44 = vpop.f32.mrb[31].mxu1 }
 0x5ef   : > { %v4500_v13 = vpop.f32.mrb[32].mxu1 }
 0x5f0   : > { %3551 = vrot.lane.b32.xlu1 %v4500_v13, %s4703_s26  ;;  %v3358_v36 = vpop.f32.mrb[33].mxu1  ;;  %v2811_v13 = vld [vmem:[%s6786_s4 + $0x8] sm:$0xff] }
 0x5f1   : > { %3549 = vrot.lane.b32.xlu0 %v3358_v36, %s4703_s26 }
 0x5f3   : > { %v4503_v29 = vpop.f32.mrb[34].mxu1 }
 0x5f4   : > { %3555 = vrot.lane.b32.xlu1 %v4503_v29, %s4703_s26  ;;  %v3368_v51 = vpop.f32.mrb[35].mxu1 }
 0x5f5   : > { %3553 = vrot.lane.b32.xlu0 %v3368_v51, %s4703_s26  ;;  %v2810_v51 = vld [vmem:[%s6786_s4] sm:$0xff] }
 0x5f7   : > { %v4506_v4 = vpop.f32.mrb[36].mxu1 }
 0x5f8   : > { %3559 = vrot.lane.b32.xlu1 %v4506_v4, %s4703_s26  ;;  %v3378_v39 = vpop.f32.mrb[37].mxu1 }
 0x5f9   : > { %3557 = vrot.lane.b32.xlu0 %v3378_v39, %s4703_s26 }
 0x5fe   : > { %v4509_v55 = vpop.f32.mrb[38].mxu1 }
 0x5ff   : > { %3563 = vrot.lane.b32.xlu1 %v4509_v55, %s4703_s26  ;;  %v3388_v34 = vpop.f32.mrb[39].mxu1 }
 0x600   : > { %3561 = vrot.lane.b32.xlu0 %v3388_v34, %s4703_s26 }
 0x606   : > { %v4512_v27 = vpop.f32.mrb[40].mxu1 }
 0x607   : > { %3567 = vrot.lane.b32.xlu1 %v4512_v27, %s4703_s26  ;;  %v3398_v57 = vpop.f32.mrb[41].mxu1 }
 0x608   : > { %3565 = vrot.lane.b32.xlu0 %v3398_v57, %s4703_s26 }
 0x60e   : > { %v4515_v62 = vpop.f32.mrb[42].mxu1 }
 0x60f   : > { %3571 = vrot.lane.b32.xlu1 %v4515_v62, %s4703_s26  ;;  %v3408_v31 = vpop.f32.mrb[43].mxu1  ;;  %v2813_v62 = vld [vmem:[%s6786_s4 + $0x18] sm:$0xff] }
 0x610   : > { %3569 = vrot.lane.b32.xlu0 %v3408_v31, %s4703_s26 }
 0x616   : > { %v4518_v60 = vpop.f32.mrb[44].mxu1 }
 0x617   : > { %3575 = vrot.lane.b32.xlu1 %v4518_v60, %s4703_s26  ;;  %v3418_v2 = vpop.f32.mrb[45].mxu1 }
 0x618   : > { %3573 = vrot.lane.b32.xlu0 %v3418_v2, %s4703_s26 }
 0x61e   : > { %v4521_v32 = vpop.f32.mrb[46].mxu1 }
 0x61f   : > { %3579 = vrot.lane.b32.xlu1 %v4521_v32, %s4703_s26  ;;  %v3428_v12 = vpop.f32.mrb[47].mxu1 }
 0x620   : > { %3577 = vrot.lane.b32.xlu0 %v3428_v12, %s4703_s26 }
 0x626   : > { %v4524_v15 = vpop.f32.mrb[48].mxu1 }
 0x627   : > { %3583 = vrot.lane.b32.xlu1 %v4524_v15, %s4703_s26  ;;  %v3438_v25 = vpop.f32.mrb[49].mxu1 }
 0x628   : > { %3581 = vrot.lane.b32.xlu0 %v3438_v25, %s4703_s26 }
 0x62e   : > { %v4527_v17 = vpop.f32.mrb[50].mxu1 }
 0x62f   : > { %3587 = vrot.lane.b32.xlu1 %v4527_v17, %s4703_s26  ;;  %v3448_v61 = vpop.f32.mrb[51].mxu1 }
 0x630   : > { %3585 = vrot.lane.b32.xlu0 %v3448_v61, %s4703_s26 }
 0x636   : > { %v4530_v16 = vpop.f32.mrb[52].mxu1 }
 0x637   : > { %3591 = vrot.lane.b32.xlu1 %v4530_v16, %s4703_s26  ;;  %v3458_v49 = vpop.f32.mrb[53].mxu1 }
 0x638   : > { %3589 = vrot.lane.b32.xlu0 %v3458_v49, %s4703_s26 }
 0x63e   : > { %v4533_v46 = vpop.f32.mrb[54].mxu1 }
 0x63f   : > { %3595 = vrot.lane.b32.xlu1 %v4533_v46, %s4703_s26  ;;  %v3468_v8 = vpop.f32.mrb[55].mxu1 }
 0x640   : > { %3593 = vrot.lane.b32.xlu0 %v3468_v8, %s4703_s26 }
 0x646   : > { %v4536_v1 = vpop.f32.mrb[56].mxu1 }
 0x647   : > { %3599 = vrot.lane.b32.xlu1 %v4536_v1, %s4703_s26  ;;  %v3478_v30 = vpop.f32.mrb[57].mxu1 }
 0x648   : > { %3597 = vrot.lane.b32.xlu0 %v3478_v30, %s4703_s26 }
 0x64e   : > { %v4539_v6 = vpop.f32.mrb[58].mxu1 }
 0x64f   : > { %3603 = vrot.lane.b32.xlu1 %v4539_v6, %s4703_s26  ;;  %v3488_v21 = vpop.f32.mrb[59].mxu1 }
 0x650   : > { %3601 = vrot.lane.b32.xlu0 %v3488_v21, %s4703_s26  ;;  %v2816_v21 = vld [vmem:[%s6786_s4 + $0x30] sm:$0xff] }
 0x656   : > { %v4542_v59 = vpop.f32.mrb[60].mxu1 }
 0x657   : > { %3607 = vrot.lane.b32.xlu1 %v4542_v59, %s4703_s26  ;;  %v3498_v47 = vpop.f32.mrb[61].mxu1 }
 0x658   : > { %3605 = vrot.lane.b32.xlu0 %v3498_v47, %s4703_s26 }
 0x65e   : > { %v4545_v48 = vpop.f32.mrb[62].mxu1 }
 0x65f   : > { %3611 = vrot.lane.b32.xlu1 %v4545_v48, %s4703_s26  ;;  %v3508_v63 = vpop.f32.mrb[63].mxu1 }
 0x660   : > { %3609 = vrot.lane.b32.xlu0 %v3508_v63, %s4703_s26 }
 0x662   : > { %v3552_v36 = vpop.permute.xlu1 %3551 }
 0x663   : > { %v3647_v29 = vsel %vm3645_vm4, %v6382_v52, %v3552_v36  ;;  %v3550_v4 = vpop.permute.xlu0 %3549 }
 0x664   : > { %v3680_v39 = vsel %vm3678_vm5, %v3647_v29, 0.0  ;;  %v3646_v55 = vsel %vm3645_vm4, %v6385_v33, %v3550_v4  ;;  %v2812_v33 = vld [vmem:[%s6786_s4 + $0x10] sm:$0xff] }
 0x665   : > { %v3712_v34 = vadd.f32 %v3680_v39, %v2811_v13  ;;  %v3679_v27 = vsel %vm3678_vm5, %v3646_v55, 0.0 }
 0x666   : > { %v3711_v57 = vadd.f32 %v3679_v27, %v2810_v51  ;;  %v3556_v31 = vpop.permute.xlu1 %3555  ;;  %v2818_v51 = vld [vmem:[%s6786_s4 + $0x40] sm:$0xff] }
 0x667   : > { %3744 = vst [vmem:[%s6786_s4 + $0x8] sm:$0xff] %v3712_v34  ;;  %v3649_v52 = vsel %vm3645_vm4, %v6388_v56, %v3556_v31  ;;  %v3554_v60 = vpop.permute.xlu0 %3553  ;;  %v2815_v56 = vld [vmem:[%s6786_s4 + $0x28] sm:$0xff]  ;;  %v2820_v31 = vld [vmem:[%s6786_s4 + $0x50] sm:$0xff] }
 0x668   : > { %3743 = vst [vmem:[%s6786_s4] sm:$0xff] %v3711_v57  ;;  %v3682_v2 = vsel %vm3678_vm5, %v3649_v52, 0.0  ;;  %v3648_v32 = vsel %vm3645_vm4, %v6391_v19, %v3554_v60  ;;  %v2814_v19 = vld [vmem:[%s6786_s4 + $0x20] sm:$0xff] }
 0x669   : > { %v3714_v12 = vadd.f32 %v3682_v2, %v2813_v62  ;;  %v3681_v15 = vsel %vm3678_vm5, %v3648_v32, 0.0 }
 0x66a   : > { %v3713_v25 = vadd.f32 %v3681_v15, %v2812_v33  ;;  %v3560_v17 = vpop.permute.xlu1 %3559 }
 0x66b   : > { %3746 = vst [vmem:[%s6786_s4 + $0x18] sm:$0xff] %v3714_v12  ;;  %v3651_v61 = vsel %vm3645_vm4, %v6394_v42, %v3560_v17  ;;  %v3558_v16 = vpop.permute.xlu0 %3557  ;;  %v2817_v42 = vld [vmem:[%s6786_s4 + $0x38] sm:$0xff] }
 0x66c   : > { %3745 = vst [vmem:[%s6786_s4 + $0x10] sm:$0xff] %v3713_v25  ;;  %v3684_v49 = vsel %vm3678_vm5, %v3651_v61, 0.0  ;;  %v3650_v46 = vsel %vm3645_vm4, %v6397_v10, %v3558_v16  ;;  %v2822_v25 = vld [vmem:[%s6786_s4 + $0x60] sm:$0xff] }
 0x66d   : > { %v3716_v8 = vadd.f32 %v3684_v49, %v2815_v56  ;;  %v3683_v1 = vsel %vm3678_vm5, %v3650_v46, 0.0 }
 0x66e   : > { %v3715_v30 = vadd.f32 %v3683_v1, %v2814_v19 }
 0x66f   : > { %3748 = vst [vmem:[%s6786_s4 + $0x28] sm:$0xff] %v3716_v8  ;;  %v2824_v8 = vld [vmem:[%s6786_s4 + $0x70] sm:$0xff] }
 0x670   : > { %3747 = vst [vmem:[%s6786_s4 + $0x20] sm:$0xff] %v3715_v30 }
 0x671   : > { %v3564_v6 = vpop.permute.xlu1 %3563 }
 0x672   : > { %v3653_v10 = vsel %vm3645_vm4, %v6400_v26, %v3564_v6  ;;  %v3562_v59 = vpop.permute.xlu0 %3561  ;;  %v2819_v26 = vld [vmem:[%s6786_s4 + $0x48] sm:$0xff] }
 0x673   : > { %v3686_v47 = vsel %vm3678_vm5, %v3653_v10, 0.0  ;;  %v3652_v48 = vsel %vm3645_vm4, %v6403_v14, %v3562_v59 }
 0x674   : > { %v3718_v63 = vadd.f32 %v3686_v47, %v2817_v42  ;;  %v3685_v13 = vsel %vm3678_vm5, %v3652_v48, 0.0  ;;  %v2826_v47 = vld [vmem:[%s6786_s4 + $0x80] sm:$0xff] }
 0x675   : > { %v3717_v36 = vadd.f32 %v3685_v13, %v2816_v21 }
 0x676   : > { %3750 = vst [vmem:[%s6786_s4 + $0x38] sm:$0xff] %v3718_v63 }
 0x677   : > { %3749 = vst [vmem:[%s6786_s4 + $0x30] sm:$0xff] %v3717_v36 }
 0x679   : > { %v3568_v29 = vpop.permute.xlu1 %3567 }
 0x67a   : > { %v3655_v14 = vsel %vm3645_vm4, %v6405_v9, %v3568_v29  ;;  %v3566_v4 = vpop.permute.xlu0 %3565  ;;  %v2821_v9 = vld [vmem:[%s6786_s4 + $0x58] sm:$0xff] }
 0x67b   : > { %v3688_v39 = vsel %vm3678_vm5, %v3655_v14, 0.0  ;;  %v3654_v55 = vsel %vm3645_vm4, %v6407_v18, %v3566_v4 }
 0x67c   : > { %v3720_v34 = vadd.f32 %v3688_v39, %v2819_v26  ;;  %v3687_v27 = vsel %vm3678_vm5, %v3654_v55, 0.0 }
 0x67d   : > { %v3719_v57 = vadd.f32 %v3687_v27, %v2818_v51  ;;  %v2828_v51 = vld [vmem:[%s6786_s4 + $0x90] sm:$0xff] }
 0x67e   : > { %3752 = vst [vmem:[%s6786_s4 + $0x48] sm:$0xff] %v3720_v34 }
 0x67f   : > { %3751 = vst [vmem:[%s6786_s4 + $0x40] sm:$0xff] %v3719_v57 }
 0x681   : > { %v3572_v62 = vpop.permute.xlu1 %3571 }
 0x682   : > { %v3657_v18 = vsel %vm3645_vm4, %v6409_v54, %v3572_v62  ;;  %v3570_v52 = vpop.permute.xlu0 %3569  ;;  %v2823_v54 = vld [vmem:[%s6786_s4 + $0x68] sm:$0xff]  ;;  %v2830_v62 = vld [vmem:[%s6786_s4 + $0xa0] sm:$0xff] }
 0x683   : > { %v3690_v33 = vsel %vm3678_vm5, %v3657_v18, 0.0  ;;  %v3656_v60 = vsel %vm3645_vm4, %v6411_v7, %v3570_v52 }
 0x684   : > { %v3722_v2 = vadd.f32 %v3690_v33, %v2821_v9  ;;  %v3689_v32 = vsel %vm3678_vm5, %v3656_v60, 0.0 }
 0x685   : > { %v3721_v12 = vadd.f32 %v3689_v32, %v2820_v31 }
 0x686   : > { %3754 = vst [vmem:[%s6786_s4 + $0x58] sm:$0xff] %v3722_v2 }
 0x687   : > { %3753 = vst [vmem:[%s6786_s4 + $0x50] sm:$0xff] %v3721_v12  ;;  %v2832_v12 = vld [vmem:[%s6786_s4 + $0xb0] sm:$0xff] }
 0x689   : > { %v3576_v15 = vpop.permute.xlu1 %3575 }
 0x68a   : > { %v3659_v7 = vsel %vm3645_vm4, %v6413_v20, %v3576_v15  ;;  %v3574_v56 = vpop.permute.xlu0 %3573  ;;  %v2825_v20 = vld [vmem:[%s6786_s4 + $0x78] sm:$0xff] }
 0x68b   : > { %v3692_v17 = vsel %vm3678_vm5, %v3659_v7, 0.0  ;;  %v3658_v61 = vsel %vm3645_vm4, %v6415_v45, %v3574_v56 }
 0x68c   : > { %v3724_v19 = vadd.f32 %v3692_v17, %v2823_v54  ;;  %v3691_v16 = vsel %vm3678_vm5, %v3658_v61, 0.0 }
 0x68d   : > { %v3723_v49 = vadd.f32 %v3691_v16, %v2822_v25 }
 0x68e   : > { %3756 = vst [vmem:[%s6786_s4 + $0x68] sm:$0xff] %v3724_v19  ;;  %v2834_v19 = vld [vmem:[%s6786_s4 + $0xc0] sm:$0xff] }
 0x68f   : > { %3755 = vst [vmem:[%s6786_s4 + $0x60] sm:$0xff] %v3723_v49 }
 0x691   : > { %v3580_v46 = vpop.permute.xlu1 %3579 }
 0x692   : > { %v3661_v45 = vsel %vm3645_vm4, %v6417_v41, %v3580_v46  ;;  %v3578_v1 = vpop.permute.xlu0 %3577  ;;  %v2827_v41 = vld [vmem:[%s6786_s4 + $0x88] sm:$0xff] }
 0x693   : > { %v3694_v30 = vsel %vm3678_vm5, %v3661_v45, 0.0  ;;  %v3660_v42 = vsel %vm3645_vm4, %v6419_v3, %v3578_v1 }
 0x694   : > { %v3726_v6 = vadd.f32 %v3694_v30, %v2825_v20  ;;  %v3693_v10 = vsel %vm3678_vm5, %v3660_v42, 0.0  ;;  %v2836_v30 = vld [vmem:[%s6786_s4 + $0xd0] sm:$0xff] }
 0x695   : > { %v3725_v21 = vadd.f32 %v3693_v10, %v2824_v8 }
 0x696   : > { %3758 = vst [vmem:[%s6786_s4 + $0x78] sm:$0xff] %v3726_v6 }
 0x697   : > { %3757 = vst [vmem:[%s6786_s4 + $0x70] sm:$0xff] %v3725_v21 }
 0x699   : > { %v3584_v59 = vpop.permute.xlu1 %3583 }
 0x69a   : > { %v3663_v3 = vsel %vm3645_vm4, %v6421_v37, %v3584_v59  ;;  %v3582_v48 = vpop.permute.xlu0 %3581  ;;  %v2829_v37 = vld [vmem:[%s6786_s4 + $0x98] sm:$0xff] }
 0x69b   : > { %v3696_v63 = vsel %vm3678_vm5, %v3663_v3, 0.0  ;;  %v3662_v13 = vsel %vm3645_vm4, %v6423_v0, %v3582_v48 }
 0x69c   : > { %v3728_v36 = vadd.f32 %v3696_v63, %v2827_v41  ;;  %v3695_v26 = vsel %vm3678_vm5, %v3662_v13, 0.0 }
 0x69d   : > { %v3727_v29 = vadd.f32 %v3695_v26, %v2826_v47  ;;  %v2838_v47 = vld [vmem:[%s6786_s4 + $0xe0] sm:$0xff] }
 0x69e   : > { %3760 = vst [vmem:[%s6786_s4 + $0x88] sm:$0xff] %v3728_v36 }
 0x69f   : > { %3759 = vst [vmem:[%s6786_s4 + $0x80] sm:$0xff] %v3727_v29 }
 0x6a1   : > { %v3588_v14 = vpop.permute.xlu1 %3587 }
 0x6a2   : > { %v3665_v0 = vsel %vm3645_vm4, %v6425_v5, %v3588_v14  ;;  %v3586_v4 = vpop.permute.xlu0 %3585  ;;  %v2831_v5 = vld [vmem:[%s6786_s4 + $0xa8] sm:$0xff]  ;;  %v2840_v14 = vld [vmem:[%s6786_s4 + $0xf0] sm:$0xff] }
 0x6a3   : > { %v3698_v39 = vsel %vm3678_vm5, %v3665_v0, 0.0  ;;  %v3664_v55 = vsel %vm3645_vm4, %v6427_v11, %v3586_v4 }
 0x6a4   : > { %v3730_v34 = vadd.f32 %v3698_v39, %v2829_v37  ;;  %v3697_v27 = vsel %vm3678_vm5, %v3664_v55, 0.0 }
 0x6a5   : > { %v3729_v57 = vadd.f32 %v3697_v27, %v2828_v51 }
 0x6a6   : > { %3762 = vst [vmem:[%s6786_s4 + $0x98] sm:$0xff] %v3730_v34 }
 0x6a7   : > { %3761 = vst [vmem:[%s6786_s4 + $0x90] sm:$0xff] %v3729_v57 }
 0x6a9   : > { %v3592_v9 = vpop.permute.xlu1 %3591 }
 0x6aa   : > { %v3667_v11 = vsel %vm3645_vm4, %v6429_v23, %v3592_v9  ;;  %v3590_v18 = vpop.permute.xlu0 %3589  ;;  %v2833_v23 = vld [vmem:[%s6786_s4 + $0xb8] sm:$0xff] }
 0x6ab   : > { %v3700_v31 = vsel %vm3678_vm5, %v3667_v11, 0.0  ;;  %v3666_v52 = vsel %vm3645_vm4, %v6431_v50, %v3590_v18 }
 0x6ac   : > { %v3732_v33 = vadd.f32 %v3700_v31, %v2831_v5  ;;  %v3699_v60 = vsel %vm3678_vm5, %v3666_v52, 0.0 }
 0x6ad   : > { %v3731_v2 = vadd.f32 %v3699_v60, %v2830_v62 }
 0x6ae   : > { %3764 = vst [vmem:[%s6786_s4 + $0xa8] sm:$0xff] %v3732_v33 }
 0x6af   : > { %3763 = vst [vmem:[%s6786_s4 + $0xa0] sm:$0xff] %v3731_v2 }
 0x6b1   : > { %v3596_v32 = vpop.permute.xlu1 %3595 }
 0x6b2   : > { %v3669_v50 = vsel %vm3645_vm4, %v6433_v35, %v3596_v32  ;;  %v3594_v54 = vpop.permute.xlu0 %3593  ;;  %v2835_v35 = vld [vmem:[%s6786_s4 + $0xc8] sm:$0xff] }
 0x6b3   : > { %v3702_v15 = vsel %vm3678_vm5, %v3669_v50, 0.0  ;;  %v3668_v7 = vsel %vm3645_vm4, %v6435_v40, %v3594_v54 }
 0x6b4   : > { %v3734_v25 = vadd.f32 %v3702_v15, %v2833_v23  ;;  %v3701_v56 = vsel %vm3678_vm5, %v3668_v7, 0.0 }
 0x6b5   : > { %v3733_v17 = vadd.f32 %v3701_v56, %v2832_v12 }
 0x6b6   : > { %3766 = vst [vmem:[%s6786_s4 + $0xb8] sm:$0xff] %v3734_v25 }
 0x6b7   : > { %3765 = vst [vmem:[%s6786_s4 + $0xb0] sm:$0xff] %v3733_v17 }
 0x6b9   : > { %v3600_v61 = vpop.permute.xlu1 %3599 }
 0x6ba   : > { %v3671_v40 = vsel %vm3645_vm4, %v6437_v24, %v3600_v61  ;;  %v3598_v16 = vpop.permute.xlu0 %3597  ;;  %v2837_v24 = vld [vmem:[%s6786_s4 + $0xd8] sm:$0xff] }
 0x6bb   : > { %v3704_v49 = vsel %vm3678_vm5, %v3671_v40, 0.0  ;;  %v3670_v20 = vsel %vm3645_vm4, %v6439_v28, %v3598_v16 }
 0x6bc   : > { %v3736_v46 = vadd.f32 %v3704_v49, %v2835_v35  ;;  %v3703_v45 = vsel %vm3678_vm5, %v3670_v20, 0.0 }
 0x6bd   : > { %v3735_v8 = vadd.f32 %v3703_v45, %v2834_v19 }
 0x6be   : > { %3768 = vst [vmem:[%s6786_s4 + $0xc8] sm:$0xff] %v3736_v46 }
 0x6bf   : > { %3767 = vst [vmem:[%s6786_s4 + $0xc0] sm:$0xff] %v3735_v8 }
 0x6c1   : > { %v3604_v1 = vpop.permute.xlu1 %3603 }
 0x6c2   : > { %v3673_v28 = vsel %vm3645_vm4, %v6441_v43, %v3604_v1  ;;  %v3602_v42 = vpop.permute.xlu0 %3601  ;;  %v2839_v43 = vld [vmem:[%s6786_s4 + $0xe8] sm:$0xff] }
 0x6c3   : > { %v3706_v6 = vsel %vm3678_vm5, %v3673_v28, 0.0  ;;  %v3672_v10 = vsel %vm3645_vm4, %v6443_v58, %v3602_v42 }
 0x6c4   : > { %v3738_v21 = vadd.f32 %v3706_v6, %v2837_v24  ;;  %v3705_v41 = vsel %vm3678_vm5, %v3672_v10, 0.0 }
 0x6c5   : > { %v3737_v59 = vadd.f32 %v3705_v41, %v2836_v30 }
 0x6c6   : > { %3770 = vst [vmem:[%s6786_s4 + $0xd8] sm:$0xff] %v3738_v21 }
 0x6c7   : > { %3769 = vst [vmem:[%s6786_s4 + $0xd0] sm:$0xff] %v3737_v59 }
 0x6c9   : > { %v3608_v3 = vpop.permute.xlu1 %3607 }
 0x6ca   : > { %v3675_v58 = vsel %vm3645_vm4, %v6445_v38, %v3608_v3  ;;  %v3606_v48 = vpop.permute.xlu0 %3605  ;;  %v2841_v38 = vld [vmem:[%s6786_s4 + $0xf8] sm:$0xff] }
 0x6cb   : > { %v3708_v63 = vsel %vm3678_vm5, %v3675_v58, 0.0  ;;  %v3674_v13 = vsel %vm3645_vm4, %v6447_v53, %v3606_v48 }
 0x6cc   : > { %v3740_v36 = vadd.f32 %v3708_v63, %v2839_v43  ;;  %v3707_v26 = vsel %vm3678_vm5, %v3674_v13, 0.0 }
 0x6cd   : > { %v3739_v29 = vadd.f32 %v3707_v26, %v2838_v47 }
 0x6ce   : > { %3772 = vst [vmem:[%s6786_s4 + $0xe8] sm:$0xff] %v3740_v36 }
 0x6cf   : > { %3771 = vst [vmem:[%s6786_s4 + $0xe0] sm:$0xff] %v3739_v29 }
 0x6d1   : > { %v3612_v37 = vpop.permute.xlu1 %3611 }
 0x6d2   : > { %v3677_v53 = vsel %vm3645_vm4, %v6449_v22, %v3612_v37  ;;  %v3610_v0 = vpop.permute.xlu0 %3609 }
 0x6d3   : > { %v3710_v51 = vsel %vm3678_vm5, %v3677_v53, 0.0  ;;  %v3676_v4 = vsel %vm3645_vm4, %v6451_v44, %v3610_v0 }
 0x6d4   : > { %v3742_v39 = vadd.f32 %v3710_v51, %v2841_v38  ;;  %v3709_v55 = vsel %vm3678_vm5, %v3676_v4, 0.0 }
 0x6d5   : > { %v3741_v34 = vadd.f32 %v3709_v55, %v2840_v14 }
 0x6d6   : > { %3774 = vst [vmem:[%s6786_s4 + $0xf8] sm:$0xff] %v3742_v39 }
 0x6d7   : > { %3773 = vst [vmem:[%s6786_s4 + $0xf0] sm:$0xff] %v3741_v34 }
 0x6d8 PF: > { %s14_s17 = sadd.s32 1, %s4696_s17   ;;  %s7007_s15 = smov %s4692_s16 }
 0x6d9   : > { %p11_p6 = scmp.ge.s32.totalorder %s14_s17, 4   ;;  %s7008_s16 = smov %s7010_s18 }
 0x6db   :  { %13 = sbr.rel (!%p11_p6) target bundleno = 2 (0x2), region = 77 }

</bundles_post_ra>
